<compile_context>
chip_gen: v6e
topology: v6e:2x2x1
jax: 0.10.0
libtpu: 0.0.40
codegen_flags: <defaults>
</compile_context>

<pallas_src>
import jax
import jax.numpy as jnp
from jax import lax
from jax.experimental import pallas as pl
from jax.experimental.pallas import tpu as pltpu

START_IDX = 4  # tag_to_ix['<START>']
STOP_IDX = 5   # tag_to_ix['<STOP>']


def bilstm_crf_kernel(x_ref, w_ref, consts_ref, hc_ref, feats_ref, misc_ref, xp_ref):
    L, Bc, E = x_ref.shape
    H = hc_ref.shape[2]
    T = feats_ref.shape[2]
    W = misc_ref.shape[1]

    # ---------------- unpack packed weight / constant slabs (plain ref loads) ----------------
    wihT_bf = w_ref[0:E, :].astype(jnp.bfloat16)                    # (E, 4H)
    whhT_bf = w_ref[E:E + H, :].astype(jnp.bfloat16)                # (H, 4H)
    wtagT_bf = w_ref[E + H:E + 2 * H, 0:T].astype(jnp.bfloat16)     # (H, T)
    bias = consts_ref[0:1, :]                                       # (1, 4H) = b_ih + b_hh
    btag = consts_ref[1 + T:2 + T, 0:T]                             # (1, T)

    # ---------------- hoisted input projection: one (L*Bc, E) @ (E, 4H) matmul ----------------
    x2d = x_ref[...].reshape(L * Bc, E)                             # time-major, layout no-op
    xp_ref[...] = (jnp.dot(x2d.astype(jnp.bfloat16), wihT_bf,
                           preferred_element_type=jnp.float32) + bias)

    # ---------------- LSTM recurrence (num_layers=1, unidirectional), fully unrolled ----------------
    h = hc_ref[0]                                                   # (Bc, H) f32
    c = hc_ref[1]                                                   # (Bc, H) f32
    hs = []
    for t in range(L):                                              # static L -> full unroll
        xp_t = xp_ref[t * Bc:(t + 1) * Bc, :]                       # aligned (Bc, 4H) load
        gates = xp_t + jnp.dot(h.astype(jnp.bfloat16), whhT_bf,
                               preferred_element_type=jnp.float32)  # (Bc, 4H) gate order i,f,g,o
        sg = jax.nn.sigmoid(gates)                                  # one full-width sigmoid (EUP)
        tg = jnp.tanh(gates)                                        # one full-width tanh (EUP)
        i_g = sg[:, 0:H]
        f_g = sg[:, H:2 * H]
        g_g = tg[:, 2 * H:3 * H]
        o_g = sg[:, 3 * H:4 * H]
        c = f_g * c + i_g * g_g
        h = o_g * jnp.tanh(c)
        hs.append(h)                                                # hidden states stay in vregs

    h_all = jnp.concatenate(hs, axis=0)                             # (L*Bc, H), time-major

    # ---------------- hidden2tag: one deferred (L*Bc, H) @ (H, T) matmul ----------------
    feats = (jnp.dot(h_all.astype(jnp.bfloat16), wtagT_bf,
                     preferred_element_type=jnp.float32) + btag)    # (L*Bc, T)
    feats3 = feats.reshape(L, Bc, T)                                # [t] -> one (Bc, T) tile
    feats_ref[...] = feats3

    # ---------------- CRF Viterbi forward recursion ----------------
    # Vectorized over batch (sublanes) and previous tag (lanes); next tag is a small
    # fully-unrolled loop, mirroring the PyTorch per-next_tag structure.
    lane_T = lax.broadcasted_iota(jnp.int32, (Bc, T), 1)
    trans_rows = [consts_ref[1 + j:2 + j, 0:T] for j in range(T)]   # transitions[j, :]

    fv = jnp.where(lane_T == START_IDX, 0.0, -10000.0).astype(jnp.float32)   # (Bc, T)
    bps = []
    for t in range(L):                                              # static -> full unroll
        viter = jnp.zeros((Bc, T), jnp.float32)
        bp = jnp.zeros((Bc, T), jnp.int32)
        for j in range(T):                                          # next tag
            nv = fv + trans_rows[j]                                 # (Bc, T), prev tag on lanes
            best_j = jnp.max(nv, axis=1, keepdims=True)             # (Bc, 1)
            # first-index tie-break (torch.max tie behaviour is implementation-defined anyway)
            bp_j = jnp.min(jnp.where(nv == best_j, lane_T, T),
                           axis=1, keepdims=True)                   # (Bc, 1) int32
            viter = jnp.where(lane_T == j, best_j, viter)
            bp = jnp.where(lane_T == j, bp_j, bp)
        fv = viter + feats3[t]                                      # emissions added after argmax
        bps.append(bp)

    stop_row = consts_ref[1 + STOP_IDX:2 + STOP_IDX, 0:T]           # transitions[STOP, :]
    term = fv + stop_row                                            # (Bc, T)
    score = jnp.max(term, axis=1, keepdims=True)                    # (Bc, 1) path score
    cur = jnp.min(jnp.where(term == score, lane_T, T),
                  axis=1, keepdims=True)                            # (Bc, 1) int32

    # ---------------- backtrace + lane-dense misc slab (path | score | implied start) ----------------
    lane_W = lax.broadcasted_iota(jnp.int32, (Bc, W), 1)
    misc = jnp.where(lane_W == (L - 1), cur.astype(jnp.float32),
                     jnp.zeros((Bc, W), jnp.float32))
    for t in range(L - 1, 0, -1):                                   # static -> full unroll
        prev = jnp.sum(jnp.where(lane_T == cur, bps[t], 0),
                       axis=1, keepdims=True)                       # (Bc, 1) one-hot gather
        misc = jnp.where(lane_W == (t - 1), prev.astype(jnp.float32), misc)
        cur = prev
    # Start tag implied by the t=0 backpointer (the PyTorch code asserts it equals START).
    # TODO(synk): no in-kernel assert; the implied start tag is returned for the caller to check.
    start = jnp.sum(jnp.where(lane_T == cur, bps[0], 0), axis=1, keepdims=True)
    misc = jnp.where(lane_W == L, score, misc)
    misc = jnp.where(lane_W == (L + 1), start.astype(jnp.float32), misc)
    misc_ref[...] = misc                                            # one unmasked (Bc, 128) store


def bilstm_crf_forward(x, w_ih, w_hh, b_ih, b_hh, h0, c0, w_tag, b_tag, transitions,
                       *, batch_block=8):
    """Batched BiLSTM_CRF.forward. x: (B, L, E); h0/c0: (B, H); PyTorch-layout parameters.

    Returns (score (B,), best_path (B, L) int32, lstm_feats (B, L, T), implied_start_tag (B,)).
    Layout prep (transposes / packing into two slabs) happens outside the kernel.
    """
    B, L, E = x.shape
    H = h0.shape[-1]
    T = transitions.shape[0]
    G = 4 * H                                   # gate width; 4H=128 exactly fills an MXU/lane tile
    Bc = min(batch_block, B)
    assert B % Bc == 0, "pad the batch to a multiple of batch_block"
    n_blocks = B // Bc

    # Pack parameters into two slabs -> 4 operand DMAs instead of 12.
    w_slab = jnp.zeros((E + 2 * H, G), jnp.float32)
    w_slab = w_slab.at[0:E, :].set(w_ih.T)                          # W_ih^T   (E, 4H)
    w_slab = w_slab.at[E:E + H, :].set(w_hh.T)                      # W_hh^T   (H, 4H)
    w_slab = w_slab.at[E + H:E + 2 * H, 0:T].set(w_tag.T)           # W_tag^T  (H, T)

    c_rows = max(8, -(-(2 + T) // 8) * 8)
    consts = jnp.zeros((c_rows, G), jnp.float32)
    consts = consts.at[0, :].set(b_ih + b_hh)                       # gate bias
    consts = consts.at[1:1 + T, 0:T].set(transitions)               # transitions[next, prev]
    consts = consts.at[1 + T, 0:T].set(b_tag)                       # tag bias

    x_tm = jnp.transpose(x, (1, 0, 2))                              # (L, B, E) time-major
    hc0 = jnp.stack([h0, c0], axis=0)                               # (2, B, H)

    W_misc = 128                                                    # lane-dense misc slab width

    feats_tm, misc = pl.pallas_call(
        bilstm_crf_kernel,
        out_shape=(
            jax.ShapeDtypeStruct((L, B, T), jnp.float32),           # lstm feats (time-major)
            jax.ShapeDtypeStruct((B, W_misc), jnp.float32),         # path | score | start slab
        ),
        grid_spec=pltpu.PrefetchScalarGridSpec(
            num_scalar_prefetch=0,
            grid=(n_blocks,),
            in_specs=[
                pl.BlockSpec((L, Bc, E), lambda b: (0, b, 0)),      # x, batch-blocked
                pl.BlockSpec((E + 2 * H, G), lambda b: (0, 0)),     # weight slab (not re-fetched)
                pl.BlockSpec((c_rows, G), lambda b: (0, 0)),        # const slab (not re-fetched)
                pl.BlockSpec((2, Bc, H), lambda b: (0, b, 0)),      # (h0, c0), batch-blocked
            ],
            out_specs=(
                pl.BlockSpec((L, Bc, T), lambda b: (0, b, 0)),
                pl.BlockSpec((Bc, W_misc), lambda b: (b, 0)),
            ),
            scratch_shapes=[pltpu.VMEM((L * Bc, G), jnp.float32)],  # hoisted input projection
        ),
        compiler_params=pltpu.CompilerParams(
            dimension_semantics=("parallel",)),   # v7x: batch blocks split across the 2 TCs
    )(x_tm, w_slab, consts, hc0)

    feats = jnp.transpose(feats_tm, (1, 0, 2))                      # (B, L, T)
    path = misc[:, 0:L].astype(jnp.int32)
    score = misc[:, L]
    start = misc[:, L + 1].astype(jnp.int32)
    return score, path, feats, start


if __name__ == "__main__":
    # Small deterministic setup consistent with BiLSTM_CRF(tag_to_ix, embedding_dim, hidden_dim).
    B, L, E, H = 16, 8, 16, 32      # batch, seq_len, embedding_dim, hidden_dim
    T = 6                           # tag_to_ix = {'0','1','2','3','<START>','<STOP>'}
    key = jax.random.PRNGKey(0)
    ks = jax.random.split(key, 10)
    bound = 1.0 / (H ** 0.5)

    x = jax.random.normal(ks[0], (B, L, E), jnp.float32)            # batch of train_data sequences

    w_ih = jax.random.uniform(ks[1], (4 * H, E), jnp.float32, -bound, bound)
    w_hh = jax.random.uniform(ks[2], (4 * H, H), jnp.float32, -bound, bound)
    b_ih = jax.random.uniform(ks[3], (4 * H,), jnp.float32, -bound, bound)
    b_hh = jax.random.uniform(ks[4], (4 * H,), jnp.float32, -bound, bound)
    w_tag = jax.random.uniform(ks[5], (T, H), jnp.float32, -bound, bound)
    b_tag = jax.random.uniform(ks[6], (T,), jnp.float32, -bound, bound)

    transitions = jax.random.normal(ks[7], (T, T), jnp.float32)
    transitions = transitions.at[START_IDX, :].set(-10000.0)
    transitions = transitions.at[:, STOP_IDX].set(-10000.0)

    # init_hidden() is torch.randn each call; fixed deterministically here, one per sequence.
    h0 = jax.random.normal(ks[8], (B, H), jnp.float32)
    c0 = jax.random.normal(ks[9], (B, H), jnp.float32)

    fwd = jax.jit(bilstm_crf_forward)
    score, best_path, feats, start_tag = fwd(x, w_ih, w_hh, b_ih, b_hh,
                                             h0, c0, w_tag, b_tag, transitions)
    jax.block_until_ready((score, best_path, feats, start_tag))
    print("KERNEL_OK")
</pallas_src>

<mosaic_0001>
module attributes {stable_mosaic.version = 11 : i64} {
  func.func @bilstm_crf_kernel(%arg0: i32, %arg1: memref<8x8x16xf32, #tpu.memory_space<vmem>>, %arg2: memref<80x128xf32, #tpu.memory_space<vmem>>, %arg3: memref<8x128xf32, #tpu.memory_space<vmem>>, %arg4: memref<2x8x32xf32, #tpu.memory_space<vmem>>, %arg5: memref<8x8x6xf32, #tpu.memory_space<vmem>>, %arg6: memref<8x128xf32, #tpu.memory_space<vmem>>, %arg7: memref<64x128xf32, #tpu.memory_space<vmem>>) attributes {dimension_semantics = [#tpu.dimension_semantics<parallel>], iteration_bounds = array<i64: 2>, scalar_prefetch = 0 : i64, scratch_operands = 1 : i64, tpu.core_type = #tpu.core_type<tc>, window_params = [{transform_indices = @transform_0, window_bounds = array<i64: 8, 8, 16>}, {pipeline_mode = #tpu.pipeline_mode<synchronous>, transform_indices = @transform_1, window_bounds = array<i64: 80, 128>}, {pipeline_mode = #tpu.pipeline_mode<synchronous>, transform_indices = @transform_2, window_bounds = array<i64: 8, 128>}, {transform_indices = @transform_3, window_bounds = array<i64: 2, 8, 32>}, {transform_indices = @transform_4, window_bounds = array<i64: 8, 8, 6>}, {transform_indices = @transform_5, window_bounds = array<i64: 8, 128>}]} {
    %c0 = arith.constant 0 : index
    %c0_0 = arith.constant 0 : index
    %0 = vector.load %arg2[%c0, %c0_0] : memref<80x128xf32, #tpu.memory_space<vmem>>, vector<16x128xf32>
    %1 = arith.truncf %0 : vector<16x128xf32> to vector<16x128xbf16>
    %c16 = arith.constant 16 : index
    %c0_1 = arith.constant 0 : index
    %2 = vector.load %arg2[%c16, %c0_1] : memref<80x128xf32, #tpu.memory_space<vmem>>, vector<32x128xf32>
    %3 = arith.truncf %2 : vector<32x128xf32> to vector<32x128xbf16>
    %c48 = arith.constant 48 : index
    %c0_2 = arith.constant 0 : index
    %4 = vector.load %arg2[%c48, %c0_2] : memref<80x128xf32, #tpu.memory_space<vmem>>, vector<32x6xf32>
    %5 = arith.truncf %4 : vector<32x6xf32> to vector<32x6xbf16>
    %c0_3 = arith.constant 0 : index
    %c0_4 = arith.constant 0 : index
    %6 = vector.load %arg3[%c0_3, %c0_4] : memref<8x128xf32, #tpu.memory_space<vmem>>, vector<1x128xf32>
    %c7 = arith.constant 7 : index
    %c0_5 = arith.constant 0 : index
    %7 = vector.load %arg3[%c7, %c0_5] : memref<8x128xf32, #tpu.memory_space<vmem>>, vector<1x6xf32>
    %c0_6 = arith.constant 0 : index
    %c0_7 = arith.constant 0 : index
    %c0_8 = arith.constant 0 : index
    %8 = vector.load %arg1[%c0_6, %c0_7, %c0_8] : memref<8x8x16xf32, #tpu.memory_space<vmem>>, vector<8x8x16xf32>
    %9 = vector.shape_cast %8 : vector<8x8x16xf32> to vector<64x16xf32>
    %10 = arith.truncf %9 : vector<64x16xf32> to vector<64x16xbf16>
    %cst = arith.constant dense<0.000000e+00> : vector<64x128xf32>
    %11 = tpu.matmul %10, %1, %cst {dimension_numbers = #tpu.dot_dimension_numbers<[1], [0], [0], [1], [0, 0, 1, 1], [], []>} : vector<64x16xbf16>, vector<16x128xbf16>, vector<64x128xf32> -> vector<64x128xf32>
    %12 = vector.broadcast %6 : vector<1x128xf32> to vector<64x128xf32>
    %13 = arith.addf %11, %12 : vector<64x128xf32>
    %c0_9 = arith.constant 0 : index
    %c0_10 = arith.constant 0 : index
    %14 = vector.load %arg7[%c0_9, %c0_10] : memref<64x128xf32, #tpu.memory_space<vmem>>, vector<64x128xf32>
    tpu.vector_store %arg7[%c0_9, %c0_10], %13 {strides = array<i32>} : memref<64x128xf32, #tpu.memory_space<vmem>>, vector<64x128xf32>,
    %c0_11 = arith.constant 0 : index
    %c0_12 = arith.constant 0 : index
    %c0_13 = arith.constant 0 : index
    %15 = vector.load %arg4[%c0_11, %c0_12, %c0_13] : memref<2x8x32xf32, #tpu.memory_space<vmem>>, vector<1x8x32xf32>
    %16 = vector.shape_cast %15 : vector<1x8x32xf32> to vector<8x32xf32>
    %c1 = arith.constant 1 : index
    %c0_14 = arith.constant 0 : index
    %c0_15 = arith.constant 0 : index
    %17 = vector.load %arg4[%c1, %c0_14, %c0_15] : memref<2x8x32xf32, #tpu.memory_space<vmem>>, vector<1x8x32xf32>
    %18 = vector.shape_cast %17 : vector<1x8x32xf32> to vector<8x32xf32>
    %c0_16 = arith.constant 0 : index
    %c0_17 = arith.constant 0 : index
    %19 = vector.load %arg7[%c0_16, %c0_17] : memref<64x128xf32, #tpu.memory_space<vmem>>, vector<8x128xf32>
    %20 = arith.truncf %16 : vector<8x32xf32> to vector<8x32xbf16>
    %cst_18 = arith.constant dense<0.000000e+00> : vector<8x128xf32>
    %21 = tpu.matmul %20, %3, %cst_18 {dimension_numbers = #tpu.dot_dimension_numbers<[1], [0], [0], [1], [0, 0, 1, 1], [], []>} : vector<8x32xbf16>, vector<32x128xbf16>, vector<8x128xf32> -> vector<8x128xf32>
    %22 = arith.addf %19, %21 : vector<8x128xf32>
    %23 = arith.negf %22 : vector<8x128xf32>
    %24 = math.exp %23 : vector<8x128xf32>
    %cst_19 = arith.constant 1.000000e+00 : f32
    %25 = vector.broadcast %cst_19 : f32 to vector<8x128xf32>
    %26 = arith.addf %25, %24 : vector<8x128xf32>
    %27 = arith.divf %25, %26 : vector<8x128xf32>
    %28 = math.tanh %22 : vector<8x128xf32>
    %29 = vector.extract_strided_slice %27 {offsets = [0, 0], sizes = [8, 32], strides = [1, 1]} : vector<8x128xf32> to vector<8x32xf32>
    %30 = vector.extract_strided_slice %27 {offsets = [0, 32], sizes = [8, 32], strides = [1, 1]} : vector<8x128xf32> to vector<8x32xf32>
    %31 = vector.extract_strided_slice %28 {offsets = [0, 64], sizes = [8, 32], strides = [1, 1]} : vector<8x128xf32> to vector<8x32xf32>
    %32 = vector.extract_strided_slice %27 {offsets = [0, 96], sizes = [8, 32], strides = [1, 1]} : vector<8x128xf32> to vector<8x32xf32>
    %33 = arith.mulf %30, %18 : vector<8x32xf32>
    %34 = arith.mulf %29, %31 : vector<8x32xf32>
    %35 = arith.addf %33, %34 : vector<8x32xf32>
    %36 = math.tanh %35 : vector<8x32xf32>
    %37 = arith.mulf %32, %36 : vector<8x32xf32>
    %c8 = arith.constant 8 : index
    %c0_20 = arith.constant 0 : index
    %38 = vector.load %arg7[%c8, %c0_20] : memref<64x128xf32, #tpu.memory_space<vmem>>, vector<8x128xf32>
    %39 = arith.truncf %37 : vector<8x32xf32> to vector<8x32xbf16>
    %cst_21 = arith.constant dense<0.000000e+00> : vector<8x128xf32>
    %40 = tpu.matmul %39, %3, %cst_21 {dimension_numbers = #tpu.dot_dimension_numbers<[1], [0], [0], [1], [0, 0, 1, 1], [], []>} : vector<8x32xbf16>, vector<32x128xbf16>, vector<8x128xf32> -> vector<8x128xf32>
    %41 = arith.addf %38, %40 : vector<8x128xf32>
    %42 = arith.negf %41 : vector<8x128xf32>
    %43 = math.exp %42 : vector<8x128xf32>
    %cst_22 = arith.constant 1.000000e+00 : f32
    %44 = vector.broadcast %cst_22 : f32 to vector<8x128xf32>
    %45 = arith.addf %44, %43 : vector<8x128xf32>
    %46 = arith.divf %44, %45 : vector<8x128xf32>
    %47 = math.tanh %41 : vector<8x128xf32>
    %48 = vector.extract_strided_slice %46 {offsets = [0, 0], sizes = [8, 32], strides = [1, 1]} : vector<8x128xf32> to vector<8x32xf32>
    %49 = vector.extract_strided_slice %46 {offsets = [0, 32], sizes = [8, 32], strides = [1, 1]} : vector<8x128xf32> to vector<8x32xf32>
    %50 = vector.extract_strided_slice %47 {offsets = [0, 64], sizes = [8, 32], strides = [1, 1]} : vector<8x128xf32> to vector<8x32xf32>
    %51 = vector.extract_strided_slice %46 {offsets = [0, 96], sizes = [8, 32], strides = [1, 1]} : vector<8x128xf32> to vector<8x32xf32>
    %52 = arith.mulf %49, %35 : vector<8x32xf32>
    %53 = arith.mulf %48, %50 : vector<8x32xf32>
    %54 = arith.addf %52, %53 : vector<8x32xf32>
    %55 = math.tanh %54 : vector<8x32xf32>
    %56 = arith.mulf %51, %55 : vector<8x32xf32>
    %c16_23 = arith.constant 16 : index
    %c0_24 = arith.constant 0 : index
    %57 = vector.load %arg7[%c16_23, %c0_24] : memref<64x128xf32, #tpu.memory_space<vmem>>, vector<8x128xf32>
    %58 = arith.truncf %56 : vector<8x32xf32> to vector<8x32xbf16>
    %cst_25 = arith.constant dense<0.000000e+00> : vector<8x128xf32>
    %59 = tpu.matmul %58, %3, %cst_25 {dimension_numbers = #tpu.dot_dimension_numbers<[1], [0], [0], [1], [0, 0, 1, 1], [], []>} : vector<8x32xbf16>, vector<32x128xbf16>, vector<8x128xf32> -> vector<8x128xf32>
    %60 = arith.addf %57, %59 : vector<8x128xf32>
    %61 = arith.negf %60 : vector<8x128xf32>
    %62 = math.exp %61 : vector<8x128xf32>
    %cst_26 = arith.constant 1.000000e+00 : f32
    %63 = vector.broadcast %cst_26 : f32 to vector<8x128xf32>
    %64 = arith.addf %63, %62 : vector<8x128xf32>
    %65 = arith.divf %63, %64 : vector<8x128xf32>
    %66 = math.tanh %60 : vector<8x128xf32>
    %67 = vector.extract_strided_slice %65 {offsets = [0, 0], sizes = [8, 32], strides = [1, 1]} : vector<8x128xf32> to vector<8x32xf32>
    %68 = vector.extract_strided_slice %65 {offsets = [0, 32], sizes = [8, 32], strides = [1, 1]} : vector<8x128xf32> to vector<8x32xf32>
    %69 = vector.extract_strided_slice %66 {offsets = [0, 64], sizes = [8, 32], strides = [1, 1]} : vector<8x128xf32> to vector<8x32xf32>
    %70 = vector.extract_strided_slice %65 {offsets = [0, 96], sizes = [8, 32], strides = [1, 1]} : vector<8x128xf32> to vector<8x32xf32>
    %71 = arith.mulf %68, %54 : vector<8x32xf32>
    %72 = arith.mulf %67, %69 : vector<8x32xf32>
    %73 = arith.addf %71, %72 : vector<8x32xf32>
    %74 = math.tanh %73 : vector<8x32xf32>
    %75 = arith.mulf %70, %74 : vector<8x32xf32>
    %c24 = arith.constant 24 : index
    %c0_27 = arith.constant 0 : index
    %76 = vector.load %arg7[%c24, %c0_27] : memref<64x128xf32, #tpu.memory_space<vmem>>, vector<8x128xf32>
    %77 = arith.truncf %75 : vector<8x32xf32> to vector<8x32xbf16>
    %cst_28 = arith.constant dense<0.000000e+00> : vector<8x128xf32>
    %78 = tpu.matmul %77, %3, %cst_28 {dimension_numbers = #tpu.dot_dimension_numbers<[1], [0], [0], [1], [0, 0, 1, 1], [], []>} : vector<8x32xbf16>, vector<32x128xbf16>, vector<8x128xf32> -> vector<8x128xf32>
    %79 = arith.addf %76, %78 : vector<8x128xf32>
    %80 = arith.negf %79 : vector<8x128xf32>
    %81 = math.exp %80 : vector<8x128xf32>
    %cst_29 = arith.constant 1.000000e+00 : f32
    %82 = vector.broadcast %cst_29 : f32 to vector<8x128xf32>
    %83 = arith.addf %82, %81 : vector<8x128xf32>
    %84 = arith.divf %82, %83 : vector<8x128xf32>
    %85 = math.tanh %79 : vector<8x128xf32>
    %86 = vector.extract_strided_slice %84 {offsets = [0, 0], sizes = [8, 32], strides = [1, 1]} : vector<8x128xf32> to vector<8x32xf32>
    %87 = vector.extract_strided_slice %84 {offsets = [0, 32], sizes = [8, 32], strides = [1, 1]} : vector<8x128xf32> to vector<8x32xf32>
    %88 = vector.extract_strided_slice %85 {offsets = [0, 64], sizes = [8, 32], strides = [1, 1]} : vector<8x128xf32> to vector<8x32xf32>
    %89 = vector.extract_strided_slice %84 {offsets = [0, 96], sizes = [8, 32], strides = [1, 1]} : vector<8x128xf32> to vector<8x32xf32>
    %90 = arith.mulf %87, %73 : vector<8x32xf32>
    %91 = arith.mulf %86, %88 : vector<8x32xf32>
    %92 = arith.addf %90, %91 : vector<8x32xf32>
    %93 = math.tanh %92 : vector<8x32xf32>
    %94 = arith.mulf %89, %93 : vector<8x32xf32>
    %c32 = arith.constant 32 : index
    %c0_30 = arith.constant 0 : index
    %95 = vector.load %arg7[%c32, %c0_30] : memref<64x128xf32, #tpu.memory_space<vmem>>, vector<8x128xf32>
    %96 = arith.truncf %94 : vector<8x32xf32> to vector<8x32xbf16>
    %cst_31 = arith.constant dense<0.000000e+00> : vector<8x128xf32>
    %97 = tpu.matmul %96, %3, %cst_31 {dimension_numbers = #tpu.dot_dimension_numbers<[1], [0], [0], [1], [0, 0, 1, 1], [], []>} : vector<8x32xbf16>, vector<32x128xbf16>, vector<8x128xf32> -> vector<8x128xf32>
    %98 = arith.addf %95, %97 : vector<8x128xf32>
    %99 = arith.negf %98 : vector<8x128xf32>
    %100 = math.exp %99 : vector<8x128xf32>
    %cst_32 = arith.constant 1.000000e+00 : f32
    %101 = vector.broadcast %cst_32 : f32 to vector<8x128xf32>
    %102 = arith.addf %101, %100 : vector<8x128xf32>
    %103 = arith.divf %101, %102 : vector<8x128xf32>
    %104 = math.tanh %98 : vector<8x128xf32>
    %105 = vector.extract_strided_slice %103 {offsets = [0, 0], sizes = [8, 32], strides = [1, 1]} : vector<8x128xf32> to vector<8x32xf32>
    %106 = vector.extract_strided_slice %103 {offsets = [0, 32], sizes = [8, 32], strides = [1, 1]} : vector<8x128xf32> to vector<8x32xf32>
    %107 = vector.extract_strided_slice %104 {offsets = [0, 64], sizes = [8, 32], strides = [1, 1]} : vector<8x128xf32> to vector<8x32xf32>
    %108 = vector.extract_strided_slice %103 {offsets = [0, 96], sizes = [8, 32], strides = [1, 1]} : vector<8x128xf32> to vector<8x32xf32>
    %109 = arith.mulf %106, %92 : vector<8x32xf32>
    %110 = arith.mulf %105, %107 : vector<8x32xf32>
    %111 = arith.addf %109, %110 : vector<8x32xf32>
    %112 = math.tanh %111 : vector<8x32xf32>
    %113 = arith.mulf %108, %112 : vector<8x32xf32>
    %c40 = arith.constant 40 : index
    %c0_33 = arith.constant 0 : index
    %114 = vector.load %arg7[%c40, %c0_33] : memref<64x128xf32, #tpu.memory_space<vmem>>, vector<8x128xf32>
    %115 = arith.truncf %113 : vector<8x32xf32> to vector<8x32xbf16>
    %cst_34 = arith.constant dense<0.000000e+00> : vector<8x128xf32>
    %116 = tpu.matmul %115, %3, %cst_34 {dimension_numbers = #tpu.dot_dimension_numbers<[1], [0], [0], [1], [0, 0, 1, 1], [], []>} : vector<8x32xbf16>, vector<32x128xbf16>, vector<8x128xf32> -> vector<8x128xf32>
    %117 = arith.addf %114, %116 : vector<8x128xf32>
    %118 = arith.negf %117 : vector<8x128xf32>
    %119 = math.exp %118 : vector<8x128xf32>
    %cst_35 = arith.constant 1.000000e+00 : f32
    %120 = vector.broadcast %cst_35 : f32 to vector<8x128xf32>
    %121 = arith.addf %120, %119 : vector<8x128xf32>
    %122 = arith.divf %120, %121 : vector<8x128xf32>
    %123 = math.tanh %117 : vector<8x128xf32>
    %124 = vector.extract_strided_slice %122 {offsets = [0, 0], sizes = [8, 32], strides = [1, 1]} : vector<8x128xf32> to vector<8x32xf32>
    %125 = vector.extract_strided_slice %122 {offsets = [0, 32], sizes = [8, 32], strides = [1, 1]} : vector<8x128xf32> to vector<8x32xf32>
    %126 = vector.extract_strided_slice %123 {offsets = [0, 64], sizes = [8, 32], strides = [1, 1]} : vector<8x128xf32> to vector<8x32xf32>
    %127 = vector.extract_strided_slice %122 {offsets = [0, 96], sizes = [8, 32], strides = [1, 1]} : vector<8x128xf32> to vector<8x32xf32>
    %128 = arith.mulf %125, %111 : vector<8x32xf32>
    %129 = arith.mulf %124, %126 : vector<8x32xf32>
    %130 = arith.addf %128, %129 : vector<8x32xf32>
    %131 = math.tanh %130 : vector<8x32xf32>
    %132 = arith.mulf %127, %131 : vector<8x32xf32>
    %c48_36 = arith.constant 48 : index
    %c0_37 = arith.constant 0 : index
    %133 = vector.load %arg7[%c48_36, %c0_37] : memref<64x128xf32, #tpu.memory_space<vmem>>, vector<8x128xf32>
    %134 = arith.truncf %132 : vector<8x32xf32> to vector<8x32xbf16>
    %cst_38 = arith.constant dense<0.000000e+00> : vector<8x128xf32>
    %135 = tpu.matmul %134, %3, %cst_38 {dimension_numbers = #tpu.dot_dimension_numbers<[1], [0], [0], [1], [0, 0, 1, 1], [], []>} : vector<8x32xbf16>, vector<32x128xbf16>, vector<8x128xf32> -> vector<8x128xf32>
    %136 = arith.addf %133, %135 : vector<8x128xf32>
    %137 = arith.negf %136 : vector<8x128xf32>
    %138 = math.exp %137 : vector<8x128xf32>
    %cst_39 = arith.constant 1.000000e+00 : f32
    %139 = vector.broadcast %cst_39 : f32 to vector<8x128xf32>
    %140 = arith.addf %139, %138 : vector<8x128xf32>
    %141 = arith.divf %139, %140 : vector<8x128xf32>
    %142 = math.tanh %136 : vector<8x128xf32>
    %143 = vector.extract_strided_slice %141 {offsets = [0, 0], sizes = [8, 32], strides = [1, 1]} : vector<8x128xf32> to vector<8x32xf32>
    %144 = vector.extract_strided_slice %141 {offsets = [0, 32], sizes = [8, 32], strides = [1, 1]} : vector<8x128xf32> to vector<8x32xf32>
    %145 = vector.extract_strided_slice %142 {offsets = [0, 64], sizes = [8, 32], strides = [1, 1]} : vector<8x128xf32> to vector<8x32xf32>
    %146 = vector.extract_strided_slice %141 {offsets = [0, 96], sizes = [8, 32], strides = [1, 1]} : vector<8x128xf32> to vector<8x32xf32>
    %147 = arith.mulf %144, %130 : vector<8x32xf32>
    %148 = arith.mulf %143, %145 : vector<8x32xf32>
    %149 = arith.addf %147, %148 : vector<8x32xf32>
    %150 = math.tanh %149 : vector<8x32xf32>
    %151 = arith.mulf %146, %150 : vector<8x32xf32>
    %c56 = arith.constant 56 : index
    %c0_40 = arith.constant 0 : index
    %152 = vector.load %arg7[%c56, %c0_40] : memref<64x128xf32, #tpu.memory_space<vmem>>, vector<8x128xf32>
    %153 = arith.truncf %151 : vector<8x32xf32> to vector<8x32xbf16>
    %cst_41 = arith.constant dense<0.000000e+00> : vector<8x128xf32>
    %154 = tpu.matmul %153, %3, %cst_41 {dimension_numbers = #tpu.dot_dimension_numbers<[1], [0], [0], [1], [0, 0, 1, 1], [], []>} : vector<8x32xbf16>, vector<32x128xbf16>, vector<8x128xf32> -> vector<8x128xf32>
    %155 = arith.addf %152, %154 : vector<8x128xf32>
    %156 = arith.negf %155 : vector<8x128xf32>
    %157 = math.exp %156 : vector<8x128xf32>
    %cst_42 = arith.constant 1.000000e+00 : f32
    %158 = vector.broadcast %cst_42 : f32 to vector<8x128xf32>
    %159 = arith.addf %158, %157 : vector<8x128xf32>
    %160 = arith.divf %158, %159 : vector<8x128xf32>
    %161 = math.tanh %155 : vector<8x128xf32>
    %162 = vector.extract_strided_slice %160 {offsets = [0, 0], sizes = [8, 32], strides = [1, 1]} : vector<8x128xf32> to vector<8x32xf32>
    %163 = vector.extract_strided_slice %160 {offsets = [0, 32], sizes = [8, 32], strides = [1, 1]} : vector<8x128xf32> to vector<8x32xf32>
    %164 = vector.extract_strided_slice %161 {offsets = [0, 64], sizes = [8, 32], strides = [1, 1]} : vector<8x128xf32> to vector<8x32xf32>
    %165 = vector.extract_strided_slice %160 {offsets = [0, 96], sizes = [8, 32], strides = [1, 1]} : vector<8x128xf32> to vector<8x32xf32>
    %166 = arith.mulf %163, %149 : vector<8x32xf32>
    %167 = arith.mulf %162, %164 : vector<8x32xf32>
    %168 = arith.addf %166, %167 : vector<8x32xf32>
    %169 = math.tanh %168 : vector<8x32xf32>
    %170 = arith.mulf %165, %169 : vector<8x32xf32>
    %171 = tpu.concatenate %37, %56, %75, %94, %113, %132, %151, %170 in 0 : vector<8x32xf32>, vector<8x32xf32>, vector<8x32xf32>, vector<8x32xf32>, vector<8x32xf32>, vector<8x32xf32>, vector<8x32xf32>, vector<8x32xf32> -> vector<64x32xf32>
    %172 = arith.truncf %171 : vector<64x32xf32> to vector<64x32xbf16>
    %cst_43 = arith.constant dense<0.000000e+00> : vector<64x6xf32>
    %173 = tpu.matmul %172, %5, %cst_43 {dimension_numbers = #tpu.dot_dimension_numbers<[1], [0], [0], [1], [0, 0, 1, 1], [], []>} : vector<64x32xbf16>, vector<32x6xbf16>, vector<64x6xf32> -> vector<64x6xf32>
    %174 = vector.broadcast %7 : vector<1x6xf32> to vector<64x6xf32>
    %175 = arith.addf %173, %174 : vector<64x6xf32>
    %176 = vector.shape_cast %175 : vector<64x6xf32> to vector<8x8x6xf32>
    %c0_44 = arith.constant 0 : index
    %c0_45 = arith.constant 0 : index
    %c0_46 = arith.constant 0 : index
    %177 = vector.load %arg5[%c0_44, %c0_45, %c0_46] : memref<8x8x6xf32, #tpu.memory_space<vmem>>, vector<8x8x6xf32>
    tpu.vector_store %arg5[%c0_44, %c0_45, %c0_46], %176 {strides = array<i32>} : memref<8x8x6xf32, #tpu.memory_space<vmem>>, vector<8x8x6xf32>,
    %178 = tpu.iota {dimensions = array<i32: 1>} : vector<8x6xi32>
    %c1_47 = arith.constant 1 : index
    %c0_48 = arith.constant 0 : index
    %179 = vector.load %arg3[%c1_47, %c0_48] : memref<8x128xf32, #tpu.memory_space<vmem>>, vector<1x6xf32>
    %c2 = arith.constant 2 : index
    %c0_49 = arith.constant 0 : index
    %180 = vector.load %arg3[%c2, %c0_49] : memref<8x128xf32, #tpu.memory_space<vmem>>, vector<1x6xf32>
    %c3 = arith.constant 3 : index
    %c0_50 = arith.constant 0 : index
    %181 = vector.load %arg3[%c3, %c0_50] : memref<8x128xf32, #tpu.memory_space<vmem>>, vector<1x6xf32>
    %c4 = arith.constant 4 : index
    %c0_51 = arith.constant 0 : index
    %182 = vector.load %arg3[%c4, %c0_51] : memref<8x128xf32, #tpu.memory_space<vmem>>, vector<1x6xf32>
    %c5 = arith.constant 5 : index
    %c0_52 = arith.constant 0 : index
    %183 = vector.load %arg3[%c5, %c0_52] : memref<8x128xf32, #tpu.memory_space<vmem>>, vector<1x6xf32>
    %c6 = arith.constant 6 : index
    %c0_53 = arith.constant 0 : index
    %184 = vector.load %arg3[%c6, %c0_53] : memref<8x128xf32, #tpu.memory_space<vmem>>, vector<1x6xf32>
    %c4_i32 = arith.constant 4 : i32
    %185 = vector.broadcast %c4_i32 : i32 to vector<8x6xi32>
    %186 = arith.cmpi eq, %178, %185 : vector<8x6xi32>
    %cst_54 = arith.constant 0.000000e+00 : f32
    %cst_55 = arith.constant -1.000000e+04 : f32
    %187 = vector.broadcast %cst_54 : f32 to vector<8x6xf32>
    %188 = vector.broadcast %cst_55 : f32 to vector<8x6xf32>
    %189 = arith.select %186, %187, %188 : vector<8x6xi1>, vector<8x6xf32>
    %cst_56 = arith.constant 0.000000e+00 : f32
    %190 = vector.broadcast %cst_56 : f32 to vector<8x6xf32>
    %c0_i32 = arith.constant 0 : i32
    %191 = vector.broadcast %c0_i32 : i32 to vector<8x6xi32>
    %192 = vector.broadcast %179 : vector<1x6xf32> to vector<8x6xf32>
    %193 = arith.addf %189, %192 : vector<8x6xf32>
    %cst_57 = arith.constant dense<0xFF800000> : vector<8xf32>
    %194 = vector.multi_reduction <maximumf>, %193, %cst_57 [1] : vector<8x6xf32> to vector<8xf32>
    %195 = vector.shape_cast %194 : vector<8xf32> to vector<8x1xf32>
    %196 = vector.broadcast %195 : vector<8x1xf32> to vector<8x6xf32>
    %197 = arith.cmpf oeq, %193, %196 : vector<8x6xf32>
    %c6_i32 = arith.constant 6 : i32
    %198 = vector.broadcast %c6_i32 : i32 to vector<8x6xi32>
    %199 = arith.select %197, %178, %198 : vector<8x6xi1>, vector<8x6xi32>
    %cst_58 = arith.constant dense<2147483647> : vector<8xi32>
    %200 = vector.multi_reduction <minsi>, %199, %cst_58 [1] : vector<8x6xi32> to vector<8xi32>
    %201 = vector.shape_cast %200 : vector<8xi32> to vector<8x1xi32>
    %c0_i32_59 = arith.constant 0 : i32
    %202 = vector.broadcast %c0_i32_59 : i32 to vector<8x6xi32>
    %203 = arith.cmpi eq, %178, %202 : vector<8x6xi32>
    %204 = vector.shape_cast %195 : vector<8x1xf32> to vector<8x1xf32>
    %205 = vector.broadcast %204 : vector<8x1xf32> to vector<8x6xf32>
    %206 = arith.select %203, %205, %190 : vector<8x6xi1>, vector<8x6xf32>
    %c0_i32_60 = arith.constant 0 : i32
    %207 = vector.broadcast %c0_i32_60 : i32 to vector<8x6xi32>
    %208 = arith.cmpi eq, %178, %207 : vector<8x6xi32>
    %209 = vector.shape_cast %201 : vector<8x1xi32> to vector<8x1xi32>
    %210 = vector.broadcast %209 : vector<8x1xi32> to vector<8x6xi32>
    %211 = arith.select %208, %210, %191 : vector<8x6xi1>, vector<8x6xi32>
    %212 = vector.broadcast %180 : vector<1x6xf32> to vector<8x6xf32>
    %213 = arith.addf %189, %212 : vector<8x6xf32>
    %cst_61 = arith.constant dense<0xFF800000> : vector<8xf32>
    %214 = vector.multi_reduction <maximumf>, %213, %cst_61 [1] : vector<8x6xf32> to vector<8xf32>
    %215 = vector.shape_cast %214 : vector<8xf32> to vector<8x1xf32>
    %216 = vector.broadcast %215 : vector<8x1xf32> to vector<8x6xf32>
    %217 = arith.cmpf oeq, %213, %216 : vector<8x6xf32>
    %c6_i32_62 = arith.constant 6 : i32
    %218 = vector.broadcast %c6_i32_62 : i32 to vector<8x6xi32>
    %219 = arith.select %217, %178, %218 : vector<8x6xi1>, vector<8x6xi32>
    %cst_63 = arith.constant dense<2147483647> : vector<8xi32>
    %220 = vector.multi_reduction <minsi>, %219, %cst_63 [1] : vector<8x6xi32> to vector<8xi32>
    %221 = vector.shape_cast %220 : vector<8xi32> to vector<8x1xi32>
    %c1_i32 = arith.constant 1 : i32
    %222 = vector.broadcast %c1_i32 : i32 to vector<8x6xi32>
    %223 = arith.cmpi eq, %178, %222 : vector<8x6xi32>
    %224 = vector.shape_cast %215 : vector<8x1xf32> to vector<8x1xf32>
    %225 = vector.broadcast %224 : vector<8x1xf32> to vector<8x6xf32>
    %226 = arith.select %223, %225, %206 : vector<8x6xi1>, vector<8x6xf32>
    %c1_i32_64 = arith.constant 1 : i32
    %227 = vector.broadcast %c1_i32_64 : i32 to vector<8x6xi32>
    %228 = arith.cmpi eq, %178, %227 : vector<8x6xi32>
    %229 = vector.shape_cast %221 : vector<8x1xi32> to vector<8x1xi32>
    %230 = vector.broadcast %229 : vector<8x1xi32> to vector<8x6xi32>
    %231 = arith.select %228, %230, %211 : vector<8x6xi1>, vector<8x6xi32>
    %232 = vector.broadcast %181 : vector<1x6xf32> to vector<8x6xf32>
    %233 = arith.addf %189, %232 : vector<8x6xf32>
    %cst_65 = arith.constant dense<0xFF800000> : vector<8xf32>
    %234 = vector.multi_reduction <maximumf>, %233, %cst_65 [1] : vector<8x6xf32> to vector<8xf32>
    %235 = vector.shape_cast %234 : vector<8xf32> to vector<8x1xf32>
    %236 = vector.broadcast %235 : vector<8x1xf32> to vector<8x6xf32>
    %237 = arith.cmpf oeq, %233, %236 : vector<8x6xf32>
    %c6_i32_66 = arith.constant 6 : i32
    %238 = vector.broadcast %c6_i32_66 : i32 to vector<8x6xi32>
    %239 = arith.select %237, %178, %238 : vector<8x6xi1>, vector<8x6xi32>
    %cst_67 = arith.constant dense<2147483647> : vector<8xi32>
    %240 = vector.multi_reduction <minsi>, %239, %cst_67 [1] : vector<8x6xi32> to vector<8xi32>
    %241 = vector.shape_cast %240 : vector<8xi32> to vector<8x1xi32>
    %c2_i32 = arith.constant 2 : i32
    %242 = vector.broadcast %c2_i32 : i32 to vector<8x6xi32>
    %243 = arith.cmpi eq, %178, %242 : vector<8x6xi32>
    %244 = vector.shape_cast %235 : vector<8x1xf32> to vector<8x1xf32>
    %245 = vector.broadcast %244 : vector<8x1xf32> to vector<8x6xf32>
    %246 = arith.select %243, %245, %226 : vector<8x6xi1>, vector<8x6xf32>
    %c2_i32_68 = arith.constant 2 : i32
    %247 = vector.broadcast %c2_i32_68 : i32 to vector<8x6xi32>
    %248 = arith.cmpi eq, %178, %247 : vector<8x6xi32>
    %249 = vector.shape_cast %241 : vector<8x1xi32> to vector<8x1xi32>
    %250 = vector.broadcast %249 : vector<8x1xi32> to vector<8x6xi32>
    %251 = arith.select %248, %250, %231 : vector<8x6xi1>, vector<8x6xi32>
    %252 = vector.broadcast %182 : vector<1x6xf32> to vector<8x6xf32>
    %253 = arith.addf %189, %252 : vector<8x6xf32>
    %cst_69 = arith.constant dense<0xFF800000> : vector<8xf32>
    %254 = vector.multi_reduction <maximumf>, %253, %cst_69 [1] : vector<8x6xf32> to vector<8xf32>
    %255 = vector.shape_cast %254 : vector<8xf32> to vector<8x1xf32>
    %256 = vector.broadcast %255 : vector<8x1xf32> to vector<8x6xf32>
    %257 = arith.cmpf oeq, %253, %256 : vector<8x6xf32>
    %c6_i32_70 = arith.constant 6 : i32
    %258 = vector.broadcast %c6_i32_70 : i32 to vector<8x6xi32>
    %259 = arith.select %257, %178, %258 : vector<8x6xi1>, vector<8x6xi32>
    %cst_71 = arith.constant dense<2147483647> : vector<8xi32>
    %260 = vector.multi_reduction <minsi>, %259, %cst_71 [1] : vector<8x6xi32> to vector<8xi32>
    %261 = vector.shape_cast %260 : vector<8xi32> to vector<8x1xi32>
    %c3_i32 = arith.constant 3 : i32
    %262 = vector.broadcast %c3_i32 : i32 to vector<8x6xi32>
    %263 = arith.cmpi eq, %178, %262 : vector<8x6xi32>
    %264 = vector.shape_cast %255 : vector<8x1xf32> to vector<8x1xf32>
    %265 = vector.broadcast %264 : vector<8x1xf32> to vector<8x6xf32>
    %266 = arith.select %263, %265, %246 : vector<8x6xi1>, vector<8x6xf32>
    %c3_i32_72 = arith.constant 3 : i32
    %267 = vector.broadcast %c3_i32_72 : i32 to vector<8x6xi32>
    %268 = arith.cmpi eq, %178, %267 : vector<8x6xi32>
    %269 = vector.shape_cast %261 : vector<8x1xi32> to vector<8x1xi32>
    %270 = vector.broadcast %269 : vector<8x1xi32> to vector<8x6xi32>
    %271 = arith.select %268, %270, %251 : vector<8x6xi1>, vector<8x6xi32>
    %272 = vector.broadcast %183 : vector<1x6xf32> to vector<8x6xf32>
    %273 = arith.addf %189, %272 : vector<8x6xf32>
    %cst_73 = arith.constant dense<0xFF800000> : vector<8xf32>
    %274 = vector.multi_reduction <maximumf>, %273, %cst_73 [1] : vector<8x6xf32> to vector<8xf32>
    %275 = vector.shape_cast %274 : vector<8xf32> to vector<8x1xf32>
    %276 = vector.broadcast %275 : vector<8x1xf32> to vector<8x6xf32>
    %277 = arith.cmpf oeq, %273, %276 : vector<8x6xf32>
    %c6_i32_74 = arith.constant 6 : i32
    %278 = vector.broadcast %c6_i32_74 : i32 to vector<8x6xi32>
    %279 = arith.select %277, %178, %278 : vector<8x6xi1>, vector<8x6xi32>
    %cst_75 = arith.constant dense<2147483647> : vector<8xi32>
    %280 = vector.multi_reduction <minsi>, %279, %cst_75 [1] : vector<8x6xi32> to vector<8xi32>
    %281 = vector.shape_cast %280 : vector<8xi32> to vector<8x1xi32>
    %c4_i32_76 = arith.constant 4 : i32
    %282 = vector.broadcast %c4_i32_76 : i32 to vector<8x6xi32>
    %283 = arith.cmpi eq, %178, %282 : vector<8x6xi32>
    %284 = vector.shape_cast %275 : vector<8x1xf32> to vector<8x1xf32>
    %285 = vector.broadcast %284 : vector<8x1xf32> to vector<8x6xf32>
    %286 = arith.select %283, %285, %266 : vector<8x6xi1>, vector<8x6xf32>
    %c4_i32_77 = arith.constant 4 : i32
    %287 = vector.broadcast %c4_i32_77 : i32 to vector<8x6xi32>
    %288 = arith.cmpi eq, %178, %287 : vector<8x6xi32>
    %289 = vector.shape_cast %281 : vector<8x1xi32> to vector<8x1xi32>
    %290 = vector.broadcast %289 : vector<8x1xi32> to vector<8x6xi32>
    %291 = arith.select %288, %290, %271 : vector<8x6xi1>, vector<8x6xi32>
    %292 = vector.broadcast %184 : vector<1x6xf32> to vector<8x6xf32>
    %293 = arith.addf %189, %292 : vector<8x6xf32>
    %cst_78 = arith.constant dense<0xFF800000> : vector<8xf32>
    %294 = vector.multi_reduction <maximumf>, %293, %cst_78 [1] : vector<8x6xf32> to vector<8xf32>
    %295 = vector.shape_cast %294 : vector<8xf32> to vector<8x1xf32>
    %296 = vector.broadcast %295 : vector<8x1xf32> to vector<8x6xf32>
    %297 = arith.cmpf oeq, %293, %296 : vector<8x6xf32>
    %c6_i32_79 = arith.constant 6 : i32
    %298 = vector.broadcast %c6_i32_79 : i32 to vector<8x6xi32>
    %299 = arith.select %297, %178, %298 : vector<8x6xi1>, vector<8x6xi32>
    %cst_80 = arith.constant dense<2147483647> : vector<8xi32>
    %300 = vector.multi_reduction <minsi>, %299, %cst_80 [1] : vector<8x6xi32> to vector<8xi32>
    %301 = vector.shape_cast %300 : vector<8xi32> to vector<8x1xi32>
    %c5_i32 = arith.constant 5 : i32
    %302 = vector.broadcast %c5_i32 : i32 to vector<8x6xi32>
    %303 = arith.cmpi eq, %178, %302 : vector<8x6xi32>
    %304 = vector.shape_cast %295 : vector<8x1xf32> to vector<8x1xf32>
    %305 = vector.broadcast %304 : vector<8x1xf32> to vector<8x6xf32>
    %306 = arith.select %303, %305, %286 : vector<8x6xi1>, vector<8x6xf32>
    %c5_i32_81 = arith.constant 5 : i32
    %307 = vector.broadcast %c5_i32_81 : i32 to vector<8x6xi32>
    %308 = arith.cmpi eq, %178, %307 : vector<8x6xi32>
    %309 = vector.shape_cast %301 : vector<8x1xi32> to vector<8x1xi32>
    %310 = vector.broadcast %309 : vector<8x1xi32> to vector<8x6xi32>
    %311 = arith.select %308, %310, %291 : vector<8x6xi1>, vector<8x6xi32>
    %312 = vector.extract_strided_slice %176 {offsets = [0, 0, 0], sizes = [1, 8, 6], strides = [1, 1, 1]} : vector<8x8x6xf32> to vector<1x8x6xf32>
    %313 = vector.shape_cast %312 : vector<1x8x6xf32> to vector<8x6xf32>
    %314 = arith.addf %306, %313 : vector<8x6xf32>
    %cst_82 = arith.constant 0.000000e+00 : f32
    %315 = vector.broadcast %cst_82 : f32 to vector<8x6xf32>
    %c0_i32_83 = arith.constant 0 : i32
    %316 = vector.broadcast %c0_i32_83 : i32 to vector<8x6xi32>
    %317 = vector.broadcast %179 : vector<1x6xf32> to vector<8x6xf32>
    %318 = arith.addf %314, %317 : vector<8x6xf32>
    %cst_84 = arith.constant dense<0xFF800000> : vector<8xf32>
    %319 = vector.multi_reduction <maximumf>, %318, %cst_84 [1] : vector<8x6xf32> to vector<8xf32>
    %320 = vector.shape_cast %319 : vector<8xf32> to vector<8x1xf32>
    %321 = vector.broadcast %320 : vector<8x1xf32> to vector<8x6xf32>
    %322 = arith.cmpf oeq, %318, %321 : vector<8x6xf32>
    %c6_i32_85 = arith.constant 6 : i32
    %323 = vector.broadcast %c6_i32_85 : i32 to vector<8x6xi32>
    %324 = arith.select %322, %178, %323 : vector<8x6xi1>, vector<8x6xi32>
    %cst_86 = arith.constant dense<2147483647> : vector<8xi32>
    %325 = vector.multi_reduction <minsi>, %324, %cst_86 [1] : vector<8x6xi32> to vector<8xi32>
    %326 = vector.shape_cast %325 : vector<8xi32> to vector<8x1xi32>
    %c0_i32_87 = arith.constant 0 : i32
    %327 = vector.broadcast %c0_i32_87 : i32 to vector<8x6xi32>
    %328 = arith.cmpi eq, %178, %327 : vector<8x6xi32>
    %329 = vector.shape_cast %320 : vector<8x1xf32> to vector<8x1xf32>
    %330 = vector.broadcast %329 : vector<8x1xf32> to vector<8x6xf32>
    %331 = arith.select %328, %330, %315 : vector<8x6xi1>, vector<8x6xf32>
    %c0_i32_88 = arith.constant 0 : i32
    %332 = vector.broadcast %c0_i32_88 : i32 to vector<8x6xi32>
    %333 = arith.cmpi eq, %178, %332 : vector<8x6xi32>
    %334 = vector.shape_cast %326 : vector<8x1xi32> to vector<8x1xi32>
    %335 = vector.broadcast %334 : vector<8x1xi32> to vector<8x6xi32>
    %336 = arith.select %333, %335, %316 : vector<8x6xi1>, vector<8x6xi32>
    %337 = vector.broadcast %180 : vector<1x6xf32> to vector<8x6xf32>
    %338 = arith.addf %314, %337 : vector<8x6xf32>
    %cst_89 = arith.constant dense<0xFF800000> : vector<8xf32>
    %339 = vector.multi_reduction <maximumf>, %338, %cst_89 [1] : vector<8x6xf32> to vector<8xf32>
    %340 = vector.shape_cast %339 : vector<8xf32> to vector<8x1xf32>
    %341 = vector.broadcast %340 : vector<8x1xf32> to vector<8x6xf32>
    %342 = arith.cmpf oeq, %338, %341 : vector<8x6xf32>
    %c6_i32_90 = arith.constant 6 : i32
    %343 = vector.broadcast %c6_i32_90 : i32 to vector<8x6xi32>
    %344 = arith.select %342, %178, %343 : vector<8x6xi1>, vector<8x6xi32>
    %cst_91 = arith.constant dense<2147483647> : vector<8xi32>
    %345 = vector.multi_reduction <minsi>, %344, %cst_91 [1] : vector<8x6xi32> to vector<8xi32>
    %346 = vector.shape_cast %345 : vector<8xi32> to vector<8x1xi32>
    %c1_i32_92 = arith.constant 1 : i32
    %347 = vector.broadcast %c1_i32_92 : i32 to vector<8x6xi32>
    %348 = arith.cmpi eq, %178, %347 : vector<8x6xi32>
    %349 = vector.shape_cast %340 : vector<8x1xf32> to vector<8x1xf32>
    %350 = vector.broadcast %349 : vector<8x1xf32> to vector<8x6xf32>
    %351 = arith.select %348, %350, %331 : vector<8x6xi1>, vector<8x6xf32>
    %c1_i32_93 = arith.constant 1 : i32
    %352 = vector.broadcast %c1_i32_93 : i32 to vector<8x6xi32>
    %353 = arith.cmpi eq, %178, %352 : vector<8x6xi32>
    %354 = vector.shape_cast %346 : vector<8x1xi32> to vector<8x1xi32>
    %355 = vector.broadcast %354 : vector<8x1xi32> to vector<8x6xi32>
    %356 = arith.select %353, %355, %336 : vector<8x6xi1>, vector<8x6xi32>
    %357 = vector.broadcast %181 : vector<1x6xf32> to vector<8x6xf32>
    %358 = arith.addf %314, %357 : vector<8x6xf32>
    %cst_94 = arith.constant dense<0xFF800000> : vector<8xf32>
    %359 = vector.multi_reduction <maximumf>, %358, %cst_94 [1] : vector<8x6xf32> to vector<8xf32>
    %360 = vector.shape_cast %359 : vector<8xf32> to vector<8x1xf32>
    %361 = vector.broadcast %360 : vector<8x1xf32> to vector<8x6xf32>
    %362 = arith.cmpf oeq, %358, %361 : vector<8x6xf32>
    %c6_i32_95 = arith.constant 6 : i32
    %363 = vector.broadcast %c6_i32_95 : i32 to vector<8x6xi32>
    %364 = arith.select %362, %178, %363 : vector<8x6xi1>, vector<8x6xi32>
    %cst_96 = arith.constant dense<2147483647> : vector<8xi32>
    %365 = vector.multi_reduction <minsi>, %364, %cst_96 [1] : vector<8x6xi32> to vector<8xi32>
    %366 = vector.shape_cast %365 : vector<8xi32> to vector<8x1xi32>
    %c2_i32_97 = arith.constant 2 : i32
    %367 = vector.broadcast %c2_i32_97 : i32 to vector<8x6xi32>
    %368 = arith.cmpi eq, %178, %367 : vector<8x6xi32>
    %369 = vector.shape_cast %360 : vector<8x1xf32> to vector<8x1xf32>
    %370 = vector.broadcast %369 : vector<8x1xf32> to vector<8x6xf32>
    %371 = arith.select %368, %370, %351 : vector<8x6xi1>, vector<8x6xf32>
    %c2_i32_98 = arith.constant 2 : i32
    %372 = vector.broadcast %c2_i32_98 : i32 to vector<8x6xi32>
    %373 = arith.cmpi eq, %178, %372 : vector<8x6xi32>
    %374 = vector.shape_cast %366 : vector<8x1xi32> to vector<8x1xi32>
    %375 = vector.broadcast %374 : vector<8x1xi32> to vector<8x6xi32>
    %376 = arith.select %373, %375, %356 : vector<8x6xi1>, vector<8x6xi32>
    %377 = vector.broadcast %182 : vector<1x6xf32> to vector<8x6xf32>
    %378 = arith.addf %314, %377 : vector<8x6xf32>
    %cst_99 = arith.constant dense<0xFF800000> : vector<8xf32>
    %379 = vector.multi_reduction <maximumf>, %378, %cst_99 [1] : vector<8x6xf32> to vector<8xf32>
    %380 = vector.shape_cast %379 : vector<8xf32> to vector<8x1xf32>
    %381 = vector.broadcast %380 : vector<8x1xf32> to vector<8x6xf32>
    %382 = arith.cmpf oeq, %378, %381 : vector<8x6xf32>
    %c6_i32_100 = arith.constant 6 : i32
    %383 = vector.broadcast %c6_i32_100 : i32 to vector<8x6xi32>
    %384 = arith.select %382, %178, %383 : vector<8x6xi1>, vector<8x6xi32>
    %cst_101 = arith.constant dense<2147483647> : vector<8xi32>
    %385 = vector.multi_reduction <minsi>, %384, %cst_101 [1] : vector<8x6xi32> to vector<8xi32>
    %386 = vector.shape_cast %385 : vector<8xi32> to vector<8x1xi32>
    %c3_i32_102 = arith.constant 3 : i32
    %387 = vector.broadcast %c3_i32_102 : i32 to vector<8x6xi32>
    %388 = arith.cmpi eq, %178, %387 : vector<8x6xi32>
    %389 = vector.shape_cast %380 : vector<8x1xf32> to vector<8x1xf32>
    %390 = vector.broadcast %389 : vector<8x1xf32> to vector<8x6xf32>
    %391 = arith.select %388, %390, %371 : vector<8x6xi1>, vector<8x6xf32>
    %c3_i32_103 = arith.constant 3 : i32
    %392 = vector.broadcast %c3_i32_103 : i32 to vector<8x6xi32>
    %393 = arith.cmpi eq, %178, %392 : vector<8x6xi32>
    %394 = vector.shape_cast %386 : vector<8x1xi32> to vector<8x1xi32>
    %395 = vector.broadcast %394 : vector<8x1xi32> to vector<8x6xi32>
    %396 = arith.select %393, %395, %376 : vector<8x6xi1>, vector<8x6xi32>
    %397 = vector.broadcast %183 : vector<1x6xf32> to vector<8x6xf32>
    %398 = arith.addf %314, %397 : vector<8x6xf32>
    %cst_104 = arith.constant dense<0xFF800000> : vector<8xf32>
    %399 = vector.multi_reduction <maximumf>, %398, %cst_104 [1] : vector<8x6xf32> to vector<8xf32>
    %400 = vector.shape_cast %399 : vector<8xf32> to vector<8x1xf32>
    %401 = vector.broadcast %400 : vector<8x1xf32> to vector<8x6xf32>
    %402 = arith.cmpf oeq, %398, %401 : vector<8x6xf32>
    %c6_i32_105 = arith.constant 6 : i32
    %403 = vector.broadcast %c6_i32_105 : i32 to vector<8x6xi32>
    %404 = arith.select %402, %178, %403 : vector<8x6xi1>, vector<8x6xi32>
    %cst_106 = arith.constant dense<2147483647> : vector<8xi32>
    %405 = vector.multi_reduction <minsi>, %404, %cst_106 [1] : vector<8x6xi32> to vector<8xi32>
    %406 = vector.shape_cast %405 : vector<8xi32> to vector<8x1xi32>
    %c4_i32_107 = arith.constant 4 : i32
    %407 = vector.broadcast %c4_i32_107 : i32 to vector<8x6xi32>
    %408 = arith.cmpi eq, %178, %407 : vector<8x6xi32>
    %409 = vector.shape_cast %400 : vector<8x1xf32> to vector<8x1xf32>
    %410 = vector.broadcast %409 : vector<8x1xf32> to vector<8x6xf32>
    %411 = arith.select %408, %410, %391 : vector<8x6xi1>, vector<8x6xf32>
    %c4_i32_108 = arith.constant 4 : i32
    %412 = vector.broadcast %c4_i32_108 : i32 to vector<8x6xi32>
    %413 = arith.cmpi eq, %178, %412 : vector<8x6xi32>
    %414 = vector.shape_cast %406 : vector<8x1xi32> to vector<8x1xi32>
    %415 = vector.broadcast %414 : vector<8x1xi32> to vector<8x6xi32>
    %416 = arith.select %413, %415, %396 : vector<8x6xi1>, vector<8x6xi32>
    %417 = vector.broadcast %184 : vector<1x6xf32> to vector<8x6xf32>
    %418 = arith.addf %314, %417 : vector<8x6xf32>
    %cst_109 = arith.constant dense<0xFF800000> : vector<8xf32>
    %419 = vector.multi_reduction <maximumf>, %418, %cst_109 [1] : vector<8x6xf32> to vector<8xf32>
    %420 = vector.shape_cast %419 : vector<8xf32> to vector<8x1xf32>
    %421 = vector.broadcast %420 : vector<8x1xf32> to vector<8x6xf32>
    %422 = arith.cmpf oeq, %418, %421 : vector<8x6xf32>
    %c6_i32_110 = arith.constant 6 : i32
    %423 = vector.broadcast %c6_i32_110 : i32 to vector<8x6xi32>
    %424 = arith.select %422, %178, %423 : vector<8x6xi1>, vector<8x6xi32>
    %cst_111 = arith.constant dense<2147483647> : vector<8xi32>
    %425 = vector.multi_reduction <minsi>, %424, %cst_111 [1] : vector<8x6xi32> to vector<8xi32>
    %426 = vector.shape_cast %425 : vector<8xi32> to vector<8x1xi32>
    %c5_i32_112 = arith.constant 5 : i32
    %427 = vector.broadcast %c5_i32_112 : i32 to vector<8x6xi32>
    %428 = arith.cmpi eq, %178, %427 : vector<8x6xi32>
    %429 = vector.shape_cast %420 : vector<8x1xf32> to vector<8x1xf32>
    %430 = vector.broadcast %429 : vector<8x1xf32> to vector<8x6xf32>
    %431 = arith.select %428, %430, %411 : vector<8x6xi1>, vector<8x6xf32>
    %c5_i32_113 = arith.constant 5 : i32
    %432 = vector.broadcast %c5_i32_113 : i32 to vector<8x6xi32>
    %433 = arith.cmpi eq, %178, %432 : vector<8x6xi32>
    %434 = vector.shape_cast %426 : vector<8x1xi32> to vector<8x1xi32>
    %435 = vector.broadcast %434 : vector<8x1xi32> to vector<8x6xi32>
    %436 = arith.select %433, %435, %416 : vector<8x6xi1>, vector<8x6xi32>
    %437 = vector.extract_strided_slice %176 {offsets = [1, 0, 0], sizes = [1, 8, 6], strides = [1, 1, 1]} : vector<8x8x6xf32> to vector<1x8x6xf32>
    %438 = vector.shape_cast %437 : vector<1x8x6xf32> to vector<8x6xf32>
    %439 = arith.addf %431, %438 : vector<8x6xf32>
    %cst_114 = arith.constant 0.000000e+00 : f32
    %440 = vector.broadcast %cst_114 : f32 to vector<8x6xf32>
    %c0_i32_115 = arith.constant 0 : i32
    %441 = vector.broadcast %c0_i32_115 : i32 to vector<8x6xi32>
    %442 = vector.broadcast %179 : vector<1x6xf32> to vector<8x6xf32>
    %443 = arith.addf %439, %442 : vector<8x6xf32>
    %cst_116 = arith.constant dense<0xFF800000> : vector<8xf32>
    %444 = vector.multi_reduction <maximumf>, %443, %cst_116 [1] : vector<8x6xf32> to vector<8xf32>
    %445 = vector.shape_cast %444 : vector<8xf32> to vector<8x1xf32>
    %446 = vector.broadcast %445 : vector<8x1xf32> to vector<8x6xf32>
    %447 = arith.cmpf oeq, %443, %446 : vector<8x6xf32>
    %c6_i32_117 = arith.constant 6 : i32
    %448 = vector.broadcast %c6_i32_117 : i32 to vector<8x6xi32>
    %449 = arith.select %447, %178, %448 : vector<8x6xi1>, vector<8x6xi32>
    %cst_118 = arith.constant dense<2147483647> : vector<8xi32>
    %450 = vector.multi_reduction <minsi>, %449, %cst_118 [1] : vector<8x6xi32> to vector<8xi32>
    %451 = vector.shape_cast %450 : vector<8xi32> to vector<8x1xi32>
    %c0_i32_119 = arith.constant 0 : i32
    %452 = vector.broadcast %c0_i32_119 : i32 to vector<8x6xi32>
    %453 = arith.cmpi eq, %178, %452 : vector<8x6xi32>
    %454 = vector.shape_cast %445 : vector<8x1xf32> to vector<8x1xf32>
    %455 = vector.broadcast %454 : vector<8x1xf32> to vector<8x6xf32>
    %456 = arith.select %453, %455, %440 : vector<8x6xi1>, vector<8x6xf32>
    %c0_i32_120 = arith.constant 0 : i32
    %457 = vector.broadcast %c0_i32_120 : i32 to vector<8x6xi32>
    %458 = arith.cmpi eq, %178, %457 : vector<8x6xi32>
    %459 = vector.shape_cast %451 : vector<8x1xi32> to vector<8x1xi32>
    %460 = vector.broadcast %459 : vector<8x1xi32> to vector<8x6xi32>
    %461 = arith.select %458, %460, %441 : vector<8x6xi1>, vector<8x6xi32>
    %462 = vector.broadcast %180 : vector<1x6xf32> to vector<8x6xf32>
    %463 = arith.addf %439, %462 : vector<8x6xf32>
    %cst_121 = arith.constant dense<0xFF800000> : vector<8xf32>
    %464 = vector.multi_reduction <maximumf>, %463, %cst_121 [1] : vector<8x6xf32> to vector<8xf32>
    %465 = vector.shape_cast %464 : vector<8xf32> to vector<8x1xf32>
    %466 = vector.broadcast %465 : vector<8x1xf32> to vector<8x6xf32>
    %467 = arith.cmpf oeq, %463, %466 : vector<8x6xf32>
    %c6_i32_122 = arith.constant 6 : i32
    %468 = vector.broadcast %c6_i32_122 : i32 to vector<8x6xi32>
    %469 = arith.select %467, %178, %468 : vector<8x6xi1>, vector<8x6xi32>
    %cst_123 = arith.constant dense<2147483647> : vector<8xi32>
    %470 = vector.multi_reduction <minsi>, %469, %cst_123 [1] : vector<8x6xi32> to vector<8xi32>
    %471 = vector.shape_cast %470 : vector<8xi32> to vector<8x1xi32>
    %c1_i32_124 = arith.constant 1 : i32
    %472 = vector.broadcast %c1_i32_124 : i32 to vector<8x6xi32>
    %473 = arith.cmpi eq, %178, %472 : vector<8x6xi32>
    %474 = vector.shape_cast %465 : vector<8x1xf32> to vector<8x1xf32>
    %475 = vector.broadcast %474 : vector<8x1xf32> to vector<8x6xf32>
    %476 = arith.select %473, %475, %456 : vector<8x6xi1>, vector<8x6xf32>
    %c1_i32_125 = arith.constant 1 : i32
    %477 = vector.broadcast %c1_i32_125 : i32 to vector<8x6xi32>
    %478 = arith.cmpi eq, %178, %477 : vector<8x6xi32>
    %479 = vector.shape_cast %471 : vector<8x1xi32> to vector<8x1xi32>
    %480 = vector.broadcast %479 : vector<8x1xi32> to vector<8x6xi32>
    %481 = arith.select %478, %480, %461 : vector<8x6xi1>, vector<8x6xi32>
    %482 = vector.broadcast %181 : vector<1x6xf32> to vector<8x6xf32>
    %483 = arith.addf %439, %482 : vector<8x6xf32>
    %cst_126 = arith.constant dense<0xFF800000> : vector<8xf32>
    %484 = vector.multi_reduction <maximumf>, %483, %cst_126 [1] : vector<8x6xf32> to vector<8xf32>
    %485 = vector.shape_cast %484 : vector<8xf32> to vector<8x1xf32>
    %486 = vector.broadcast %485 : vector<8x1xf32> to vector<8x6xf32>
    %487 = arith.cmpf oeq, %483, %486 : vector<8x6xf32>
    %c6_i32_127 = arith.constant 6 : i32
    %488 = vector.broadcast %c6_i32_127 : i32 to vector<8x6xi32>
    %489 = arith.select %487, %178, %488 : vector<8x6xi1>, vector<8x6xi32>
    %cst_128 = arith.constant dense<2147483647> : vector<8xi32>
    %490 = vector.multi_reduction <minsi>, %489, %cst_128 [1] : vector<8x6xi32> to vector<8xi32>
    %491 = vector.shape_cast %490 : vector<8xi32> to vector<8x1xi32>
    %c2_i32_129 = arith.constant 2 : i32
    %492 = vector.broadcast %c2_i32_129 : i32 to vector<8x6xi32>
    %493 = arith.cmpi eq, %178, %492 : vector<8x6xi32>
    %494 = vector.shape_cast %485 : vector<8x1xf32> to vector<8x1xf32>
    %495 = vector.broadcast %494 : vector<8x1xf32> to vector<8x6xf32>
    %496 = arith.select %493, %495, %476 : vector<8x6xi1>, vector<8x6xf32>
    %c2_i32_130 = arith.constant 2 : i32
    %497 = vector.broadcast %c2_i32_130 : i32 to vector<8x6xi32>
    %498 = arith.cmpi eq, %178, %497 : vector<8x6xi32>
    %499 = vector.shape_cast %491 : vector<8x1xi32> to vector<8x1xi32>
    %500 = vector.broadcast %499 : vector<8x1xi32> to vector<8x6xi32>
    %501 = arith.select %498, %500, %481 : vector<8x6xi1>, vector<8x6xi32>
    %502 = vector.broadcast %182 : vector<1x6xf32> to vector<8x6xf32>
    %503 = arith.addf %439, %502 : vector<8x6xf32>
    %cst_131 = arith.constant dense<0xFF800000> : vector<8xf32>
    %504 = vector.multi_reduction <maximumf>, %503, %cst_131 [1] : vector<8x6xf32> to vector<8xf32>
    %505 = vector.shape_cast %504 : vector<8xf32> to vector<8x1xf32>
    %506 = vector.broadcast %505 : vector<8x1xf32> to vector<8x6xf32>
    %507 = arith.cmpf oeq, %503, %506 : vector<8x6xf32>
    %c6_i32_132 = arith.constant 6 : i32
    %508 = vector.broadcast %c6_i32_132 : i32 to vector<8x6xi32>
    %509 = arith.select %507, %178, %508 : vector<8x6xi1>, vector<8x6xi32>
    %cst_133 = arith.constant dense<2147483647> : vector<8xi32>
    %510 = vector.multi_reduction <minsi>, %509, %cst_133 [1] : vector<8x6xi32> to vector<8xi32>
    %511 = vector.shape_cast %510 : vector<8xi32> to vector<8x1xi32>
    %c3_i32_134 = arith.constant 3 : i32
    %512 = vector.broadcast %c3_i32_134 : i32 to vector<8x6xi32>
    %513 = arith.cmpi eq, %178, %512 : vector<8x6xi32>
    %514 = vector.shape_cast %505 : vector<8x1xf32> to vector<8x1xf32>
    %515 = vector.broadcast %514 : vector<8x1xf32> to vector<8x6xf32>
    %516 = arith.select %513, %515, %496 : vector<8x6xi1>, vector<8x6xf32>
    %c3_i32_135 = arith.constant 3 : i32
    %517 = vector.broadcast %c3_i32_135 : i32 to vector<8x6xi32>
    %518 = arith.cmpi eq, %178, %517 : vector<8x6xi32>
    %519 = vector.shape_cast %511 : vector<8x1xi32> to vector<8x1xi32>
    %520 = vector.broadcast %519 : vector<8x1xi32> to vector<8x6xi32>
    %521 = arith.select %518, %520, %501 : vector<8x6xi1>, vector<8x6xi32>
    %522 = vector.broadcast %183 : vector<1x6xf32> to vector<8x6xf32>
    %523 = arith.addf %439, %522 : vector<8x6xf32>
    %cst_136 = arith.constant dense<0xFF800000> : vector<8xf32>
    %524 = vector.multi_reduction <maximumf>, %523, %cst_136 [1] : vector<8x6xf32> to vector<8xf32>
    %525 = vector.shape_cast %524 : vector<8xf32> to vector<8x1xf32>
    %526 = vector.broadcast %525 : vector<8x1xf32> to vector<8x6xf32>
    %527 = arith.cmpf oeq, %523, %526 : vector<8x6xf32>
    %c6_i32_137 = arith.constant 6 : i32
    %528 = vector.broadcast %c6_i32_137 : i32 to vector<8x6xi32>
    %529 = arith.select %527, %178, %528 : vector<8x6xi1>, vector<8x6xi32>
    %cst_138 = arith.constant dense<2147483647> : vector<8xi32>
    %530 = vector.multi_reduction <minsi>, %529, %cst_138 [1] : vector<8x6xi32> to vector<8xi32>
    %531 = vector.shape_cast %530 : vector<8xi32> to vector<8x1xi32>
    %c4_i32_139 = arith.constant 4 : i32
    %532 = vector.broadcast %c4_i32_139 : i32 to vector<8x6xi32>
    %533 = arith.cmpi eq, %178, %532 : vector<8x6xi32>
    %534 = vector.shape_cast %525 : vector<8x1xf32> to vector<8x1xf32>
    %535 = vector.broadcast %534 : vector<8x1xf32> to vector<8x6xf32>
    %536 = arith.select %533, %535, %516 : vector<8x6xi1>, vector<8x6xf32>
    %c4_i32_140 = arith.constant 4 : i32
    %537 = vector.broadcast %c4_i32_140 : i32 to vector<8x6xi32>
    %538 = arith.cmpi eq, %178, %537 : vector<8x6xi32>
    %539 = vector.shape_cast %531 : vector<8x1xi32> to vector<8x1xi32>
    %540 = vector.broadcast %539 : vector<8x1xi32> to vector<8x6xi32>
    %541 = arith.select %538, %540, %521 : vector<8x6xi1>, vector<8x6xi32>
    %542 = vector.broadcast %184 : vector<1x6xf32> to vector<8x6xf32>
    %543 = arith.addf %439, %542 : vector<8x6xf32>
    %cst_141 = arith.constant dense<0xFF800000> : vector<8xf32>
    %544 = vector.multi_reduction <maximumf>, %543, %cst_141 [1] : vector<8x6xf32> to vector<8xf32>
    %545 = vector.shape_cast %544 : vector<8xf32> to vector<8x1xf32>
    %546 = vector.broadcast %545 : vector<8x1xf32> to vector<8x6xf32>
    %547 = arith.cmpf oeq, %543, %546 : vector<8x6xf32>
    %c6_i32_142 = arith.constant 6 : i32
    %548 = vector.broadcast %c6_i32_142 : i32 to vector<8x6xi32>
    %549 = arith.select %547, %178, %548 : vector<8x6xi1>, vector<8x6xi32>
    %cst_143 = arith.constant dense<2147483647> : vector<8xi32>
    %550 = vector.multi_reduction <minsi>, %549, %cst_143 [1] : vector<8x6xi32> to vector<8xi32>
    %551 = vector.shape_cast %550 : vector<8xi32> to vector<8x1xi32>
    %c5_i32_144 = arith.constant 5 : i32
    %552 = vector.broadcast %c5_i32_144 : i32 to vector<8x6xi32>
    %553 = arith.cmpi eq, %178, %552 : vector<8x6xi32>
    %554 = vector.shape_cast %545 : vector<8x1xf32> to vector<8x1xf32>
    %555 = vector.broadcast %554 : vector<8x1xf32> to vector<8x6xf32>
    %556 = arith.select %553, %555, %536 : vector<8x6xi1>, vector<8x6xf32>
    %c5_i32_145 = arith.constant 5 : i32
    %557 = vector.broadcast %c5_i32_145 : i32 to vector<8x6xi32>
    %558 = arith.cmpi eq, %178, %557 : vector<8x6xi32>
    %559 = vector.shape_cast %551 : vector<8x1xi32> to vector<8x1xi32>
    %560 = vector.broadcast %559 : vector<8x1xi32> to vector<8x6xi32>
    %561 = arith.select %558, %560, %541 : vector<8x6xi1>, vector<8x6xi32>
    %562 = vector.extract_strided_slice %176 {offsets = [2, 0, 0], sizes = [1, 8, 6], strides = [1, 1, 1]} : vector<8x8x6xf32> to vector<1x8x6xf32>
    %563 = vector.shape_cast %562 : vector<1x8x6xf32> to vector<8x6xf32>
    %564 = arith.addf %556, %563 : vector<8x6xf32>
    %cst_146 = arith.constant 0.000000e+00 : f32
    %565 = vector.broadcast %cst_146 : f32 to vector<8x6xf32>
    %c0_i32_147 = arith.constant 0 : i32
    %566 = vector.broadcast %c0_i32_147 : i32 to vector<8x6xi32>
    %567 = vector.broadcast %179 : vector<1x6xf32> to vector<8x6xf32>
    %568 = arith.addf %564, %567 : vector<8x6xf32>
    %cst_148 = arith.constant dense<0xFF800000> : vector<8xf32>
    %569 = vector.multi_reduction <maximumf>, %568, %cst_148 [1] : vector<8x6xf32> to vector<8xf32>
    %570 = vector.shape_cast %569 : vector<8xf32> to vector<8x1xf32>
    %571 = vector.broadcast %570 : vector<8x1xf32> to vector<8x6xf32>
    %572 = arith.cmpf oeq, %568, %571 : vector<8x6xf32>
    %c6_i32_149 = arith.constant 6 : i32
    %573 = vector.broadcast %c6_i32_149 : i32 to vector<8x6xi32>
    %574 = arith.select %572, %178, %573 : vector<8x6xi1>, vector<8x6xi32>
    %cst_150 = arith.constant dense<2147483647> : vector<8xi32>
    %575 = vector.multi_reduction <minsi>, %574, %cst_150 [1] : vector<8x6xi32> to vector<8xi32>
    %576 = vector.shape_cast %575 : vector<8xi32> to vector<8x1xi32>
    %c0_i32_151 = arith.constant 0 : i32
    %577 = vector.broadcast %c0_i32_151 : i32 to vector<8x6xi32>
    %578 = arith.cmpi eq, %178, %577 : vector<8x6xi32>
    %579 = vector.shape_cast %570 : vector<8x1xf32> to vector<8x1xf32>
    %580 = vector.broadcast %579 : vector<8x1xf32> to vector<8x6xf32>
    %581 = arith.select %578, %580, %565 : vector<8x6xi1>, vector<8x6xf32>
    %c0_i32_152 = arith.constant 0 : i32
    %582 = vector.broadcast %c0_i32_152 : i32 to vector<8x6xi32>
    %583 = arith.cmpi eq, %178, %582 : vector<8x6xi32>
    %584 = vector.shape_cast %576 : vector<8x1xi32> to vector<8x1xi32>
    %585 = vector.broadcast %584 : vector<8x1xi32> to vector<8x6xi32>
    %586 = arith.select %583, %585, %566 : vector<8x6xi1>, vector<8x6xi32>
    %587 = vector.broadcast %180 : vector<1x6xf32> to vector<8x6xf32>
    %588 = arith.addf %564, %587 : vector<8x6xf32>
    %cst_153 = arith.constant dense<0xFF800000> : vector<8xf32>
    %589 = vector.multi_reduction <maximumf>, %588, %cst_153 [1] : vector<8x6xf32> to vector<8xf32>
    %590 = vector.shape_cast %589 : vector<8xf32> to vector<8x1xf32>
    %591 = vector.broadcast %590 : vector<8x1xf32> to vector<8x6xf32>
    %592 = arith.cmpf oeq, %588, %591 : vector<8x6xf32>
    %c6_i32_154 = arith.constant 6 : i32
    %593 = vector.broadcast %c6_i32_154 : i32 to vector<8x6xi32>
    %594 = arith.select %592, %178, %593 : vector<8x6xi1>, vector<8x6xi32>
    %cst_155 = arith.constant dense<2147483647> : vector<8xi32>
    %595 = vector.multi_reduction <minsi>, %594, %cst_155 [1] : vector<8x6xi32> to vector<8xi32>
    %596 = vector.shape_cast %595 : vector<8xi32> to vector<8x1xi32>
    %c1_i32_156 = arith.constant 1 : i32
    %597 = vector.broadcast %c1_i32_156 : i32 to vector<8x6xi32>
    %598 = arith.cmpi eq, %178, %597 : vector<8x6xi32>
    %599 = vector.shape_cast %590 : vector<8x1xf32> to vector<8x1xf32>
    %600 = vector.broadcast %599 : vector<8x1xf32> to vector<8x6xf32>
    %601 = arith.select %598, %600, %581 : vector<8x6xi1>, vector<8x6xf32>
    %c1_i32_157 = arith.constant 1 : i32
    %602 = vector.broadcast %c1_i32_157 : i32 to vector<8x6xi32>
    %603 = arith.cmpi eq, %178, %602 : vector<8x6xi32>
    %604 = vector.shape_cast %596 : vector<8x1xi32> to vector<8x1xi32>
    %605 = vector.broadcast %604 : vector<8x1xi32> to vector<8x6xi32>
    %606 = arith.select %603, %605, %586 : vector<8x6xi1>, vector<8x6xi32>
    %607 = vector.broadcast %181 : vector<1x6xf32> to vector<8x6xf32>
    %608 = arith.addf %564, %607 : vector<8x6xf32>
    %cst_158 = arith.constant dense<0xFF800000> : vector<8xf32>
    %609 = vector.multi_reduction <maximumf>, %608, %cst_158 [1] : vector<8x6xf32> to vector<8xf32>
    %610 = vector.shape_cast %609 : vector<8xf32> to vector<8x1xf32>
    %611 = vector.broadcast %610 : vector<8x1xf32> to vector<8x6xf32>
    %612 = arith.cmpf oeq, %608, %611 : vector<8x6xf32>
    %c6_i32_159 = arith.constant 6 : i32
    %613 = vector.broadcast %c6_i32_159 : i32 to vector<8x6xi32>
    %614 = arith.select %612, %178, %613 : vector<8x6xi1>, vector<8x6xi32>
    %cst_160 = arith.constant dense<2147483647> : vector<8xi32>
    %615 = vector.multi_reduction <minsi>, %614, %cst_160 [1] : vector<8x6xi32> to vector<8xi32>
    %616 = vector.shape_cast %615 : vector<8xi32> to vector<8x1xi32>
    %c2_i32_161 = arith.constant 2 : i32
    %617 = vector.broadcast %c2_i32_161 : i32 to vector<8x6xi32>
    %618 = arith.cmpi eq, %178, %617 : vector<8x6xi32>
    %619 = vector.shape_cast %610 : vector<8x1xf32> to vector<8x1xf32>
    %620 = vector.broadcast %619 : vector<8x1xf32> to vector<8x6xf32>
    %621 = arith.select %618, %620, %601 : vector<8x6xi1>, vector<8x6xf32>
    %c2_i32_162 = arith.constant 2 : i32
    %622 = vector.broadcast %c2_i32_162 : i32 to vector<8x6xi32>
    %623 = arith.cmpi eq, %178, %622 : vector<8x6xi32>
    %624 = vector.shape_cast %616 : vector<8x1xi32> to vector<8x1xi32>
    %625 = vector.broadcast %624 : vector<8x1xi32> to vector<8x6xi32>
    %626 = arith.select %623, %625, %606 : vector<8x6xi1>, vector<8x6xi32>
    %627 = vector.broadcast %182 : vector<1x6xf32> to vector<8x6xf32>
    %628 = arith.addf %564, %627 : vector<8x6xf32>
    %cst_163 = arith.constant dense<0xFF800000> : vector<8xf32>
    %629 = vector.multi_reduction <maximumf>, %628, %cst_163 [1] : vector<8x6xf32> to vector<8xf32>
    %630 = vector.shape_cast %629 : vector<8xf32> to vector<8x1xf32>
    %631 = vector.broadcast %630 : vector<8x1xf32> to vector<8x6xf32>
    %632 = arith.cmpf oeq, %628, %631 : vector<8x6xf32>
    %c6_i32_164 = arith.constant 6 : i32
    %633 = vector.broadcast %c6_i32_164 : i32 to vector<8x6xi32>
    %634 = arith.select %632, %178, %633 : vector<8x6xi1>, vector<8x6xi32>
    %cst_165 = arith.constant dense<2147483647> : vector<8xi32>
    %635 = vector.multi_reduction <minsi>, %634, %cst_165 [1] : vector<8x6xi32> to vector<8xi32>
    %636 = vector.shape_cast %635 : vector<8xi32> to vector<8x1xi32>
    %c3_i32_166 = arith.constant 3 : i32
    %637 = vector.broadcast %c3_i32_166 : i32 to vector<8x6xi32>
    %638 = arith.cmpi eq, %178, %637 : vector<8x6xi32>
    %639 = vector.shape_cast %630 : vector<8x1xf32> to vector<8x1xf32>
    %640 = vector.broadcast %639 : vector<8x1xf32> to vector<8x6xf32>
    %641 = arith.select %638, %640, %621 : vector<8x6xi1>, vector<8x6xf32>
    %c3_i32_167 = arith.constant 3 : i32
    %642 = vector.broadcast %c3_i32_167 : i32 to vector<8x6xi32>
    %643 = arith.cmpi eq, %178, %642 : vector<8x6xi32>
    %644 = vector.shape_cast %636 : vector<8x1xi32> to vector<8x1xi32>
    %645 = vector.broadcast %644 : vector<8x1xi32> to vector<8x6xi32>
    %646 = arith.select %643, %645, %626 : vector<8x6xi1>, vector<8x6xi32>
    %647 = vector.broadcast %183 : vector<1x6xf32> to vector<8x6xf32>
    %648 = arith.addf %564, %647 : vector<8x6xf32>
    %cst_168 = arith.constant dense<0xFF800000> : vector<8xf32>
    %649 = vector.multi_reduction <maximumf>, %648, %cst_168 [1] : vector<8x6xf32> to vector<8xf32>
    %650 = vector.shape_cast %649 : vector<8xf32> to vector<8x1xf32>
    %651 = vector.broadcast %650 : vector<8x1xf32> to vector<8x6xf32>
    %652 = arith.cmpf oeq, %648, %651 : vector<8x6xf32>
    %c6_i32_169 = arith.constant 6 : i32
    %653 = vector.broadcast %c6_i32_169 : i32 to vector<8x6xi32>
    %654 = arith.select %652, %178, %653 : vector<8x6xi1>, vector<8x6xi32>
    %cst_170 = arith.constant dense<2147483647> : vector<8xi32>
    %655 = vector.multi_reduction <minsi>, %654, %cst_170 [1] : vector<8x6xi32> to vector<8xi32>
    %656 = vector.shape_cast %655 : vector<8xi32> to vector<8x1xi32>
    %c4_i32_171 = arith.constant 4 : i32
    %657 = vector.broadcast %c4_i32_171 : i32 to vector<8x6xi32>
    %658 = arith.cmpi eq, %178, %657 : vector<8x6xi32>
    %659 = vector.shape_cast %650 : vector<8x1xf32> to vector<8x1xf32>
    %660 = vector.broadcast %659 : vector<8x1xf32> to vector<8x6xf32>
    %661 = arith.select %658, %660, %641 : vector<8x6xi1>, vector<8x6xf32>
    %c4_i32_172 = arith.constant 4 : i32
    %662 = vector.broadcast %c4_i32_172 : i32 to vector<8x6xi32>
    %663 = arith.cmpi eq, %178, %662 : vector<8x6xi32>
    %664 = vector.shape_cast %656 : vector<8x1xi32> to vector<8x1xi32>
    %665 = vector.broadcast %664 : vector<8x1xi32> to vector<8x6xi32>
    %666 = arith.select %663, %665, %646 : vector<8x6xi1>, vector<8x6xi32>
    %667 = vector.broadcast %184 : vector<1x6xf32> to vector<8x6xf32>
    %668 = arith.addf %564, %667 : vector<8x6xf32>
    %cst_173 = arith.constant dense<0xFF800000> : vector<8xf32>
    %669 = vector.multi_reduction <maximumf>, %668, %cst_173 [1] : vector<8x6xf32> to vector<8xf32>
    %670 = vector.shape_cast %669 : vector<8xf32> to vector<8x1xf32>
    %671 = vector.broadcast %670 : vector<8x1xf32> to vector<8x6xf32>
    %672 = arith.cmpf oeq, %668, %671 : vector<8x6xf32>
    %c6_i32_174 = arith.constant 6 : i32
    %673 = vector.broadcast %c6_i32_174 : i32 to vector<8x6xi32>
    %674 = arith.select %672, %178, %673 : vector<8x6xi1>, vector<8x6xi32>
    %cst_175 = arith.constant dense<2147483647> : vector<8xi32>
    %675 = vector.multi_reduction <minsi>, %674, %cst_175 [1] : vector<8x6xi32> to vector<8xi32>
    %676 = vector.shape_cast %675 : vector<8xi32> to vector<8x1xi32>
    %c5_i32_176 = arith.constant 5 : i32
    %677 = vector.broadcast %c5_i32_176 : i32 to vector<8x6xi32>
    %678 = arith.cmpi eq, %178, %677 : vector<8x6xi32>
    %679 = vector.shape_cast %670 : vector<8x1xf32> to vector<8x1xf32>
    %680 = vector.broadcast %679 : vector<8x1xf32> to vector<8x6xf32>
    %681 = arith.select %678, %680, %661 : vector<8x6xi1>, vector<8x6xf32>
    %c5_i32_177 = arith.constant 5 : i32
    %682 = vector.broadcast %c5_i32_177 : i32 to vector<8x6xi32>
    %683 = arith.cmpi eq, %178, %682 : vector<8x6xi32>
    %684 = vector.shape_cast %676 : vector<8x1xi32> to vector<8x1xi32>
    %685 = vector.broadcast %684 : vector<8x1xi32> to vector<8x6xi32>
    %686 = arith.select %683, %685, %666 : vector<8x6xi1>, vector<8x6xi32>
    %687 = vector.extract_strided_slice %176 {offsets = [3, 0, 0], sizes = [1, 8, 6], strides = [1, 1, 1]} : vector<8x8x6xf32> to vector<1x8x6xf32>
    %688 = vector.shape_cast %687 : vector<1x8x6xf32> to vector<8x6xf32>
    %689 = arith.addf %681, %688 : vector<8x6xf32>
    %cst_178 = arith.constant 0.000000e+00 : f32
    %690 = vector.broadcast %cst_178 : f32 to vector<8x6xf32>
    %c0_i32_179 = arith.constant 0 : i32
    %691 = vector.broadcast %c0_i32_179 : i32 to vector<8x6xi32>
    %692 = vector.broadcast %179 : vector<1x6xf32> to vector<8x6xf32>
    %693 = arith.addf %689, %692 : vector<8x6xf32>
    %cst_180 = arith.constant dense<0xFF800000> : vector<8xf32>
    %694 = vector.multi_reduction <maximumf>, %693, %cst_180 [1] : vector<8x6xf32> to vector<8xf32>
    %695 = vector.shape_cast %694 : vector<8xf32> to vector<8x1xf32>
    %696 = vector.broadcast %695 : vector<8x1xf32> to vector<8x6xf32>
    %697 = arith.cmpf oeq, %693, %696 : vector<8x6xf32>
    %c6_i32_181 = arith.constant 6 : i32
    %698 = vector.broadcast %c6_i32_181 : i32 to vector<8x6xi32>
    %699 = arith.select %697, %178, %698 : vector<8x6xi1>, vector<8x6xi32>
    %cst_182 = arith.constant dense<2147483647> : vector<8xi32>
    %700 = vector.multi_reduction <minsi>, %699, %cst_182 [1] : vector<8x6xi32> to vector<8xi32>
    %701 = vector.shape_cast %700 : vector<8xi32> to vector<8x1xi32>
    %c0_i32_183 = arith.constant 0 : i32
    %702 = vector.broadcast %c0_i32_183 : i32 to vector<8x6xi32>
    %703 = arith.cmpi eq, %178, %702 : vector<8x6xi32>
    %704 = vector.shape_cast %695 : vector<8x1xf32> to vector<8x1xf32>
    %705 = vector.broadcast %704 : vector<8x1xf32> to vector<8x6xf32>
    %706 = arith.select %703, %705, %690 : vector<8x6xi1>, vector<8x6xf32>
    %c0_i32_184 = arith.constant 0 : i32
    %707 = vector.broadcast %c0_i32_184 : i32 to vector<8x6xi32>
    %708 = arith.cmpi eq, %178, %707 : vector<8x6xi32>
    %709 = vector.shape_cast %701 : vector<8x1xi32> to vector<8x1xi32>
    %710 = vector.broadcast %709 : vector<8x1xi32> to vector<8x6xi32>
    %711 = arith.select %708, %710, %691 : vector<8x6xi1>, vector<8x6xi32>
    %712 = vector.broadcast %180 : vector<1x6xf32> to vector<8x6xf32>
    %713 = arith.addf %689, %712 : vector<8x6xf32>
    %cst_185 = arith.constant dense<0xFF800000> : vector<8xf32>
    %714 = vector.multi_reduction <maximumf>, %713, %cst_185 [1] : vector<8x6xf32> to vector<8xf32>
    %715 = vector.shape_cast %714 : vector<8xf32> to vector<8x1xf32>
    %716 = vector.broadcast %715 : vector<8x1xf32> to vector<8x6xf32>
    %717 = arith.cmpf oeq, %713, %716 : vector<8x6xf32>
    %c6_i32_186 = arith.constant 6 : i32
    %718 = vector.broadcast %c6_i32_186 : i32 to vector<8x6xi32>
    %719 = arith.select %717, %178, %718 : vector<8x6xi1>, vector<8x6xi32>
    %cst_187 = arith.constant dense<2147483647> : vector<8xi32>
    %720 = vector.multi_reduction <minsi>, %719, %cst_187 [1] : vector<8x6xi32> to vector<8xi32>
    %721 = vector.shape_cast %720 : vector<8xi32> to vector<8x1xi32>
    %c1_i32_188 = arith.constant 1 : i32
    %722 = vector.broadcast %c1_i32_188 : i32 to vector<8x6xi32>
    %723 = arith.cmpi eq, %178, %722 : vector<8x6xi32>
    %724 = vector.shape_cast %715 : vector<8x1xf32> to vector<8x1xf32>
    %725 = vector.broadcast %724 : vector<8x1xf32> to vector<8x6xf32>
    %726 = arith.select %723, %725, %706 : vector<8x6xi1>, vector<8x6xf32>
    %c1_i32_189 = arith.constant 1 : i32
    %727 = vector.broadcast %c1_i32_189 : i32 to vector<8x6xi32>
    %728 = arith.cmpi eq, %178, %727 : vector<8x6xi32>
    %729 = vector.shape_cast %721 : vector<8x1xi32> to vector<8x1xi32>
    %730 = vector.broadcast %729 : vector<8x1xi32> to vector<8x6xi32>
    %731 = arith.select %728, %730, %711 : vector<8x6xi1>, vector<8x6xi32>
    %732 = vector.broadcast %181 : vector<1x6xf32> to vector<8x6xf32>
    %733 = arith.addf %689, %732 : vector<8x6xf32>
    %cst_190 = arith.constant dense<0xFF800000> : vector<8xf32>
    %734 = vector.multi_reduction <maximumf>, %733, %cst_190 [1] : vector<8x6xf32> to vector<8xf32>
    %735 = vector.shape_cast %734 : vector<8xf32> to vector<8x1xf32>
    %736 = vector.broadcast %735 : vector<8x1xf32> to vector<8x6xf32>
    %737 = arith.cmpf oeq, %733, %736 : vector<8x6xf32>
    %c6_i32_191 = arith.constant 6 : i32
    %738 = vector.broadcast %c6_i32_191 : i32 to vector<8x6xi32>
    %739 = arith.select %737, %178, %738 : vector<8x6xi1>, vector<8x6xi32>
    %cst_192 = arith.constant dense<2147483647> : vector<8xi32>
    %740 = vector.multi_reduction <minsi>, %739, %cst_192 [1] : vector<8x6xi32> to vector<8xi32>
    %741 = vector.shape_cast %740 : vector<8xi32> to vector<8x1xi32>
    %c2_i32_193 = arith.constant 2 : i32
    %742 = vector.broadcast %c2_i32_193 : i32 to vector<8x6xi32>
    %743 = arith.cmpi eq, %178, %742 : vector<8x6xi32>
    %744 = vector.shape_cast %735 : vector<8x1xf32> to vector<8x1xf32>
    %745 = vector.broadcast %744 : vector<8x1xf32> to vector<8x6xf32>
    %746 = arith.select %743, %745, %726 : vector<8x6xi1>, vector<8x6xf32>
    %c2_i32_194 = arith.constant 2 : i32
    %747 = vector.broadcast %c2_i32_194 : i32 to vector<8x6xi32>
    %748 = arith.cmpi eq, %178, %747 : vector<8x6xi32>
    %749 = vector.shape_cast %741 : vector<8x1xi32> to vector<8x1xi32>
    %750 = vector.broadcast %749 : vector<8x1xi32> to vector<8x6xi32>
    %751 = arith.select %748, %750, %731 : vector<8x6xi1>, vector<8x6xi32>
    %752 = vector.broadcast %182 : vector<1x6xf32> to vector<8x6xf32>
    %753 = arith.addf %689, %752 : vector<8x6xf32>
    %cst_195 = arith.constant dense<0xFF800000> : vector<8xf32>
    %754 = vector.multi_reduction <maximumf>, %753, %cst_195 [1] : vector<8x6xf32> to vector<8xf32>
    %755 = vector.shape_cast %754 : vector<8xf32> to vector<8x1xf32>
    %756 = vector.broadcast %755 : vector<8x1xf32> to vector<8x6xf32>
    %757 = arith.cmpf oeq, %753, %756 : vector<8x6xf32>
    %c6_i32_196 = arith.constant 6 : i32
    %758 = vector.broadcast %c6_i32_196 : i32 to vector<8x6xi32>
    %759 = arith.select %757, %178, %758 : vector<8x6xi1>, vector<8x6xi32>
    %cst_197 = arith.constant dense<2147483647> : vector<8xi32>
    %760 = vector.multi_reduction <minsi>, %759, %cst_197 [1] : vector<8x6xi32> to vector<8xi32>
    %761 = vector.shape_cast %760 : vector<8xi32> to vector<8x1xi32>
    %c3_i32_198 = arith.constant 3 : i32
    %762 = vector.broadcast %c3_i32_198 : i32 to vector<8x6xi32>
    %763 = arith.cmpi eq, %178, %762 : vector<8x6xi32>
    %764 = vector.shape_cast %755 : vector<8x1xf32> to vector<8x1xf32>
    %765 = vector.broadcast %764 : vector<8x1xf32> to vector<8x6xf32>
    %766 = arith.select %763, %765, %746 : vector<8x6xi1>, vector<8x6xf32>
    %c3_i32_199 = arith.constant 3 : i32
    %767 = vector.broadcast %c3_i32_199 : i32 to vector<8x6xi32>
    %768 = arith.cmpi eq, %178, %767 : vector<8x6xi32>
    %769 = vector.shape_cast %761 : vector<8x1xi32> to vector<8x1xi32>
    %770 = vector.broadcast %769 : vector<8x1xi32> to vector<8x6xi32>
    %771 = arith.select %768, %770, %751 : vector<8x6xi1>, vector<8x6xi32>
    %772 = vector.broadcast %183 : vector<1x6xf32> to vector<8x6xf32>
    %773 = arith.addf %689, %772 : vector<8x6xf32>
    %cst_200 = arith.constant dense<0xFF800000> : vector<8xf32>
    %774 = vector.multi_reduction <maximumf>, %773, %cst_200 [1] : vector<8x6xf32> to vector<8xf32>
    %775 = vector.shape_cast %774 : vector<8xf32> to vector<8x1xf32>
    %776 = vector.broadcast %775 : vector<8x1xf32> to vector<8x6xf32>
    %777 = arith.cmpf oeq, %773, %776 : vector<8x6xf32>
    %c6_i32_201 = arith.constant 6 : i32
    %778 = vector.broadcast %c6_i32_201 : i32 to vector<8x6xi32>
    %779 = arith.select %777, %178, %778 : vector<8x6xi1>, vector<8x6xi32>
    %cst_202 = arith.constant dense<2147483647> : vector<8xi32>
    %780 = vector.multi_reduction <minsi>, %779, %cst_202 [1] : vector<8x6xi32> to vector<8xi32>
    %781 = vector.shape_cast %780 : vector<8xi32> to vector<8x1xi32>
    %c4_i32_203 = arith.constant 4 : i32
    %782 = vector.broadcast %c4_i32_203 : i32 to vector<8x6xi32>
    %783 = arith.cmpi eq, %178, %782 : vector<8x6xi32>
    %784 = vector.shape_cast %775 : vector<8x1xf32> to vector<8x1xf32>
    %785 = vector.broadcast %784 : vector<8x1xf32> to vector<8x6xf32>
    %786 = arith.select %783, %785, %766 : vector<8x6xi1>, vector<8x6xf32>
    %c4_i32_204 = arith.constant 4 : i32
    %787 = vector.broadcast %c4_i32_204 : i32 to vector<8x6xi32>
    %788 = arith.cmpi eq, %178, %787 : vector<8x6xi32>
    %789 = vector.shape_cast %781 : vector<8x1xi32> to vector<8x1xi32>
    %790 = vector.broadcast %789 : vector<8x1xi32> to vector<8x6xi32>
    %791 = arith.select %788, %790, %771 : vector<8x6xi1>, vector<8x6xi32>
    %792 = vector.broadcast %184 : vector<1x6xf32> to vector<8x6xf32>
    %793 = arith.addf %689, %792 : vector<8x6xf32>
    %cst_205 = arith.constant dense<0xFF800000> : vector<8xf32>
    %794 = vector.multi_reduction <maximumf>, %793, %cst_205 [1] : vector<8x6xf32> to vector<8xf32>
    %795 = vector.shape_cast %794 : vector<8xf32> to vector<8x1xf32>
    %796 = vector.broadcast %795 : vector<8x1xf32> to vector<8x6xf32>
    %797 = arith.cmpf oeq, %793, %796 : vector<8x6xf32>
    %c6_i32_206 = arith.constant 6 : i32
    %798 = vector.broadcast %c6_i32_206 : i32 to vector<8x6xi32>
    %799 = arith.select %797, %178, %798 : vector<8x6xi1>, vector<8x6xi32>
    %cst_207 = arith.constant dense<2147483647> : vector<8xi32>
    %800 = vector.multi_reduction <minsi>, %799, %cst_207 [1] : vector<8x6xi32> to vector<8xi32>
    %801 = vector.shape_cast %800 : vector<8xi32> to vector<8x1xi32>
    %c5_i32_208 = arith.constant 5 : i32
    %802 = vector.broadcast %c5_i32_208 : i32 to vector<8x6xi32>
    %803 = arith.cmpi eq, %178, %802 : vector<8x6xi32>
    %804 = vector.shape_cast %795 : vector<8x1xf32> to vector<8x1xf32>
    %805 = vector.broadcast %804 : vector<8x1xf32> to vector<8x6xf32>
    %806 = arith.select %803, %805, %786 : vector<8x6xi1>, vector<8x6xf32>
    %c5_i32_209 = arith.constant 5 : i32
    %807 = vector.broadcast %c5_i32_209 : i32 to vector<8x6xi32>
    %808 = arith.cmpi eq, %178, %807 : vector<8x6xi32>
    %809 = vector.shape_cast %801 : vector<8x1xi32> to vector<8x1xi32>
    %810 = vector.broadcast %809 : vector<8x1xi32> to vector<8x6xi32>
    %811 = arith.select %808, %810, %791 : vector<8x6xi1>, vector<8x6xi32>
    %812 = vector.extract_strided_slice %176 {offsets = [4, 0, 0], sizes = [1, 8, 6], strides = [1, 1, 1]} : vector<8x8x6xf32> to vector<1x8x6xf32>
    %813 = vector.shape_cast %812 : vector<1x8x6xf32> to vector<8x6xf32>
    %814 = arith.addf %806, %813 : vector<8x6xf32>
    %cst_210 = arith.constant 0.000000e+00 : f32
    %815 = vector.broadcast %cst_210 : f32 to vector<8x6xf32>
    %c0_i32_211 = arith.constant 0 : i32
    %816 = vector.broadcast %c0_i32_211 : i32 to vector<8x6xi32>
    %817 = vector.broadcast %179 : vector<1x6xf32> to vector<8x6xf32>
    %818 = arith.addf %814, %817 : vector<8x6xf32>
    %cst_212 = arith.constant dense<0xFF800000> : vector<8xf32>
    %819 = vector.multi_reduction <maximumf>, %818, %cst_212 [1] : vector<8x6xf32> to vector<8xf32>
    %820 = vector.shape_cast %819 : vector<8xf32> to vector<8x1xf32>
    %821 = vector.broadcast %820 : vector<8x1xf32> to vector<8x6xf32>
    %822 = arith.cmpf oeq, %818, %821 : vector<8x6xf32>
    %c6_i32_213 = arith.constant 6 : i32
    %823 = vector.broadcast %c6_i32_213 : i32 to vector<8x6xi32>
    %824 = arith.select %822, %178, %823 : vector<8x6xi1>, vector<8x6xi32>
    %cst_214 = arith.constant dense<2147483647> : vector<8xi32>
    %825 = vector.multi_reduction <minsi>, %824, %cst_214 [1] : vector<8x6xi32> to vector<8xi32>
    %826 = vector.shape_cast %825 : vector<8xi32> to vector<8x1xi32>
    %c0_i32_215 = arith.constant 0 : i32
    %827 = vector.broadcast %c0_i32_215 : i32 to vector<8x6xi32>
    %828 = arith.cmpi eq, %178, %827 : vector<8x6xi32>
    %829 = vector.shape_cast %820 : vector<8x1xf32> to vector<8x1xf32>
    %830 = vector.broadcast %829 : vector<8x1xf32> to vector<8x6xf32>
    %831 = arith.select %828, %830, %815 : vector<8x6xi1>, vector<8x6xf32>
    %c0_i32_216 = arith.constant 0 : i32
    %832 = vector.broadcast %c0_i32_216 : i32 to vector<8x6xi32>
    %833 = arith.cmpi eq, %178, %832 : vector<8x6xi32>
    %834 = vector.shape_cast %826 : vector<8x1xi32> to vector<8x1xi32>
    %835 = vector.broadcast %834 : vector<8x1xi32> to vector<8x6xi32>
    %836 = arith.select %833, %835, %816 : vector<8x6xi1>, vector<8x6xi32>
    %837 = vector.broadcast %180 : vector<1x6xf32> to vector<8x6xf32>
    %838 = arith.addf %814, %837 : vector<8x6xf32>
    %cst_217 = arith.constant dense<0xFF800000> : vector<8xf32>
    %839 = vector.multi_reduction <maximumf>, %838, %cst_217 [1] : vector<8x6xf32> to vector<8xf32>
    %840 = vector.shape_cast %839 : vector<8xf32> to vector<8x1xf32>
    %841 = vector.broadcast %840 : vector<8x1xf32> to vector<8x6xf32>
    %842 = arith.cmpf oeq, %838, %841 : vector<8x6xf32>
    %c6_i32_218 = arith.constant 6 : i32
    %843 = vector.broadcast %c6_i32_218 : i32 to vector<8x6xi32>
    %844 = arith.select %842, %178, %843 : vector<8x6xi1>, vector<8x6xi32>
    %cst_219 = arith.constant dense<2147483647> : vector<8xi32>
    %845 = vector.multi_reduction <minsi>, %844, %cst_219 [1] : vector<8x6xi32> to vector<8xi32>
    %846 = vector.shape_cast %845 : vector<8xi32> to vector<8x1xi32>
    %c1_i32_220 = arith.constant 1 : i32
    %847 = vector.broadcast %c1_i32_220 : i32 to vector<8x6xi32>
    %848 = arith.cmpi eq, %178, %847 : vector<8x6xi32>
    %849 = vector.shape_cast %840 : vector<8x1xf32> to vector<8x1xf32>
    %850 = vector.broadcast %849 : vector<8x1xf32> to vector<8x6xf32>
    %851 = arith.select %848, %850, %831 : vector<8x6xi1>, vector<8x6xf32>
    %c1_i32_221 = arith.constant 1 : i32
    %852 = vector.broadcast %c1_i32_221 : i32 to vector<8x6xi32>
    %853 = arith.cmpi eq, %178, %852 : vector<8x6xi32>
    %854 = vector.shape_cast %846 : vector<8x1xi32> to vector<8x1xi32>
    %855 = vector.broadcast %854 : vector<8x1xi32> to vector<8x6xi32>
    %856 = arith.select %853, %855, %836 : vector<8x6xi1>, vector<8x6xi32>
    %857 = vector.broadcast %181 : vector<1x6xf32> to vector<8x6xf32>
    %858 = arith.addf %814, %857 : vector<8x6xf32>
    %cst_222 = arith.constant dense<0xFF800000> : vector<8xf32>
    %859 = vector.multi_reduction <maximumf>, %858, %cst_222 [1] : vector<8x6xf32> to vector<8xf32>
    %860 = vector.shape_cast %859 : vector<8xf32> to vector<8x1xf32>
    %861 = vector.broadcast %860 : vector<8x1xf32> to vector<8x6xf32>
    %862 = arith.cmpf oeq, %858, %861 : vector<8x6xf32>
    %c6_i32_223 = arith.constant 6 : i32
    %863 = vector.broadcast %c6_i32_223 : i32 to vector<8x6xi32>
    %864 = arith.select %862, %178, %863 : vector<8x6xi1>, vector<8x6xi32>
    %cst_224 = arith.constant dense<2147483647> : vector<8xi32>
    %865 = vector.multi_reduction <minsi>, %864, %cst_224 [1] : vector<8x6xi32> to vector<8xi32>
    %866 = vector.shape_cast %865 : vector<8xi32> to vector<8x1xi32>
    %c2_i32_225 = arith.constant 2 : i32
    %867 = vector.broadcast %c2_i32_225 : i32 to vector<8x6xi32>
    %868 = arith.cmpi eq, %178, %867 : vector<8x6xi32>
    %869 = vector.shape_cast %860 : vector<8x1xf32> to vector<8x1xf32>
    %870 = vector.broadcast %869 : vector<8x1xf32> to vector<8x6xf32>
    %871 = arith.select %868, %870, %851 : vector<8x6xi1>, vector<8x6xf32>
    %c2_i32_226 = arith.constant 2 : i32
    %872 = vector.broadcast %c2_i32_226 : i32 to vector<8x6xi32>
    %873 = arith.cmpi eq, %178, %872 : vector<8x6xi32>
    %874 = vector.shape_cast %866 : vector<8x1xi32> to vector<8x1xi32>
    %875 = vector.broadcast %874 : vector<8x1xi32> to vector<8x6xi32>
    %876 = arith.select %873, %875, %856 : vector<8x6xi1>, vector<8x6xi32>
    %877 = vector.broadcast %182 : vector<1x6xf32> to vector<8x6xf32>
    %878 = arith.addf %814, %877 : vector<8x6xf32>
    %cst_227 = arith.constant dense<0xFF800000> : vector<8xf32>
    %879 = vector.multi_reduction <maximumf>, %878, %cst_227 [1] : vector<8x6xf32> to vector<8xf32>
    %880 = vector.shape_cast %879 : vector<8xf32> to vector<8x1xf32>
    %881 = vector.broadcast %880 : vector<8x1xf32> to vector<8x6xf32>
    %882 = arith.cmpf oeq, %878, %881 : vector<8x6xf32>
    %c6_i32_228 = arith.constant 6 : i32
    %883 = vector.broadcast %c6_i32_228 : i32 to vector<8x6xi32>
    %884 = arith.select %882, %178, %883 : vector<8x6xi1>, vector<8x6xi32>
    %cst_229 = arith.constant dense<2147483647> : vector<8xi32>
    %885 = vector.multi_reduction <minsi>, %884, %cst_229 [1] : vector<8x6xi32> to vector<8xi32>
    %886 = vector.shape_cast %885 : vector<8xi32> to vector<8x1xi32>
    %c3_i32_230 = arith.constant 3 : i32
    %887 = vector.broadcast %c3_i32_230 : i32 to vector<8x6xi32>
    %888 = arith.cmpi eq, %178, %887 : vector<8x6xi32>
    %889 = vector.shape_cast %880 : vector<8x1xf32> to vector<8x1xf32>
    %890 = vector.broadcast %889 : vector<8x1xf32> to vector<8x6xf32>
    %891 = arith.select %888, %890, %871 : vector<8x6xi1>, vector<8x6xf32>
    %c3_i32_231 = arith.constant 3 : i32
    %892 = vector.broadcast %c3_i32_231 : i32 to vector<8x6xi32>
    %893 = arith.cmpi eq, %178, %892 : vector<8x6xi32>
    %894 = vector.shape_cast %886 : vector<8x1xi32> to vector<8x1xi32>
    %895 = vector.broadcast %894 : vector<8x1xi32> to vector<8x6xi32>
    %896 = arith.select %893, %895, %876 : vector<8x6xi1>, vector<8x6xi32>
    %897 = vector.broadcast %183 : vector<1x6xf32> to vector<8x6xf32>
    %898 = arith.addf %814, %897 : vector<8x6xf32>
    %cst_232 = arith.constant dense<0xFF800000> : vector<8xf32>
    %899 = vector.multi_reduction <maximumf>, %898, %cst_232 [1] : vector<8x6xf32> to vector<8xf32>
    %900 = vector.shape_cast %899 : vector<8xf32> to vector<8x1xf32>
    %901 = vector.broadcast %900 : vector<8x1xf32> to vector<8x6xf32>
    %902 = arith.cmpf oeq, %898, %901 : vector<8x6xf32>
    %c6_i32_233 = arith.constant 6 : i32
    %903 = vector.broadcast %c6_i32_233 : i32 to vector<8x6xi32>
    %904 = arith.select %902, %178, %903 : vector<8x6xi1>, vector<8x6xi32>
    %cst_234 = arith.constant dense<2147483647> : vector<8xi32>
    %905 = vector.multi_reduction <minsi>, %904, %cst_234 [1] : vector<8x6xi32> to vector<8xi32>
    %906 = vector.shape_cast %905 : vector<8xi32> to vector<8x1xi32>
    %c4_i32_235 = arith.constant 4 : i32
    %907 = vector.broadcast %c4_i32_235 : i32 to vector<8x6xi32>
    %908 = arith.cmpi eq, %178, %907 : vector<8x6xi32>
    %909 = vector.shape_cast %900 : vector<8x1xf32> to vector<8x1xf32>
    %910 = vector.broadcast %909 : vector<8x1xf32> to vector<8x6xf32>
    %911 = arith.select %908, %910, %891 : vector<8x6xi1>, vector<8x6xf32>
    %c4_i32_236 = arith.constant 4 : i32
    %912 = vector.broadcast %c4_i32_236 : i32 to vector<8x6xi32>
    %913 = arith.cmpi eq, %178, %912 : vector<8x6xi32>
    %914 = vector.shape_cast %906 : vector<8x1xi32> to vector<8x1xi32>
    %915 = vector.broadcast %914 : vector<8x1xi32> to vector<8x6xi32>
    %916 = arith.select %913, %915, %896 : vector<8x6xi1>, vector<8x6xi32>
    %917 = vector.broadcast %184 : vector<1x6xf32> to vector<8x6xf32>
    %918 = arith.addf %814, %917 : vector<8x6xf32>
    %cst_237 = arith.constant dense<0xFF800000> : vector<8xf32>
    %919 = vector.multi_reduction <maximumf>, %918, %cst_237 [1] : vector<8x6xf32> to vector<8xf32>
    %920 = vector.shape_cast %919 : vector<8xf32> to vector<8x1xf32>
    %921 = vector.broadcast %920 : vector<8x1xf32> to vector<8x6xf32>
    %922 = arith.cmpf oeq, %918, %921 : vector<8x6xf32>
    %c6_i32_238 = arith.constant 6 : i32
    %923 = vector.broadcast %c6_i32_238 : i32 to vector<8x6xi32>
    %924 = arith.select %922, %178, %923 : vector<8x6xi1>, vector<8x6xi32>
    %cst_239 = arith.constant dense<2147483647> : vector<8xi32>
    %925 = vector.multi_reduction <minsi>, %924, %cst_239 [1] : vector<8x6xi32> to vector<8xi32>
    %926 = vector.shape_cast %925 : vector<8xi32> to vector<8x1xi32>
    %c5_i32_240 = arith.constant 5 : i32
    %927 = vector.broadcast %c5_i32_240 : i32 to vector<8x6xi32>
    %928 = arith.cmpi eq, %178, %927 : vector<8x6xi32>
    %929 = vector.shape_cast %920 : vector<8x1xf32> to vector<8x1xf32>
    %930 = vector.broadcast %929 : vector<8x1xf32> to vector<8x6xf32>
    %931 = arith.select %928, %930, %911 : vector<8x6xi1>, vector<8x6xf32>
    %c5_i32_241 = arith.constant 5 : i32
    %932 = vector.broadcast %c5_i32_241 : i32 to vector<8x6xi32>
    %933 = arith.cmpi eq, %178, %932 : vector<8x6xi32>
    %934 = vector.shape_cast %926 : vector<8x1xi32> to vector<8x1xi32>
    %935 = vector.broadcast %934 : vector<8x1xi32> to vector<8x6xi32>
    %936 = arith.select %933, %935, %916 : vector<8x6xi1>, vector<8x6xi32>
    %937 = vector.extract_strided_slice %176 {offsets = [5, 0, 0], sizes = [1, 8, 6], strides = [1, 1, 1]} : vector<8x8x6xf32> to vector<1x8x6xf32>
    %938 = vector.shape_cast %937 : vector<1x8x6xf32> to vector<8x6xf32>
    %939 = arith.addf %931, %938 : vector<8x6xf32>
    %cst_242 = arith.constant 0.000000e+00 : f32
    %940 = vector.broadcast %cst_242 : f32 to vector<8x6xf32>
    %c0_i32_243 = arith.constant 0 : i32
    %941 = vector.broadcast %c0_i32_243 : i32 to vector<8x6xi32>
    %942 = vector.broadcast %179 : vector<1x6xf32> to vector<8x6xf32>
    %943 = arith.addf %939, %942 : vector<8x6xf32>
    %cst_244 = arith.constant dense<0xFF800000> : vector<8xf32>
    %944 = vector.multi_reduction <maximumf>, %943, %cst_244 [1] : vector<8x6xf32> to vector<8xf32>
    %945 = vector.shape_cast %944 : vector<8xf32> to vector<8x1xf32>
    %946 = vector.broadcast %945 : vector<8x1xf32> to vector<8x6xf32>
    %947 = arith.cmpf oeq, %943, %946 : vector<8x6xf32>
    %c6_i32_245 = arith.constant 6 : i32
    %948 = vector.broadcast %c6_i32_245 : i32 to vector<8x6xi32>
    %949 = arith.select %947, %178, %948 : vector<8x6xi1>, vector<8x6xi32>
    %cst_246 = arith.constant dense<2147483647> : vector<8xi32>
    %950 = vector.multi_reduction <minsi>, %949, %cst_246 [1] : vector<8x6xi32> to vector<8xi32>
    %951 = vector.shape_cast %950 : vector<8xi32> to vector<8x1xi32>
    %c0_i32_247 = arith.constant 0 : i32
    %952 = vector.broadcast %c0_i32_247 : i32 to vector<8x6xi32>
    %953 = arith.cmpi eq, %178, %952 : vector<8x6xi32>
    %954 = vector.shape_cast %945 : vector<8x1xf32> to vector<8x1xf32>
    %955 = vector.broadcast %954 : vector<8x1xf32> to vector<8x6xf32>
    %956 = arith.select %953, %955, %940 : vector<8x6xi1>, vector<8x6xf32>
    %c0_i32_248 = arith.constant 0 : i32
    %957 = vector.broadcast %c0_i32_248 : i32 to vector<8x6xi32>
    %958 = arith.cmpi eq, %178, %957 : vector<8x6xi32>
    %959 = vector.shape_cast %951 : vector<8x1xi32> to vector<8x1xi32>
    %960 = vector.broadcast %959 : vector<8x1xi32> to vector<8x6xi32>
    %961 = arith.select %958, %960, %941 : vector<8x6xi1>, vector<8x6xi32>
    %962 = vector.broadcast %180 : vector<1x6xf32> to vector<8x6xf32>
    %963 = arith.addf %939, %962 : vector<8x6xf32>
    %cst_249 = arith.constant dense<0xFF800000> : vector<8xf32>
    %964 = vector.multi_reduction <maximumf>, %963, %cst_249 [1] : vector<8x6xf32> to vector<8xf32>
    %965 = vector.shape_cast %964 : vector<8xf32> to vector<8x1xf32>
    %966 = vector.broadcast %965 : vector<8x1xf32> to vector<8x6xf32>
    %967 = arith.cmpf oeq, %963, %966 : vector<8x6xf32>
    %c6_i32_250 = arith.constant 6 : i32
    %968 = vector.broadcast %c6_i32_250 : i32 to vector<8x6xi32>
    %969 = arith.select %967, %178, %968 : vector<8x6xi1>, vector<8x6xi32>
    %cst_251 = arith.constant dense<2147483647> : vector<8xi32>
    %970 = vector.multi_reduction <minsi>, %969, %cst_251 [1] : vector<8x6xi32> to vector<8xi32>
    %971 = vector.shape_cast %970 : vector<8xi32> to vector<8x1xi32>
    %c1_i32_252 = arith.constant 1 : i32
    %972 = vector.broadcast %c1_i32_252 : i32 to vector<8x6xi32>
    %973 = arith.cmpi eq, %178, %972 : vector<8x6xi32>
    %974 = vector.shape_cast %965 : vector<8x1xf32> to vector<8x1xf32>
    %975 = vector.broadcast %974 : vector<8x1xf32> to vector<8x6xf32>
    %976 = arith.select %973, %975, %956 : vector<8x6xi1>, vector<8x6xf32>
    %c1_i32_253 = arith.constant 1 : i32
    %977 = vector.broadcast %c1_i32_253 : i32 to vector<8x6xi32>
    %978 = arith.cmpi eq, %178, %977 : vector<8x6xi32>
    %979 = vector.shape_cast %971 : vector<8x1xi32> to vector<8x1xi32>
    %980 = vector.broadcast %979 : vector<8x1xi32> to vector<8x6xi32>
    %981 = arith.select %978, %980, %961 : vector<8x6xi1>, vector<8x6xi32>
    %982 = vector.broadcast %181 : vector<1x6xf32> to vector<8x6xf32>
    %983 = arith.addf %939, %982 : vector<8x6xf32>
    %cst_254 = arith.constant dense<0xFF800000> : vector<8xf32>
    %984 = vector.multi_reduction <maximumf>, %983, %cst_254 [1] : vector<8x6xf32> to vector<8xf32>
    %985 = vector.shape_cast %984 : vector<8xf32> to vector<8x1xf32>
    %986 = vector.broadcast %985 : vector<8x1xf32> to vector<8x6xf32>
    %987 = arith.cmpf oeq, %983, %986 : vector<8x6xf32>
    %c6_i32_255 = arith.constant 6 : i32
    %988 = vector.broadcast %c6_i32_255 : i32 to vector<8x6xi32>
    %989 = arith.select %987, %178, %988 : vector<8x6xi1>, vector<8x6xi32>
    %cst_256 = arith.constant dense<2147483647> : vector<8xi32>
    %990 = vector.multi_reduction <minsi>, %989, %cst_256 [1] : vector<8x6xi32> to vector<8xi32>
    %991 = vector.shape_cast %990 : vector<8xi32> to vector<8x1xi32>
    %c2_i32_257 = arith.constant 2 : i32
    %992 = vector.broadcast %c2_i32_257 : i32 to vector<8x6xi32>
    %993 = arith.cmpi eq, %178, %992 : vector<8x6xi32>
    %994 = vector.shape_cast %985 : vector<8x1xf32> to vector<8x1xf32>
    %995 = vector.broadcast %994 : vector<8x1xf32> to vector<8x6xf32>
    %996 = arith.select %993, %995, %976 : vector<8x6xi1>, vector<8x6xf32>
    %c2_i32_258 = arith.constant 2 : i32
    %997 = vector.broadcast %c2_i32_258 : i32 to vector<8x6xi32>
    %998 = arith.cmpi eq, %178, %997 : vector<8x6xi32>
    %999 = vector.shape_cast %991 : vector<8x1xi32> to vector<8x1xi32>
    %1000 = vector.broadcast %999 : vector<8x1xi32> to vector<8x6xi32>
    %1001 = arith.select %998, %1000, %981 : vector<8x6xi1>, vector<8x6xi32>
    %1002 = vector.broadcast %182 : vector<1x6xf32> to vector<8x6xf32>
    %1003 = arith.addf %939, %1002 : vector<8x6xf32>
    %cst_259 = arith.constant dense<0xFF800000> : vector<8xf32>
    %1004 = vector.multi_reduction <maximumf>, %1003, %cst_259 [1] : vector<8x6xf32> to vector<8xf32>
    %1005 = vector.shape_cast %1004 : vector<8xf32> to vector<8x1xf32>
    %1006 = vector.broadcast %1005 : vector<8x1xf32> to vector<8x6xf32>
    %1007 = arith.cmpf oeq, %1003, %1006 : vector<8x6xf32>
    %c6_i32_260 = arith.constant 6 : i32
    %1008 = vector.broadcast %c6_i32_260 : i32 to vector<8x6xi32>
    %1009 = arith.select %1007, %178, %1008 : vector<8x6xi1>, vector<8x6xi32>
    %cst_261 = arith.constant dense<2147483647> : vector<8xi32>
    %1010 = vector.multi_reduction <minsi>, %1009, %cst_261 [1] : vector<8x6xi32> to vector<8xi32>
    %1011 = vector.shape_cast %1010 : vector<8xi32> to vector<8x1xi32>
    %c3_i32_262 = arith.constant 3 : i32
    %1012 = vector.broadcast %c3_i32_262 : i32 to vector<8x6xi32>
    %1013 = arith.cmpi eq, %178, %1012 : vector<8x6xi32>
    %1014 = vector.shape_cast %1005 : vector<8x1xf32> to vector<8x1xf32>
    %1015 = vector.broadcast %1014 : vector<8x1xf32> to vector<8x6xf32>
    %1016 = arith.select %1013, %1015, %996 : vector<8x6xi1>, vector<8x6xf32>
    %c3_i32_263 = arith.constant 3 : i32
    %1017 = vector.broadcast %c3_i32_263 : i32 to vector<8x6xi32>
    %1018 = arith.cmpi eq, %178, %1017 : vector<8x6xi32>
    %1019 = vector.shape_cast %1011 : vector<8x1xi32> to vector<8x1xi32>
    %1020 = vector.broadcast %1019 : vector<8x1xi32> to vector<8x6xi32>
    %1021 = arith.select %1018, %1020, %1001 : vector<8x6xi1>, vector<8x6xi32>
    %1022 = vector.broadcast %183 : vector<1x6xf32> to vector<8x6xf32>
    %1023 = arith.addf %939, %1022 : vector<8x6xf32>
    %cst_264 = arith.constant dense<0xFF800000> : vector<8xf32>
    %1024 = vector.multi_reduction <maximumf>, %1023, %cst_264 [1] : vector<8x6xf32> to vector<8xf32>
    %1025 = vector.shape_cast %1024 : vector<8xf32> to vector<8x1xf32>
    %1026 = vector.broadcast %1025 : vector<8x1xf32> to vector<8x6xf32>
    %1027 = arith.cmpf oeq, %1023, %1026 : vector<8x6xf32>
    %c6_i32_265 = arith.constant 6 : i32
    %1028 = vector.broadcast %c6_i32_265 : i32 to vector<8x6xi32>
    %1029 = arith.select %1027, %178, %1028 : vector<8x6xi1>, vector<8x6xi32>
    %cst_266 = arith.constant dense<2147483647> : vector<8xi32>
    %1030 = vector.multi_reduction <minsi>, %1029, %cst_266 [1] : vector<8x6xi32> to vector<8xi32>
    %1031 = vector.shape_cast %1030 : vector<8xi32> to vector<8x1xi32>
    %c4_i32_267 = arith.constant 4 : i32
    %1032 = vector.broadcast %c4_i32_267 : i32 to vector<8x6xi32>
    %1033 = arith.cmpi eq, %178, %1032 : vector<8x6xi32>
    %1034 = vector.shape_cast %1025 : vector<8x1xf32> to vector<8x1xf32>
    %1035 = vector.broadcast %1034 : vector<8x1xf32> to vector<8x6xf32>
    %1036 = arith.select %1033, %1035, %1016 : vector<8x6xi1>, vector<8x6xf32>
    %c4_i32_268 = arith.constant 4 : i32
    %1037 = vector.broadcast %c4_i32_268 : i32 to vector<8x6xi32>
    %1038 = arith.cmpi eq, %178, %1037 : vector<8x6xi32>
    %1039 = vector.shape_cast %1031 : vector<8x1xi32> to vector<8x1xi32>
    %1040 = vector.broadcast %1039 : vector<8x1xi32> to vector<8x6xi32>
    %1041 = arith.select %1038, %1040, %1021 : vector<8x6xi1>, vector<8x6xi32>
    %1042 = vector.broadcast %184 : vector<1x6xf32> to vector<8x6xf32>
    %1043 = arith.addf %939, %1042 : vector<8x6xf32>
    %cst_269 = arith.constant dense<0xFF800000> : vector<8xf32>
    %1044 = vector.multi_reduction <maximumf>, %1043, %cst_269 [1] : vector<8x6xf32> to vector<8xf32>
    %1045 = vector.shape_cast %1044 : vector<8xf32> to vector<8x1xf32>
    %1046 = vector.broadcast %1045 : vector<8x1xf32> to vector<8x6xf32>
    %1047 = arith.cmpf oeq, %1043, %1046 : vector<8x6xf32>
    %c6_i32_270 = arith.constant 6 : i32
    %1048 = vector.broadcast %c6_i32_270 : i32 to vector<8x6xi32>
    %1049 = arith.select %1047, %178, %1048 : vector<8x6xi1>, vector<8x6xi32>
    %cst_271 = arith.constant dense<2147483647> : vector<8xi32>
    %1050 = vector.multi_reduction <minsi>, %1049, %cst_271 [1] : vector<8x6xi32> to vector<8xi32>
    %1051 = vector.shape_cast %1050 : vector<8xi32> to vector<8x1xi32>
    %c5_i32_272 = arith.constant 5 : i32
    %1052 = vector.broadcast %c5_i32_272 : i32 to vector<8x6xi32>
    %1053 = arith.cmpi eq, %178, %1052 : vector<8x6xi32>
    %1054 = vector.shape_cast %1045 : vector<8x1xf32> to vector<8x1xf32>
    %1055 = vector.broadcast %1054 : vector<8x1xf32> to vector<8x6xf32>
    %1056 = arith.select %1053, %1055, %1036 : vector<8x6xi1>, vector<8x6xf32>
    %c5_i32_273 = arith.constant 5 : i32
    %1057 = vector.broadcast %c5_i32_273 : i32 to vector<8x6xi32>
    %1058 = arith.cmpi eq, %178, %1057 : vector<8x6xi32>
    %1059 = vector.shape_cast %1051 : vector<8x1xi32> to vector<8x1xi32>
    %1060 = vector.broadcast %1059 : vector<8x1xi32> to vector<8x6xi32>
    %1061 = arith.select %1058, %1060, %1041 : vector<8x6xi1>, vector<8x6xi32>
    %1062 = vector.extract_strided_slice %176 {offsets = [6, 0, 0], sizes = [1, 8, 6], strides = [1, 1, 1]} : vector<8x8x6xf32> to vector<1x8x6xf32>
    %1063 = vector.shape_cast %1062 : vector<1x8x6xf32> to vector<8x6xf32>
    %1064 = arith.addf %1056, %1063 : vector<8x6xf32>
    %cst_274 = arith.constant 0.000000e+00 : f32
    %1065 = vector.broadcast %cst_274 : f32 to vector<8x6xf32>
    %c0_i32_275 = arith.constant 0 : i32
    %1066 = vector.broadcast %c0_i32_275 : i32 to vector<8x6xi32>
    %1067 = vector.broadcast %179 : vector<1x6xf32> to vector<8x6xf32>
    %1068 = arith.addf %1064, %1067 : vector<8x6xf32>
    %cst_276 = arith.constant dense<0xFF800000> : vector<8xf32>
    %1069 = vector.multi_reduction <maximumf>, %1068, %cst_276 [1] : vector<8x6xf32> to vector<8xf32>
    %1070 = vector.shape_cast %1069 : vector<8xf32> to vector<8x1xf32>
    %1071 = vector.broadcast %1070 : vector<8x1xf32> to vector<8x6xf32>
    %1072 = arith.cmpf oeq, %1068, %1071 : vector<8x6xf32>
    %c6_i32_277 = arith.constant 6 : i32
    %1073 = vector.broadcast %c6_i32_277 : i32 to vector<8x6xi32>
    %1074 = arith.select %1072, %178, %1073 : vector<8x6xi1>, vector<8x6xi32>
    %cst_278 = arith.constant dense<2147483647> : vector<8xi32>
    %1075 = vector.multi_reduction <minsi>, %1074, %cst_278 [1] : vector<8x6xi32> to vector<8xi32>
    %1076 = vector.shape_cast %1075 : vector<8xi32> to vector<8x1xi32>
    %c0_i32_279 = arith.constant 0 : i32
    %1077 = vector.broadcast %c0_i32_279 : i32 to vector<8x6xi32>
    %1078 = arith.cmpi eq, %178, %1077 : vector<8x6xi32>
    %1079 = vector.shape_cast %1070 : vector<8x1xf32> to vector<8x1xf32>
    %1080 = vector.broadcast %1079 : vector<8x1xf32> to vector<8x6xf32>
    %1081 = arith.select %1078, %1080, %1065 : vector<8x6xi1>, vector<8x6xf32>
    %c0_i32_280 = arith.constant 0 : i32
    %1082 = vector.broadcast %c0_i32_280 : i32 to vector<8x6xi32>
    %1083 = arith.cmpi eq, %178, %1082 : vector<8x6xi32>
    %1084 = vector.shape_cast %1076 : vector<8x1xi32> to vector<8x1xi32>
    %1085 = vector.broadcast %1084 : vector<8x1xi32> to vector<8x6xi32>
    %1086 = arith.select %1083, %1085, %1066 : vector<8x6xi1>, vector<8x6xi32>
    %1087 = vector.broadcast %180 : vector<1x6xf32> to vector<8x6xf32>
    %1088 = arith.addf %1064, %1087 : vector<8x6xf32>
    %cst_281 = arith.constant dense<0xFF800000> : vector<8xf32>
    %1089 = vector.multi_reduction <maximumf>, %1088, %cst_281 [1] : vector<8x6xf32> to vector<8xf32>
    %1090 = vector.shape_cast %1089 : vector<8xf32> to vector<8x1xf32>
    %1091 = vector.broadcast %1090 : vector<8x1xf32> to vector<8x6xf32>
    %1092 = arith.cmpf oeq, %1088, %1091 : vector<8x6xf32>
    %c6_i32_282 = arith.constant 6 : i32
    %1093 = vector.broadcast %c6_i32_282 : i32 to vector<8x6xi32>
    %1094 = arith.select %1092, %178, %1093 : vector<8x6xi1>, vector<8x6xi32>
    %cst_283 = arith.constant dense<2147483647> : vector<8xi32>
    %1095 = vector.multi_reduction <minsi>, %1094, %cst_283 [1] : vector<8x6xi32> to vector<8xi32>
    %1096 = vector.shape_cast %1095 : vector<8xi32> to vector<8x1xi32>
    %c1_i32_284 = arith.constant 1 : i32
    %1097 = vector.broadcast %c1_i32_284 : i32 to vector<8x6xi32>
    %1098 = arith.cmpi eq, %178, %1097 : vector<8x6xi32>
    %1099 = vector.shape_cast %1090 : vector<8x1xf32> to vector<8x1xf32>
    %1100 = vector.broadcast %1099 : vector<8x1xf32> to vector<8x6xf32>
    %1101 = arith.select %1098, %1100, %1081 : vector<8x6xi1>, vector<8x6xf32>
    %c1_i32_285 = arith.constant 1 : i32
    %1102 = vector.broadcast %c1_i32_285 : i32 to vector<8x6xi32>
    %1103 = arith.cmpi eq, %178, %1102 : vector<8x6xi32>
    %1104 = vector.shape_cast %1096 : vector<8x1xi32> to vector<8x1xi32>
    %1105 = vector.broadcast %1104 : vector<8x1xi32> to vector<8x6xi32>
    %1106 = arith.select %1103, %1105, %1086 : vector<8x6xi1>, vector<8x6xi32>
    %1107 = vector.broadcast %181 : vector<1x6xf32> to vector<8x6xf32>
    %1108 = arith.addf %1064, %1107 : vector<8x6xf32>
    %cst_286 = arith.constant dense<0xFF800000> : vector<8xf32>
    %1109 = vector.multi_reduction <maximumf>, %1108, %cst_286 [1] : vector<8x6xf32> to vector<8xf32>
    %1110 = vector.shape_cast %1109 : vector<8xf32> to vector<8x1xf32>
    %1111 = vector.broadcast %1110 : vector<8x1xf32> to vector<8x6xf32>
    %1112 = arith.cmpf oeq, %1108, %1111 : vector<8x6xf32>
    %c6_i32_287 = arith.constant 6 : i32
    %1113 = vector.broadcast %c6_i32_287 : i32 to vector<8x6xi32>
    %1114 = arith.select %1112, %178, %1113 : vector<8x6xi1>, vector<8x6xi32>
    %cst_288 = arith.constant dense<2147483647> : vector<8xi32>
    %1115 = vector.multi_reduction <minsi>, %1114, %cst_288 [1] : vector<8x6xi32> to vector<8xi32>
    %1116 = vector.shape_cast %1115 : vector<8xi32> to vector<8x1xi32>
    %c2_i32_289 = arith.constant 2 : i32
    %1117 = vector.broadcast %c2_i32_289 : i32 to vector<8x6xi32>
    %1118 = arith.cmpi eq, %178, %1117 : vector<8x6xi32>
    %1119 = vector.shape_cast %1110 : vector<8x1xf32> to vector<8x1xf32>
    %1120 = vector.broadcast %1119 : vector<8x1xf32> to vector<8x6xf32>
    %1121 = arith.select %1118, %1120, %1101 : vector<8x6xi1>, vector<8x6xf32>
    %c2_i32_290 = arith.constant 2 : i32
    %1122 = vector.broadcast %c2_i32_290 : i32 to vector<8x6xi32>
    %1123 = arith.cmpi eq, %178, %1122 : vector<8x6xi32>
    %1124 = vector.shape_cast %1116 : vector<8x1xi32> to vector<8x1xi32>
    %1125 = vector.broadcast %1124 : vector<8x1xi32> to vector<8x6xi32>
    %1126 = arith.select %1123, %1125, %1106 : vector<8x6xi1>, vector<8x6xi32>
    %1127 = vector.broadcast %182 : vector<1x6xf32> to vector<8x6xf32>
    %1128 = arith.addf %1064, %1127 : vector<8x6xf32>
    %cst_291 = arith.constant dense<0xFF800000> : vector<8xf32>
    %1129 = vector.multi_reduction <maximumf>, %1128, %cst_291 [1] : vector<8x6xf32> to vector<8xf32>
    %1130 = vector.shape_cast %1129 : vector<8xf32> to vector<8x1xf32>
    %1131 = vector.broadcast %1130 : vector<8x1xf32> to vector<8x6xf32>
    %1132 = arith.cmpf oeq, %1128, %1131 : vector<8x6xf32>
    %c6_i32_292 = arith.constant 6 : i32
    %1133 = vector.broadcast %c6_i32_292 : i32 to vector<8x6xi32>
    %1134 = arith.select %1132, %178, %1133 : vector<8x6xi1>, vector<8x6xi32>
    %cst_293 = arith.constant dense<2147483647> : vector<8xi32>
    %1135 = vector.multi_reduction <minsi>, %1134, %cst_293 [1] : vector<8x6xi32> to vector<8xi32>
    %1136 = vector.shape_cast %1135 : vector<8xi32> to vector<8x1xi32>
    %c3_i32_294 = arith.constant 3 : i32
    %1137 = vector.broadcast %c3_i32_294 : i32 to vector<8x6xi32>
    %1138 = arith.cmpi eq, %178, %1137 : vector<8x6xi32>
    %1139 = vector.shape_cast %1130 : vector<8x1xf32> to vector<8x1xf32>
    %1140 = vector.broadcast %1139 : vector<8x1xf32> to vector<8x6xf32>
    %1141 = arith.select %1138, %1140, %1121 : vector<8x6xi1>, vector<8x6xf32>
    %c3_i32_295 = arith.constant 3 : i32
    %1142 = vector.broadcast %c3_i32_295 : i32 to vector<8x6xi32>
    %1143 = arith.cmpi eq, %178, %1142 : vector<8x6xi32>
    %1144 = vector.shape_cast %1136 : vector<8x1xi32> to vector<8x1xi32>
    %1145 = vector.broadcast %1144 : vector<8x1xi32> to vector<8x6xi32>
    %1146 = arith.select %1143, %1145, %1126 : vector<8x6xi1>, vector<8x6xi32>
    %1147 = vector.broadcast %183 : vector<1x6xf32> to vector<8x6xf32>
    %1148 = arith.addf %1064, %1147 : vector<8x6xf32>
    %cst_296 = arith.constant dense<0xFF800000> : vector<8xf32>
    %1149 = vector.multi_reduction <maximumf>, %1148, %cst_296 [1] : vector<8x6xf32> to vector<8xf32>
    %1150 = vector.shape_cast %1149 : vector<8xf32> to vector<8x1xf32>
    %1151 = vector.broadcast %1150 : vector<8x1xf32> to vector<8x6xf32>
    %1152 = arith.cmpf oeq, %1148, %1151 : vector<8x6xf32>
    %c6_i32_297 = arith.constant 6 : i32
    %1153 = vector.broadcast %c6_i32_297 : i32 to vector<8x6xi32>
    %1154 = arith.select %1152, %178, %1153 : vector<8x6xi1>, vector<8x6xi32>
    %cst_298 = arith.constant dense<2147483647> : vector<8xi32>
    %1155 = vector.multi_reduction <minsi>, %1154, %cst_298 [1] : vector<8x6xi32> to vector<8xi32>
    %1156 = vector.shape_cast %1155 : vector<8xi32> to vector<8x1xi32>
    %c4_i32_299 = arith.constant 4 : i32
    %1157 = vector.broadcast %c4_i32_299 : i32 to vector<8x6xi32>
    %1158 = arith.cmpi eq, %178, %1157 : vector<8x6xi32>
    %1159 = vector.shape_cast %1150 : vector<8x1xf32> to vector<8x1xf32>
    %1160 = vector.broadcast %1159 : vector<8x1xf32> to vector<8x6xf32>
    %1161 = arith.select %1158, %1160, %1141 : vector<8x6xi1>, vector<8x6xf32>
    %c4_i32_300 = arith.constant 4 : i32
    %1162 = vector.broadcast %c4_i32_300 : i32 to vector<8x6xi32>
    %1163 = arith.cmpi eq, %178, %1162 : vector<8x6xi32>
    %1164 = vector.shape_cast %1156 : vector<8x1xi32> to vector<8x1xi32>
    %1165 = vector.broadcast %1164 : vector<8x1xi32> to vector<8x6xi32>
    %1166 = arith.select %1163, %1165, %1146 : vector<8x6xi1>, vector<8x6xi32>
    %1167 = vector.broadcast %184 : vector<1x6xf32> to vector<8x6xf32>
    %1168 = arith.addf %1064, %1167 : vector<8x6xf32>
    %cst_301 = arith.constant dense<0xFF800000> : vector<8xf32>
    %1169 = vector.multi_reduction <maximumf>, %1168, %cst_301 [1] : vector<8x6xf32> to vector<8xf32>
    %1170 = vector.shape_cast %1169 : vector<8xf32> to vector<8x1xf32>
    %1171 = vector.broadcast %1170 : vector<8x1xf32> to vector<8x6xf32>
    %1172 = arith.cmpf oeq, %1168, %1171 : vector<8x6xf32>
    %c6_i32_302 = arith.constant 6 : i32
    %1173 = vector.broadcast %c6_i32_302 : i32 to vector<8x6xi32>
    %1174 = arith.select %1172, %178, %1173 : vector<8x6xi1>, vector<8x6xi32>
    %cst_303 = arith.constant dense<2147483647> : vector<8xi32>
    %1175 = vector.multi_reduction <minsi>, %1174, %cst_303 [1] : vector<8x6xi32> to vector<8xi32>
    %1176 = vector.shape_cast %1175 : vector<8xi32> to vector<8x1xi32>
    %c5_i32_304 = arith.constant 5 : i32
    %1177 = vector.broadcast %c5_i32_304 : i32 to vector<8x6xi32>
    %1178 = arith.cmpi eq, %178, %1177 : vector<8x6xi32>
    %1179 = vector.shape_cast %1170 : vector<8x1xf32> to vector<8x1xf32>
    %1180 = vector.broadcast %1179 : vector<8x1xf32> to vector<8x6xf32>
    %1181 = arith.select %1178, %1180, %1161 : vector<8x6xi1>, vector<8x6xf32>
    %c5_i32_305 = arith.constant 5 : i32
    %1182 = vector.broadcast %c5_i32_305 : i32 to vector<8x6xi32>
    %1183 = arith.cmpi eq, %178, %1182 : vector<8x6xi32>
    %1184 = vector.shape_cast %1176 : vector<8x1xi32> to vector<8x1xi32>
    %1185 = vector.broadcast %1184 : vector<8x1xi32> to vector<8x6xi32>
    %1186 = arith.select %1183, %1185, %1166 : vector<8x6xi1>, vector<8x6xi32>
    %1187 = vector.extract_strided_slice %176 {offsets = [7, 0, 0], sizes = [1, 8, 6], strides = [1, 1, 1]} : vector<8x8x6xf32> to vector<1x8x6xf32>
    %1188 = vector.shape_cast %1187 : vector<1x8x6xf32> to vector<8x6xf32>
    %1189 = arith.addf %1181, %1188 : vector<8x6xf32>
    %c6_306 = arith.constant 6 : index
    %c0_307 = arith.constant 0 : index
    %1190 = vector.load %arg3[%c6_306, %c0_307] : memref<8x128xf32, #tpu.memory_space<vmem>>, vector<1x6xf32>
    %1191 = vector.broadcast %1190 : vector<1x6xf32> to vector<8x6xf32>
    %1192 = arith.addf %1189, %1191 : vector<8x6xf32>
    %cst_308 = arith.constant dense<0xFF800000> : vector<8xf32>
    %1193 = vector.multi_reduction <maximumf>, %1192, %cst_308 [1] : vector<8x6xf32> to vector<8xf32>
    %1194 = vector.shape_cast %1193 : vector<8xf32> to vector<8x1xf32>
    %1195 = vector.broadcast %1194 : vector<8x1xf32> to vector<8x6xf32>
    %1196 = arith.cmpf oeq, %1192, %1195 : vector<8x6xf32>
    %c6_i32_309 = arith.constant 6 : i32
    %1197 = vector.broadcast %c6_i32_309 : i32 to vector<8x6xi32>
    %1198 = arith.select %1196, %178, %1197 : vector<8x6xi1>, vector<8x6xi32>
    %cst_310 = arith.constant dense<2147483647> : vector<8xi32>
    %1199 = vector.multi_reduction <minsi>, %1198, %cst_310 [1] : vector<8x6xi32> to vector<8xi32>
    %1200 = vector.shape_cast %1199 : vector<8xi32> to vector<8x1xi32>
    %1201 = tpu.iota {dimensions = array<i32: 1>} : vector<8x128xi32>
    %c7_i32 = arith.constant 7 : i32
    %1202 = vector.broadcast %c7_i32 : i32 to vector<8x128xi32>
    %1203 = arith.cmpi eq, %1201, %1202 : vector<8x128xi32>
    %1204 = arith.sitofp %1200 : vector<8x1xi32> to vector<8x1xf32>
    %cst_311 = arith.constant 0.000000e+00 : f32
    %1205 = vector.broadcast %cst_311 : f32 to vector<8x128xf32>
    %1206 = vector.shape_cast %1204 : vector<8x1xf32> to vector<8x1xf32>
    %1207 = vector.broadcast %1206 : vector<8x1xf32> to vector<8x128xf32>
    %1208 = arith.select %1203, %1207, %1205 : vector<8x128xi1>, vector<8x128xf32>
    %1209 = vector.broadcast %1200 : vector<8x1xi32> to vector<8x6xi32>
    %1210 = arith.cmpi eq, %178, %1209 : vector<8x6xi32>
    %c0_i32_312 = arith.constant 0 : i32
    %1211 = vector.broadcast %c0_i32_312 : i32 to vector<8x6xi32>
    %1212 = arith.select %1210, %1186, %1211 : vector<8x6xi1>, vector<8x6xi32>
    %cst_313 = arith.constant dense<0> : vector<8xi32>
    %1213 = vector.multi_reduction <add>, %1212, %cst_313 [1] : vector<8x6xi32> to vector<8xi32>
    %1214 = vector.shape_cast %1213 : vector<8xi32> to vector<8x1xi32>
    %c6_i32_314 = arith.constant 6 : i32
    %1215 = vector.broadcast %c6_i32_314 : i32 to vector<8x128xi32>
    %1216 = arith.cmpi eq, %1201, %1215 : vector<8x128xi32>
    %1217 = arith.sitofp %1214 : vector<8x1xi32> to vector<8x1xf32>
    %1218 = vector.shape_cast %1217 : vector<8x1xf32> to vector<8x1xf32>
    %1219 = vector.broadcast %1218 : vector<8x1xf32> to vector<8x128xf32>
    %1220 = arith.select %1216, %1219, %1208 : vector<8x128xi1>, vector<8x128xf32>
    %1221 = vector.broadcast %1214 : vector<8x1xi32> to vector<8x6xi32>
    %1222 = arith.cmpi eq, %178, %1221 : vector<8x6xi32>
    %c0_i32_315 = arith.constant 0 : i32
    %1223 = vector.broadcast %c0_i32_315 : i32 to vector<8x6xi32>
    %1224 = arith.select %1222, %1061, %1223 : vector<8x6xi1>, vector<8x6xi32>
    %cst_316 = arith.constant dense<0> : vector<8xi32>
    %1225 = vector.multi_reduction <add>, %1224, %cst_316 [1] : vector<8x6xi32> to vector<8xi32>
    %1226 = vector.shape_cast %1225 : vector<8xi32> to vector<8x1xi32>
    %c5_i32_317 = arith.constant 5 : i32
    %1227 = vector.broadcast %c5_i32_317 : i32 to vector<8x128xi32>
    %1228 = arith.cmpi eq, %1201, %1227 : vector<8x128xi32>
    %1229 = arith.sitofp %1226 : vector<8x1xi32> to vector<8x1xf32>
    %1230 = vector.shape_cast %1229 : vector<8x1xf32> to vector<8x1xf32>
    %1231 = vector.broadcast %1230 : vector<8x1xf32> to vector<8x128xf32>
    %1232 = arith.select %1228, %1231, %1220 : vector<8x128xi1>, vector<8x128xf32>
    %1233 = vector.broadcast %1226 : vector<8x1xi32> to vector<8x6xi32>
    %1234 = arith.cmpi eq, %178, %1233 : vector<8x6xi32>
    %c0_i32_318 = arith.constant 0 : i32
    %1235 = vector.broadcast %c0_i32_318 : i32 to vector<8x6xi32>
    %1236 = arith.select %1234, %936, %1235 : vector<8x6xi1>, vector<8x6xi32>
    %cst_319 = arith.constant dense<0> : vector<8xi32>
    %1237 = vector.multi_reduction <add>, %1236, %cst_319 [1] : vector<8x6xi32> to vector<8xi32>
    %1238 = vector.shape_cast %1237 : vector<8xi32> to vector<8x1xi32>
    %c4_i32_320 = arith.constant 4 : i32
    %1239 = vector.broadcast %c4_i32_320 : i32 to vector<8x128xi32>
    %1240 = arith.cmpi eq, %1201, %1239 : vector<8x128xi32>
    %1241 = arith.sitofp %1238 : vector<8x1xi32> to vector<8x1xf32>
    %1242 = vector.shape_cast %1241 : vector<8x1xf32> to vector<8x1xf32>
    %1243 = vector.broadcast %1242 : vector<8x1xf32> to vector<8x128xf32>
    %1244 = arith.select %1240, %1243, %1232 : vector<8x128xi1>, vector<8x128xf32>
    %1245 = vector.broadcast %1238 : vector<8x1xi32> to vector<8x6xi32>
    %1246 = arith.cmpi eq, %178, %1245 : vector<8x6xi32>
    %c0_i32_321 = arith.constant 0 : i32
    %1247 = vector.broadcast %c0_i32_321 : i32 to vector<8x6xi32>
    %1248 = arith.select %1246, %811, %1247 : vector<8x6xi1>, vector<8x6xi32>
    %cst_322 = arith.constant dense<0> : vector<8xi32>
    %1249 = vector.multi_reduction <add>, %1248, %cst_322 [1] : vector<8x6xi32> to vector<8xi32>
    %1250 = vector.shape_cast %1249 : vector<8xi32> to vector<8x1xi32>
    %c3_i32_323 = arith.constant 3 : i32
    %1251 = vector.broadcast %c3_i32_323 : i32 to vector<8x128xi32>
    %1252 = arith.cmpi eq, %1201, %1251 : vector<8x128xi32>
    %1253 = arith.sitofp %1250 : vector<8x1xi32> to vector<8x1xf32>
    %1254 = vector.shape_cast %1253 : vector<8x1xf32> to vector<8x1xf32>
    %1255 = vector.broadcast %1254 : vector<8x1xf32> to vector<8x128xf32>
    %1256 = arith.select %1252, %1255, %1244 : vector<8x128xi1>, vector<8x128xf32>
    %1257 = vector.broadcast %1250 : vector<8x1xi32> to vector<8x6xi32>
    %1258 = arith.cmpi eq, %178, %1257 : vector<8x6xi32>
    %c0_i32_324 = arith.constant 0 : i32
    %1259 = vector.broadcast %c0_i32_324 : i32 to vector<8x6xi32>
    %1260 = arith.select %1258, %686, %1259 : vector<8x6xi1>, vector<8x6xi32>
    %cst_325 = arith.constant dense<0> : vector<8xi32>
    %1261 = vector.multi_reduction <add>, %1260, %cst_325 [1] : vector<8x6xi32> to vector<8xi32>
    %1262 = vector.shape_cast %1261 : vector<8xi32> to vector<8x1xi32>
    %c2_i32_326 = arith.constant 2 : i32
    %1263 = vector.broadcast %c2_i32_326 : i32 to vector<8x128xi32>
    %1264 = arith.cmpi eq, %1201, %1263 : vector<8x128xi32>
    %1265 = arith.sitofp %1262 : vector<8x1xi32> to vector<8x1xf32>
    %1266 = vector.shape_cast %1265 : vector<8x1xf32> to vector<8x1xf32>
    %1267 = vector.broadcast %1266 : vector<8x1xf32> to vector<8x128xf32>
    %1268 = arith.select %1264, %1267, %1256 : vector<8x128xi1>, vector<8x128xf32>
    %1269 = vector.broadcast %1262 : vector<8x1xi32> to vector<8x6xi32>
    %1270 = arith.cmpi eq, %178, %1269 : vector<8x6xi32>
    %c0_i32_327 = arith.constant 0 : i32
    %1271 = vector.broadcast %c0_i32_327 : i32 to vector<8x6xi32>
    %1272 = arith.select %1270, %561, %1271 : vector<8x6xi1>, vector<8x6xi32>
    %cst_328 = arith.constant dense<0> : vector<8xi32>
    %1273 = vector.multi_reduction <add>, %1272, %cst_328 [1] : vector<8x6xi32> to vector<8xi32>
    %1274 = vector.shape_cast %1273 : vector<8xi32> to vector<8x1xi32>
    %c1_i32_329 = arith.constant 1 : i32
    %1275 = vector.broadcast %c1_i32_329 : i32 to vector<8x128xi32>
    %1276 = arith.cmpi eq, %1201, %1275 : vector<8x128xi32>
    %1277 = arith.sitofp %1274 : vector<8x1xi32> to vector<8x1xf32>
    %1278 = vector.shape_cast %1277 : vector<8x1xf32> to vector<8x1xf32>
    %1279 = vector.broadcast %1278 : vector<8x1xf32> to vector<8x128xf32>
    %1280 = arith.select %1276, %1279, %1268 : vector<8x128xi1>, vector<8x128xf32>
    %1281 = vector.broadcast %1274 : vector<8x1xi32> to vector<8x6xi32>
    %1282 = arith.cmpi eq, %178, %1281 : vector<8x6xi32>
    %c0_i32_330 = arith.constant 0 : i32
    %1283 = vector.broadcast %c0_i32_330 : i32 to vector<8x6xi32>
    %1284 = arith.select %1282, %436, %1283 : vector<8x6xi1>, vector<8x6xi32>
    %cst_331 = arith.constant dense<0> : vector<8xi32>
    %1285 = vector.multi_reduction <add>, %1284, %cst_331 [1] : vector<8x6xi32> to vector<8xi32>
    %1286 = vector.shape_cast %1285 : vector<8xi32> to vector<8x1xi32>
    %c0_i32_332 = arith.constant 0 : i32
    %1287 = vector.broadcast %c0_i32_332 : i32 to vector<8x128xi32>
    %1288 = arith.cmpi eq, %1201, %1287 : vector<8x128xi32>
    %1289 = arith.sitofp %1286 : vector<8x1xi32> to vector<8x1xf32>
    %1290 = vector.shape_cast %1289 : vector<8x1xf32> to vector<8x1xf32>
    %1291 = vector.broadcast %1290 : vector<8x1xf32> to vector<8x128xf32>
    %1292 = arith.select %1288, %1291, %1280 : vector<8x128xi1>, vector<8x128xf32>
    %1293 = vector.broadcast %1286 : vector<8x1xi32> to vector<8x6xi32>
    %1294 = arith.cmpi eq, %178, %1293 : vector<8x6xi32>
    %c0_i32_333 = arith.constant 0 : i32
    %1295 = vector.broadcast %c0_i32_333 : i32 to vector<8x6xi32>
    %1296 = arith.select %1294, %311, %1295 : vector<8x6xi1>, vector<8x6xi32>
    %cst_334 = arith.constant dense<0> : vector<8xi32>
    %1297 = vector.multi_reduction <add>, %1296, %cst_334 [1] : vector<8x6xi32> to vector<8xi32>
    %1298 = vector.shape_cast %1297 : vector<8xi32> to vector<8x1xi32>
    %c8_i32 = arith.constant 8 : i32
    %1299 = vector.broadcast %c8_i32 : i32 to vector<8x128xi32>
    %1300 = arith.cmpi eq, %1201, %1299 : vector<8x128xi32>
    %1301 = vector.shape_cast %1194 : vector<8x1xf32> to vector<8x1xf32>
    %1302 = vector.broadcast %1301 : vector<8x1xf32> to vector<8x128xf32>
    %1303 = arith.select %1300, %1302, %1292 : vector<8x128xi1>, vector<8x128xf32>
    %c9_i32 = arith.constant 9 : i32
    %1304 = vector.broadcast %c9_i32 : i32 to vector<8x128xi32>
    %1305 = arith.cmpi eq, %1201, %1304 : vector<8x128xi32>
    %1306 = arith.sitofp %1298 : vector<8x1xi32> to vector<8x1xf32>
    %1307 = vector.shape_cast %1306 : vector<8x1xf32> to vector<8x1xf32>
    %1308 = vector.broadcast %1307 : vector<8x1xf32> to vector<8x128xf32>
    %1309 = arith.select %1305, %1308, %1303 : vector<8x128xi1>, vector<8x128xf32>
    %c0_335 = arith.constant 0 : index
    %c0_336 = arith.constant 0 : index
    %1310 = vector.load %arg6[%c0_335, %c0_336] : memref<8x128xf32, #tpu.memory_space<vmem>>, vector<8x128xf32>
    tpu.vector_store %arg6[%c0_335, %c0_336], %1309 {strides = array<i32>} : memref<8x128xf32, #tpu.memory_space<vmem>>, vector<8x128xf32>,
    return
  }
  func.func @transform_0(%arg0: i32) -> (i32, i32, i32) {
    %c0_i32 = arith.constant 0 : i32
    %c0_i32_0 = arith.constant 0 : i32
    %c0_i32_1 = arith.constant 0 : i32
    return %c0_i32, %arg0, %c0_i32_0 : i32, i32, i32
  }
  func.func @transform_1(%arg0: i32) -> (i32, i32) {
    %c0_i32 = arith.constant 0 : i32
    %c0_i32_0 = arith.constant 0 : i32
    %c0_i32_1 = arith.constant 0 : i32
    return %c0_i32, %c0_i32_0 : i32, i32
  }
  func.func @transform_2(%arg0: i32) -> (i32, i32) {
    %c0_i32 = arith.constant 0 : i32
    %c0_i32_0 = arith.constant 0 : i32
    %c0_i32_1 = arith.constant 0 : i32
    return %c0_i32, %c0_i32_0 : i32, i32
  }
  func.func @transform_3(%arg0: i32) -> (i32, i32, i32) {
    %c0_i32 = arith.constant 0 : i32
    %c0_i32_0 = arith.constant 0 : i32
    %c0_i32_1 = arith.constant 0 : i32
    return %c0_i32, %arg0, %c0_i32_0 : i32, i32, i32
  }
  func.func @transform_4(%arg0: i32) -> (i32, i32, i32) {
    %c0_i32 = arith.constant 0 : i32
    %c0_i32_0 = arith.constant 0 : i32
    %c0_i32_1 = arith.constant 0 : i32
    return %c0_i32, %arg0, %c0_i32_0 : i32, i32, i32
  }
  func.func @transform_5(%arg0: i32) -> (i32, i32) {
    %c0_i32 = arith.constant 0 : i32
    %c0_i32_0 = arith.constant 0 : i32
    return %arg0, %c0_i32 : i32, i32
  }
}

</mosaic_0001>

<bundles_post_ra>
// kernel: bilstm_crf_forward.1
= control target key start
LH: loop header
LB: loop body
LE: loop exit
PB: predicated region body
PF: predicated region fallthrough
CT: control target
= control target key end

     0   :  { %s2983_s18 = smov 0   ;;  %s2985_s19 = smov 0   ;;  %s4676_s0 = inlined_call_operand.vmem [shape: f32[8,16,16], index: 0, kind: input, shape index: {}]   ;;  %s4677_s1 = inlined_call_operand.vmem [shape: f32[80,128], index: 1, kind: input, shape index: {}]   ;;  %s4678_s2 = inlined_call_operand.vmem [shape: f32[8,128], index: 2, kind: input, shape index: {}]   ;;  %s4679_s3 = inlined_call_operand.vmem [shape: f32[2,16,32], index: 3, kind: input, shape index: {}]   ;;  %s4680_s4 = inlined_call_operand.vmem [shape: f32[8,16,6], index: 4, kind: output, shape index: {0}]   ;;  %s4681_s5 = inlined_call_operand.vmem [shape: f32[16,128], index: 5, kind: output, shape index: {1}]  }
   0x1   :  { %s2987_s20 = smov 0  }
   0x2 LB: > { %s2999_s21 = sadd.s32 4294967295, %s2946_s20   ;;  %s3002_s22 = sadd.s32 1, %s2946_s20   ;;  %s2946_s20 = sphi %s2987_s20, %s4841_s20   ;;  %s2942_s19 = sphi %s2985_s19, %s4840_s19   ;;  %s2938_s18 = sphi %s2983_s18, %s4839_s18  }
   0x3   : > { %s20_s23 = ssub.s32 %s2946_s20, %s3002_s22  ;;  %s23_s24 = sadd.s32 1, %s2942_s19 }
   0x4   : > { %p21_p0 = scmp.eq.s32.totalorder %s20_s23, 0  ;;  %p30_p1 = scmp.ne.s32.totalorder %s2942_s19, %s2938_s18 }
   0x5   : > { %p31_p2 = scmp.eq.s32.totalorder %s2946_s20, 0  ;;  %p128_p3 = scmp.eq.s32.totalorder %s2999_s21, 1 }
   0x6   : > { %s3012_s25 = scalar_select %p21_p0, %s2942_s19, %s23_s24  }
   0x7   : > { %p3014_p4 = por %p31_p2, %p30_p1  ;;  %p3018_p5 = por %p128_p3, %p30_p1 }
   0x8   : > { %p2661_p6 = scmp.ge.s32.totalorder %s2946_s20, 2 }
   0xa   : > { %182 = sbr.rel (%p2661_p6) target bundleno = 28 (0x1c), region = 24 }
   0xf   : > { %185 = sbr.rel (!%p3014_p4) target bundleno = 23 (0x17), region = 28  ;;  %s187_s28 = sand.u32 (%p3014_p4), 1, %s2942_s19  }
  0x10   : > { %s2663_s29 = sshll.u32 (%p3014_p4), %s2946_s20, 3  ;;  %s2662_s30 = sshll.u32 (%p3014_p4), %s187_s28, 6 }
  0x11   : > { %s191_s8 = scalar_lea.vmem (%p3014_p4), %s4676_s0, %s2663_s29  ;;  %s189_s9 = scalar_lea.vmem (%p3014_p4), [#allocation3], %s2662_s30 }
  0x12   : > { %v234_v0 = vld [vmem:[%s191_s8] sm:$0xff] (%p3014_p4)  ;;  %v236_v1 = vld [vmem:[%s191_s8 + $0x10] sm:$0xff] (%p3014_p4) }
  0x13   : > { %v238_v2 = vld [vmem:[%s191_s8 + $0x20] sm:$0xff] (%p3014_p4)  ;;  %235 = vst [vmem:[%s189_s9] sm:$0xff] (%p3014_p4), %v234_v0  ;;  %237 = vst [vmem:[%s189_s9 + $0x8] sm:$0xff] (%p3014_p4), %v236_v1  ;;  %v240_v3 = vld [vmem:[%s191_s8 + $0x30] sm:$0xff] (%p3014_p4) }
  0x14   : > { %239 = vst [vmem:[%s189_s9 + $0x10] sm:$0xff] %v238_v2  ;;  %v242_v4 = vld [vmem:[%s191_s8 + $0x40] sm:$0xff]  ;;  %v244_v5 = vld [vmem:[%s191_s8 + $0x50] sm:$0xff]  ;;  %241 = vst [vmem:[%s189_s9 + $0x18] sm:$0xff] %v240_v3 }
  0x15   : > { %243 = vst [vmem:[%s189_s9 + $0x20] sm:$0xff] %v242_v4  ;;  %245 = vst [vmem:[%s189_s9 + $0x28] sm:$0xff] %v244_v5  ;;  %v246_v6 = vld [vmem:[%s191_s8 + $0x60] sm:$0xff]  ;;  %v248_v7 = vld [vmem:[%s191_s8 + $0x70] sm:$0xff] }
  0x16   : > { %247 = vst [vmem:[%s189_s9 + $0x30] sm:$0xff] %v246_v6  ;;  %249 = vst [vmem:[%s189_s9 + $0x38] sm:$0xff] %v248_v7 }
  0x17 PF: > { %255 = sbr.rel (!%p3014_p4) target bundleno = 28 (0x1c), region = 66  ;;  %s257_s10 = sand.u32 (%p3014_p4), 1, %s2942_s19  }
  0x18   : > { %s2665_s11 = sshll.u32 (%p3014_p4), %s2946_s20, 3  ;;  %s2664_s12 = sshll.u32 (%p3014_p4), %s257_s10, 4 }
  0x19   : > { %s261_s15 = scalar_lea.vmem (%p3014_p4), %s4679_s3, %s2665_s11  ;;  %s259_s16 = scalar_lea.vmem (%p3014_p4), [#allocation4], %s2664_s12 }
  0x1a   : > { %v292_v8 = vld [vmem:[%s261_s15] sm:$0xff] (%p3014_p4)  ;;  %v294_v9 = vld [vmem:[%s261_s15 + $0x10] sm:$0xff] (%p3014_p4) }
  0x1b   : > { %293 = vst [vmem:[%s259_s16] sm:$0xff] (%p3014_p4), %v292_v8  ;;  %295 = vst [vmem:[%s259_s16 + $0x8] sm:$0xff] (%p3014_p4), %v294_v9 }
  0x1c PF: > { %p2666_p7 = scmp.ge.s32.totalorder %s2946_s20, 1  ;;  %p300_p8 = scmp.lt.s32.totalorder %s2946_s20, 3 }
  0x1e   : > { %p301_p9 = pnand %p2666_p7, %p300_p8 }
  0x20   : > { %304 = sbr.rel (%p301_p9) target bundleno = 8165 (0x1fe5), region = 104 }
  0x25   : > { %v353_v10 = vld [vmem:[%s4677_s1] sm:$0xff]  ;;  %v354_v11 = vld [vmem:[%s4677_s1 + $0x8] sm:$0xff]  ;;  %s307_s28 = sand.u32 1, %s2938_s18   ;;  %vm386_vm0 = vcmask 130048   ;;  %v2948_v26 = vmov 0.0   ;;  %v356_v29 = vld [vmem:[%s4677_s1 + $0x10] sm:$0xff] }
  0x26   : > { %v355_v12 = vpack.c.bf16 %v354_v11, %v353_v10  ;;  %s3046_s29 = sshll.u32 %s307_s28, 6  ;;  %v358_v13 = vld [vmem:[%s4677_s1 + $0x20] sm:$0xff]  ;;  %v359_v14 = vld [vmem:[%s4677_s1 + $0x28] sm:$0xff]  ;;  %s3055_s18 = sshll.u32 %s307_s28, 4  ;;  %v357_v30 = vld [vmem:[%s4677_s1 + $0x18] sm:$0xff]  ;;  %vm2949_vm1 = vmmov 0  }
  0x27   : > { %s309_s8 = scalar_lea.vmem [#allocation3], %s3046_s29  ;;  %v3058_v27 = vpack.c.bf16 %v359_v14, %v358_v13  ;;  %v3073_v31 = vpack.c.bf16 %v357_v30, %v356_v29  ;;  %s316_s13 = scalar_lea.vmem [#allocation4], %s3055_s18  ;;  %vm477_vm2 = vcmask 261120   ;;  %v2671_v34 = vld [vmem:[%s4678_s2] ss:$0 sm:$0xff]  ;;  %vm1158_vm4 = vcmask 48128  }
  0x28   : > { %2743 = vmatprep.subr.bf16.mxu0 %v355_v12  ;;  %2829 = vmatprep.subr.bf16.mxu1 %v355_v12  ;;  %v370_v15 = vld [vmem:[%s309_s8] sm:$0xff]  ;;  %v371_v16 = vld [vmem:[%s309_s8 + $0x8] sm:$0xff]  ;;  %v372_v20 = vld [vmem:[%s309_s8 + $0x10] sm:$0xff]  ;;  %s2950_s16 = smov 64   ;;  %s2951_s17 = smov 32  }
  0x29   : > { %v374_v17 = vld [vmem:[%s309_s8 + $0x20] sm:$0xff]  ;;  %2744 = vmatpush3.bf16.msra.mxu0 %v355_v12  ;;  %2830 = vmatpush3.bf16.msra.mxu1 %v355_v12  ;;  %v378_v18 = vpack.c.bf16 %v371_v16, %v370_v15  ;;  %v375_v19 = vld [vmem:[%s309_s8 + $0x28] sm:$0xff]  ;;  %v373_v21 = vld [vmem:[%s309_s8 + $0x18] sm:$0xff]  ;;  %s3287_s24 = scalar_lea.vmem [#allocation5], %s3046_s29  ;;  %p348_p10 = scmp.lt.s32.totalorder %s2999_s21, 1 }
  0x2a   : > { %v380_v22 = vpack.c.bf16 %v375_v19, %v374_v17  ;;  %v379_v23 = vpack.c.bf16 %v373_v21, %v372_v20  ;;  %v376_v24 = vld [vmem:[%s309_s8 + $0x30] sm:$0xff]  ;;  %v377_v25 = vld [vmem:[%s309_s8 + $0x38] sm:$0xff]  ;;  %2753 = vmatprep.subr.bf16.mxu1 %v2948_v26  ;;  %2769 = vmatprep.subr.bf16.mxu0 %v2948_v26  ;;  %s2705_s8 = sshll.u32 (%p3018_p5), %s2999_s21, 3 }
  0x2b   : > { %2745 = vmatprep.mubr.msk.bf16.mxu0 %vm386_vm0, %v378_v18  ;;  %v381_v28 = vpack.c.bf16 %v377_v25, %v376_v24  ;;  %v472_v32 = vld [vmem:[%s316_s13] sm:$0xff]  ;;  %v2676_v55 = vld [vmem:[%s316_s13 + $0x8] sm:$0xff]  ;;  %s2495_s10 = scalar_lea.vmem (%p3018_p5), %s4680_s4, %s2705_s8 }
  0x2c   : > { %2749 = vmatprep.mubr.msk.bf16.mxu1 %vm386_vm0, %v380_v22  ;;  %2746 = vmatmul.mubr.msk.bf16.vlgmr.msra.gmra.mxu0 %vm386_vm0, %v379_v23  ;;  %v476_v33 = vpack.c.bf16 %v472_v32, %v472_v32 }
  0x2d   : > { %2750 = vmatmul.mubr.msk.bf16.vlgmr.msra.gmra.mxu1 %vm386_vm0, %v381_v28  ;;  %2770 = vmatpush3.bf16.msra.mxu0 %v3058_v27 }
  0x2e   : > { %2754 = vmatpush3.bf16.msra.mxu1 %v3058_v27  ;;  %2757 = vmatprep.mubr.msk.bf16.mxu1 %vm2949_vm1, %v2948_v26 }
  0x2f   : > { %2755 = vmatprep.subr.bf16.mxu1 %v2948_v26  ;;  %2771 = vmatprep.subr.bf16.mxu0 %v2948_v26 }
  0x30   : > { %2773 = vmatprep.mubr.msk.bf16.mxu0 %vm2949_vm1, %v2948_v26 }
  0x31   : > { %2772 = vmatpush3.bf16.msra.mxu0 %v3073_v31 }
  0x32   : > { %2756 = vmatpush3.bf16.msra.mxu1 %v3073_v31  ;;  %2785 = vmatprep.subr.bf16.mxu0 %v2948_v26 }
  0x33   : > { %2761 = vmatprep.subr.bf16.mxu1 %v2948_v26 }
  0x35   : > { %2758 = vmatmul.mubr.msk.bf16.vlgmr.msra.gmra.mxu1 %vm477_vm2, %v476_v33 }
  0x36   : > { %2762 = vmatpush3.bf16.msra.mxu1 %v3058_v27  ;;  %2765 = vmatprep.mubr.msk.bf16.mxu1 %vm2949_vm1, %v2948_v26 }
  0x37   : > { %2763 = vmatprep.subr.bf16.mxu1 %v2948_v26 }
  0x3a   : > { %2764 = vmatpush3.bf16.msra.mxu1 %v3073_v31 }
  0x3b   : > { %2777 = vmatprep.subr.bf16.mxu1 %v2948_v26 }
  0xec   : > { %v2747_v35 = vpop.f32.mrf.mxu0 }
  0xed   : > { %v3098_v36 = vadd.f32 %v2747_v35, %v2671_v34  ;;  %v2751_v37 = vpop.f32.mrf.mxu1 }
  0xee   : > { %v3100_v38 = vadd.f32 %v2751_v37, %v2671_v34  ;;  %v433_v39 = vpop.f32.mrf.mxu0 }
  0xef   : > { %v449_v40 = vpop.f32.mrf.mxu1  ;;  %v434_v47 = vadd.f32 %v2671_v34, %v433_v39 }
  0xf0   : > { %v3102_v41 = vadd.f32 %v2671_v34, %v449_v40  ;;  %v2748_v42 = vpop.f32.mrf.mxu0 }
  0xf1   : > { %v3104_v43 = vadd.f32 %v2748_v42, %v2671_v34  ;;  %v2752_v44 = vpop.f32.mrf.mxu1 }
  0xf2   : > { %v3106_v45 = vadd.f32 %v2752_v44, %v2671_v34  ;;  %v436_v7 = vpop.f32.mrf.mxu0 }
  0xf3   : > { %v452_v46 = vpop.f32.mrf.mxu1  ;;  %v437_v8 = vadd.f32 %v2671_v34, %v436_v7 }
  0xf4   : > { %v3108_v48 = vadd.f32 %v2671_v34, %v452_v46 }
  0xf5   : > { %v515_v49 = vpop.f32.mrf.mxu1 }
  0xf6   : > { %v521_v50 = vadd.f32 %v515_v49, %v434_v47 }
  0xf7   : > { %v2759_v51 = vpop.f32.mrf.mxu1 }
  0xf8   : > { %2860 = vtanh.f32 %v521_v50  ;;  %v2678_v56 = vmul.f32 -1.442695, %v521_v50 }
  0xf9   : > { %v518_v52 = vpop.f32.mrf.mxu1 }
  0xfa   : > { %2862 = vpow2.f32 %v2678_v56 }
  0xfb   : > { %v2760_v53 = vpop.f32.mrf.mxu1 }
 0x105   : > { %v2861_v54 = vpop.eup %2860 }
 0x106   : > { %535 = vrot.lane.b32.xlu0 %v2861_v54, %s2950_s16 }
 0x107   : > { %v2863_v57 = vpop.eup %2862 }
 0x108   : > { %v525_v58 = vadd.f32 1.0, %v2863_v57 }
 0x10a   : > { %530 = vrot.lane.b32.xlu0 %v2676_v55, %s2951_s17  ;;  %2864 = vrcp.f32 %v525_v58 }
 0x117   : > { %v2865_v59 = vpop.eup %2864 }
 0x178   : > { %v536_v60 = vpop.permute.xlu0 %535 }
 0x179   : > { %v538_v61 = vmul.f32 %v2865_v59, %v536_v60 }
 0x17b   : > { %540 = vrot.lane.b32.xlu1 %v538_v61, %s2951_s17 }
 0x17c   : > { %v531_v62 = vpop.permute.xlu0 %530 }
 0x17d   : > { %v533_v63 = vmul.f32 %v2865_v59, %v531_v62 }
 0x1ed   : > { %v541_v0 = vpop.permute.xlu1 %540 }
 0x1ee   : > { %v543_v1 = vadd.f32 %v541_v0, %v533_v63 }
 0x1f0   : > { %2866 = vtanh.f32 %v543_v1 }
 0x1fd   : > { %v2867_v2 = vpop.eup %2866 }
 0x1fe   : > { %546 = vrot.lane.b32.xlu1 %v2867_v2, %s2950_s16 }
 0x270   : > { %v547_v3 = vpop.permute.xlu1 %546 }
 0x271   : > { %v3116_v4 = vmul.f32 %v2865_v59, %v547_v3 }
 0x273   : > { %v551_v5 = vpack.c.bf16 %v3116_v4, %v3116_v4 }
 0x275   : > { %553 = vrot.lane.b32.xlu0 %v551_v5, %s2951_s17 }
 0x2e7   : > { %v554_v6 = vpop.permute.xlu0 %553 }
 0x2e8   : > { %2766 = vmatmul.mubr.msk.bf16.vlgmr.msra.gmra.mxu1 %vm477_vm2, %v554_v6 }
 0x2e9   : > { %2778 = vmatpush3.bf16.msra.mxu1 %v3058_v27  ;;  %2781 = vmatprep.mubr.msk.bf16.mxu1 %vm2949_vm1, %v2948_v26 }
 0x2ea   : > { %2779 = vmatprep.subr.bf16.mxu1 %v2948_v26 }
 0x2ed   : > { %2780 = vmatpush3.bf16.msra.mxu1 %v3073_v31 }
 0x2ee   : > { %2793 = vmatprep.subr.bf16.mxu1 %v2948_v26 }
 0x3a8   : > { %v592_v9 = vpop.f32.mrf.mxu1 }
 0x3a9   : > { %v598_v10 = vadd.f32 %v592_v9, %v437_v8 }
 0x3aa   : > { %v2767_v11 = vpop.f32.mrf.mxu1 }
 0x3ab   : > { %2868 = vtanh.f32 %v598_v10  ;;  %v2680_v15 = vmul.f32 -1.442695, %v598_v10 }
 0x3ac   : > { %v595_v12 = vpop.f32.mrf.mxu1 }
 0x3ad   : > { %2870 = vpow2.f32 %v2680_v15 }
 0x3ae   : > { %v2768_v13 = vpop.f32.mrf.mxu1 }
 0x3b8   : > { %v2869_v14 = vpop.eup %2868 }
 0x3b9   : > { %608 = vrot.lane.b32.xlu1 %v2869_v14, %s2950_s16 }
 0x3ba   : > { %v2871_v16 = vpop.eup %2870 }
 0x3bb   : > { %v602_v17 = vadd.f32 1.0, %v2871_v16 }
 0x3bd   : > { %2872 = vrcp.f32 %v602_v17 }
 0x3ca   : > { %v2873_v18 = vpop.eup %2872 }
 0x3cb   : > { %v606_v21 = vmul.f32 %v2873_v18, %v543_v1 }
 0x42b   : > { %v609_v19 = vpop.permute.xlu1 %608 }
 0x42c   : > { %v611_v20 = vmul.f32 %v2873_v18, %v609_v19 }
 0x42e   : > { %613 = vrot.lane.b32.xlu0 %v611_v20, %s2951_s17 }
 0x4a0   : > { %v614_v22 = vpop.permute.xlu0 %613 }
 0x4a1   : > { %v616_v23 = vadd.f32 %v614_v22, %v606_v21 }
 0x4a3   : > { %2874 = vtanh.f32 %v616_v23 }
 0x4b0   : > { %v2875_v24 = vpop.eup %2874 }
 0x4b1   : > { %619 = vrot.lane.b32.xlu1 %v2875_v24, %s2950_s16 }
 0x523   : > { %v620_v25 = vpop.permute.xlu1 %619 }
 0x524   : > { %v3131_v28 = vmul.f32 %v2873_v18, %v620_v25 }
 0x526   : > { %v624_v29 = vpack.c.bf16 %v3131_v28, %v3131_v28 }
 0x528   : > { %626 = vrot.lane.b32.xlu0 %v624_v29, %s2951_s17 }
 0x59a   : > { %v627_v30 = vpop.permute.xlu0 %626 }
 0x59b   : > { %2774 = vmatmul.mubr.msk.bf16.vlgmr.msra.gmra.mxu0 %vm477_vm2, %v627_v30 }
 0x59c   : > { %2786 = vmatpush3.bf16.msra.mxu0 %v3058_v27  ;;  %2789 = vmatprep.mubr.msk.bf16.mxu0 %vm2949_vm1, %v2948_v26 }
 0x59d   : > { %2787 = vmatprep.subr.bf16.mxu0 %v2948_v26 }
 0x5a0   : > { %2788 = vmatpush3.bf16.msra.mxu0 %v3073_v31 }
 0x5a1   : > { %2801 = vmatprep.subr.bf16.mxu0 %v2948_v26 }
 0x65b   : > { %v665_v32 = vpop.f32.mrf.mxu0 }
 0x65c   : > { %v671_v33 = vadd.f32 %v665_v32, %v3098_v36 }
 0x65d   : > { %v2775_v34 = vpop.f32.mrf.mxu0 }
 0x65e   : > { %2876 = vtanh.f32 %v671_v33  ;;  %v2682_v40 = vmul.f32 -1.442695, %v671_v33 }
 0x65f   : > { %v668_v35 = vpop.f32.mrf.mxu0 }
 0x660   : > { %2878 = vpow2.f32 %v2682_v40 }
 0x661   : > { %v2776_v37 = vpop.f32.mrf.mxu0 }
 0x66b   : > { %v2877_v39 = vpop.eup %2876 }
 0x66c   : > { %681 = vrot.lane.b32.xlu1 %v2877_v39, %s2950_s16 }
 0x66d   : > { %v2879_v42 = vpop.eup %2878 }
 0x66e   : > { %v675_v44 = vadd.f32 1.0, %v2879_v42 }
 0x670   : > { %2880 = vrcp.f32 %v675_v44 }
 0x67d   : > { %v2881_v46 = vpop.eup %2880 }
 0x67e   : > { %v679_v50 = vmul.f32 %v2881_v46, %v616_v23 }
 0x6de   : > { %v682_v47 = vpop.permute.xlu1 %681 }
 0x6df   : > { %v684_v49 = vmul.f32 %v2881_v46, %v682_v47 }
 0x6e1   : > { %686 = vrot.lane.b32.xlu0 %v684_v49, %s2951_s17 }
 0x753   : > { %v687_v51 = vpop.permute.xlu0 %686 }
 0x754   : > { %v689_v36 = vadd.f32 %v687_v51, %v679_v50 }
 0x756   : > { %2882 = vtanh.f32 %v689_v36 }
 0x763   : > { %v2883_v52 = vpop.eup %2882 }
 0x764   : > { %692 = vrot.lane.b32.xlu1 %v2883_v52, %s2950_s16 }
 0x7d6   : > { %v693_v53 = vpop.permute.xlu1 %692 }
 0x7d7   : > { %v3147_v54 = vmul.f32 %v2881_v46, %v693_v53 }
 0x7d9   : > { %v697_v55 = vpack.c.bf16 %v3147_v54, %v3147_v54 }
 0x7db   : > { %699 = vrot.lane.b32.xlu0 %v697_v55, %s2951_s17 }
 0x84d   : > { %v700_v56 = vpop.permute.xlu0 %699 }
 0x84e   : > { %2782 = vmatmul.mubr.msk.bf16.vlgmr.msra.gmra.mxu1 %vm477_vm2, %v700_v56 }
 0x84f   : > { %2794 = vmatpush3.bf16.msra.mxu1 %v3058_v27  ;;  %2797 = vmatprep.mubr.msk.bf16.mxu1 %vm2949_vm1, %v2948_v26 }
 0x850   : > { %2795 = vmatprep.subr.bf16.mxu1 %v2948_v26 }
 0x853   : > { %2796 = vmatpush3.bf16.msra.mxu1 %v3073_v31 }
 0x854   : > { %2809 = vmatprep.subr.bf16.mxu1 %v2948_v26 }
 0x90e   : > { %v738_v57 = vpop.f32.mrf.mxu1 }
 0x90f   : > { %v744_v58 = vadd.f32 %v738_v57, %v3104_v43 }
 0x910   : > { %v2783_v59 = vpop.f32.mrf.mxu1 }
 0x911   : > { %2884 = vtanh.f32 %v744_v58  ;;  %v2684_v63 = vmul.f32 -1.442695, %v744_v58 }
 0x912   : > { %v741_v60 = vpop.f32.mrf.mxu1 }
 0x913   : > { %2886 = vpow2.f32 %v2684_v63 }
 0x914   : > { %v2784_v61 = vpop.f32.mrf.mxu1 }
 0x91e   : > { %v2885_v62 = vpop.eup %2884 }
 0x91f   : > { %754 = vrot.lane.b32.xlu1 %v2885_v62, %s2950_s16 }
 0x920   : > { %v2887_v0 = vpop.eup %2886 }
 0x921   : > { %v748_v1 = vadd.f32 1.0, %v2887_v0 }
 0x923   : > { %2888 = vrcp.f32 %v748_v1 }
 0x930   : > { %v2889_v2 = vpop.eup %2888 }
 0x931   : > { %v752_v6 = vmul.f32 %v2889_v2, %v689_v36 }
 0x991   : > { %v755_v3 = vpop.permute.xlu1 %754 }
 0x992   : > { %v757_v5 = vmul.f32 %v2889_v2, %v755_v3 }
 0x994   : > { %759 = vrot.lane.b32.xlu0 %v757_v5, %s2951_s17 }
 0xa06   : > { %v760_v7 = vpop.permute.xlu0 %759 }
 0xa07   : > { %v762_v43 = vadd.f32 %v760_v7, %v752_v6 }
 0xa09   : > { %2890 = vtanh.f32 %v762_v43 }
 0xa16   : > { %v2891_v8 = vpop.eup %2890 }
 0xa17   : > { %765 = vrot.lane.b32.xlu1 %v2891_v8, %s2950_s16  ;;  %v364_v8 = vld [vmem:[%s4677_s1 + $0x40] sm:$0xff] }
 0xa89   : > { %v766_v9 = vpop.permute.xlu1 %765 }
 0xa8a   : > { %v3163_v10 = vmul.f32 %v2889_v2, %v766_v9  ;;  %v365_v9 = vld [vmem:[%s4677_s1 + $0x48] sm:$0xff] }
 0xa8c   : > { %v770_v11 = vpack.c.bf16 %v3163_v10, %v3163_v10 }
 0xa8e   : > { %772 = vrot.lane.b32.xlu0 %v770_v11, %s2951_s17  ;;  %v367_v11 = vpack.c.bf16 %v365_v9, %v364_v8 }
 0xb00   : > { %v773_v12 = vpop.permute.xlu0 %772 }
 0xb01   : > { %2790 = vmatmul.mubr.msk.bf16.vlgmr.msra.gmra.mxu0 %vm477_vm2, %v773_v12 }
 0xb02   : > { %2802 = vmatpush3.bf16.msra.mxu0 %v3058_v27  ;;  %2805 = vmatprep.mubr.msk.bf16.mxu0 %vm2949_vm1, %v2948_v26 }
 0xb03   : > { %2803 = vmatprep.subr.bf16.mxu0 %v2948_v26 }
 0xb06   : > { %2804 = vmatpush3.bf16.msra.mxu0 %v3073_v31 }
 0xb07   : > { %2817 = vmatprep.subr.bf16.mxu0 %v367_v11 }
 0xbc1   : > { %v811_v13 = vpop.f32.mrf.mxu0 }
 0xbc2   : > { %v817_v14 = vadd.f32 %v811_v13, %v3102_v41  ;;  %v1061_v13 = vpack.c.bf16 %v3131_v28, %v3116_v4  ;;  %v1062_v28 = vpack.c.bf16 %v3163_v10, %v3147_v54  ;;  %v3242_v54 = vld [vmem:[%s4678_s2 + $0x3] ss:$0 sm:$0xff]  ;;  %v2952_v10 = vmov -10000.0  }
 0xbc3   : > { %v2791_v15 = vpop.f32.mrf.mxu0 }
 0xbc4   : > { %2892 = vtanh.f32 %v817_v14  ;;  %v2686_v19 = vmul.f32 -1.442695, %v817_v14  ;;  %v362_v14 = vld [vmem:[%s4677_s1 + $0x30] sm:$0xff]  ;;  %v363_v15 = vld [vmem:[%s4677_s1 + $0x38] sm:$0xff] }
 0xbc5   : > { %v814_v16 = vpop.f32.mrf.mxu0 }
 0xbc6   : > { %2894 = vpow2.f32 %v2686_v19  ;;  %v366_v16 = vpack.c.bf16 %v363_v15, %v362_v14 }
 0xbc7   : > { %v2792_v17 = vpop.f32.mrf.mxu0 }
 0xbd1   : > { %v2893_v18 = vpop.eup %2892 }
 0xbd2   : > { %827 = vrot.lane.b32.xlu1 %v2893_v18, %s2950_s16 }
 0xbd3   : > { %v2895_v20 = vpop.eup %2894 }
 0xbd4   : > { %v821_v21 = vadd.f32 1.0, %v2895_v20 }
 0xbd6   : > { %2896 = vrcp.f32 %v821_v21 }
 0xbe3   : > { %v2897_v22 = vpop.eup %2896 }
 0xbe4   : > { %v825_v25 = vmul.f32 %v2897_v22, %v762_v43 }
 0xc44   : > { %v828_v23 = vpop.permute.xlu1 %827 }
 0xc45   : > { %v830_v24 = vmul.f32 %v2897_v22, %v828_v23 }
 0xc47   : > { %832 = vrot.lane.b32.xlu0 %v830_v24, %s2951_s17  ;;  %v3237_v24 = vld [vmem:[%s4678_s2 + $0x1] ss:$0 sm:$0xff] }
 0xcb9   : > { %v833_v29 = vpop.permute.xlu0 %832 }
 0xcba   : > { %v835_v41 = vadd.f32 %v833_v29, %v825_v25 }
 0xcbc   : > { %2898 = vtanh.f32 %v835_v41 }
 0xcc9   : > { %v2899_v30 = vpop.eup %2898 }
 0xcca   : > { %838 = vrot.lane.b32.xlu1 %v2899_v30, %s2950_s16 }
 0xd3c   : > { %v839_v32 = vpop.permute.xlu1 %838 }
 0xd3d   : > { %v3178_v33 = vmul.f32 %v2897_v22, %v839_v32  ;;  %v1167_v22 = vlaneseq }
 0xd3f   : > { %v843_v34 = vpack.c.bf16 %v3178_v33, %v3178_v33  ;;  %v3232_v23 = vand.u32 127, %v1167_v22 }
 0xd41   : > { %845 = vrot.lane.b32.xlu0 %v843_v34, %s2951_s17  ;;  %vm1175_vm3 = vcmp.eq.s32.totalorder %v3232_v23, 4  ;;  %v3260_v34 = vld [vmem:[%s4678_s2 + $0x4] ss:$0 sm:$0xff]  ;;  %vm1202_vm5 = vcmp.eq.s32.totalorder %v3232_v23, 0  ;;  %vm1230_vm6 = vcmp.eq.s32.totalorder %v3232_v23, 1  ;;  %vm1258_vm7 = vcmp.eq.s32.totalorder %v3232_v23, 2 }
 0xd42   : > { %v1176_v25 = vsel %vm1175_vm3, 0.0, %v2952_v10  ;;  %vm1286_vm8 = vcmp.eq.s32.totalorder %v3232_v23, 3  ;;  %vm1341_vm9 = vcmp.eq.s32.totalorder %v3232_v23, 5 }
 0xd43   : > { %v3248_v29 = vadd.f32 %v3237_v24, %v1176_v25 }
 0xd45   : > { %4745 = vst [vmem:[#allocation6_spill] sm:$0xff] %v3248_v29  ;;  %v1182_v30 = vsel %vm1158_vm4, %v3248_v29, -inf }
 0xdb3   : > { %v846_v35 = vpop.permute.xlu0 %845 }
 0xdb4   : > { %2798 = vmatmul.mubr.msk.bf16.vlgmr.msra.gmra.mxu1 %vm477_vm2, %v846_v35  ;;  %v3263_v35 = vadd.f32 %v3260_v34, %v1176_v25 }
 0xdb5   : > { %2810 = vmatpush3.bf16.msra.mxu1 %v3058_v27  ;;  %2813 = vmatprep.mubr.msk.bf16.mxu1 %vm2949_vm1, %v2948_v26 }
 0xdb6   : > { %2811 = vmatprep.subr.bf16.mxu1 %v2948_v26  ;;  %4747 = vst [vmem:[#allocation8_spill] sm:$0xff] %v3263_v35 }
 0xdb9   : > { %2812 = vmatpush3.bf16.msra.mxu1 %v3073_v31 }
 0xe74   : > { %v884_v37 = vpop.f32.mrf.mxu1 }
 0xe75   : > { %v890_v39 = vadd.f32 %v884_v37, %v3108_v48  ;;  %v1266_v37 = vsel %vm1158_vm4, %v3263_v35, -inf }
 0xe76   : > { %v2799_v40 = vpop.f32.mrf.mxu1 }
 0xe77   : > { %2900 = vtanh.f32 %v890_v39  ;;  %v2688_v47 = vmul.f32 -1.442695, %v890_v39  ;;  %v3270_v39 = vld [vmem:[%s4678_s2 + $0x6] ss:$0 sm:$0xff] }
 0xe78   : > { %v887_v42 = vpop.f32.mrf.mxu1  ;;  %v3273_v40 = vadd.f32 %v3270_v39, %v1176_v25 }
 0xe79   : > { %2902 = vpow2.f32 %v2688_v47 }
 0xe7a   : > { %v2800_v44 = vpop.f32.mrf.mxu1  ;;  %4748 = vst [vmem:[#allocation9_spill] sm:$0xff] %v3273_v40  ;;  %v1321_v42 = vsel %vm1158_vm4, %v3273_v40, -inf }
 0xe84   : > { %v2901_v46 = vpop.eup %2900 }
 0xe85   : > { %900 = vrot.lane.b32.xlu1 %v2901_v46, %s2950_s16 }
 0xe86   : > { %v2903_v27 = vpop.eup %2902 }
 0xe87   : > { %v894_v49 = vadd.f32 1.0, %v2903_v27  ;;  %v3281_v27 = vld [vmem:[%s4678_s2 + $0x7] ss:$0 sm:$0xff] }
 0xe89   : > { %2904 = vrcp.f32 %v894_v49 }
 0xe96   : > { %v2905_v50 = vpop.eup %2904 }
 0xe97   : > { %v898_v31 = vmul.f32 %v2905_v50, %v835_v41  ;;  %v3251_v41 = vadd.f32 %v3242_v54, %v1176_v25 }
 0xe99   : > { %4746 = vst [vmem:[#allocation7_spill] sm:$0xff] %v3251_v41  ;;  %v1238_v32 = vsel %vm1158_vm4, %v3251_v41, -inf }
 0xef7   : > { %v901_v51 = vpop.permute.xlu1 %900 }
 0xef8   : > { %v903_v26 = vmul.f32 %v2905_v50, %v901_v51 }
 0xefa   : > { %905 = vrot.lane.b32.xlu0 %v903_v26, %s2951_s17 }
 0xf6c   : > { %v906_v36 = vpop.permute.xlu0 %905 }
 0xf6d   : > { %v908_v48 = vadd.f32 %v906_v36, %v898_v31 }
 0xf6f   : > { %2906 = vtanh.f32 %v908_v48 }
 0xf7c   : > { %v2907_v52 = vpop.eup %2906 }
 0xf7d   : > { %911 = vrot.lane.b32.xlu1 %v2907_v52, %s2950_s16 }
 0xfef   : > { %v912_v53 = vpop.permute.xlu1 %911 }
 0xff0   : > { %v3193_v55 = vmul.f32 %v2905_v50, %v912_v53 }
 0xff2   : > { %v916_v56 = vpack.c.bf16 %v3193_v55, %v3193_v55 }
 0xff4   : > { %918 = vrot.lane.b32.xlu0 %v916_v56, %s2951_s17 }
0x1066   : > { %v919_v57 = vpop.permute.xlu0 %918 }
0x1067   : > { %2806 = vmatmul.mubr.msk.bf16.vlgmr.msra.gmra.mxu0 %vm477_vm2, %v919_v57  ;;  %v3311_v57 = vld [vmem:[%s4678_s2 + $0x2] ss:$0 sm:$0xff] }
0x1068   : > { %2818 = vmatpush3.bf16.msra.mxu0 %v367_v11 }
0x1069   : > { %2819 = vmatprep.subr.bf16.mxu0 %v366_v16 }
0x106c   : > { %2820 = vmatpush3.bf16.msra.mxu0 %v366_v16 }
0x1127   : > { %v957_v58 = vpop.f32.mrf.mxu0 }
0x1128   : > { %v963_v59 = vadd.f32 %v957_v58, %v3100_v38  ;;  %v3314_v58 = vadd.f32 %v3311_v57, %v1176_v25 }
0x1129   : > { %v2807_v60 = vpop.f32.mrf.mxu0 }
0x112a   : > { %2908 = vtanh.f32 %v963_v59  ;;  %v2690_v0 = vmul.f32 -1.442695, %v963_v59  ;;  %4749 = vst [vmem:[#allocation10_spill] sm:$0xff] %v3314_v58  ;;  %v3319_v59 = vld [vmem:[%s4678_s2 + $0x5] ss:$0 sm:$0xff]  ;;  %v1210_v60 = vsel %vm1158_vm4, %v3314_v58, -inf }
0x112b   : > { %v960_v61 = vpop.f32.mrf.mxu0 }
0x112c   : > { %2910 = vpow2.f32 %v2690_v0  ;;  %v3324_v61 = vadd.f32 %v3319_v59, %v1176_v25 }
0x112d   : > { %v2808_v62 = vpop.f32.mrf.mxu0 }
0x112e   : > { %4750 = vst [vmem:[#allocation11_spill] sm:$0xff] %v3324_v61  ;;  %v1294_v62 = vsel %vm1158_vm4, %v3324_v61, -inf }
0x1137   : > { %v2909_v63 = vpop.eup %2908 }
0x1138   : > { %973 = vrot.lane.b32.xlu1 %v2909_v63, %s2950_s16 }
0x1139   : > { %v2911_v1 = vpop.eup %2910 }
0x113a   : > { %v967_v2 = vadd.f32 1.0, %v2911_v1 }
0x113c   : > { %2912 = vrcp.f32 %v967_v2 }
0x1149   : > { %v2913_v3 = vpop.eup %2912 }
0x114a   : > { %v971_v7 = vmul.f32 %v2913_v3, %v908_v48 }
0x11aa   : > { %v974_v5 = vpop.permute.xlu1 %973 }
0x11ab   : > { %v976_v6 = vmul.f32 %v2913_v3, %v974_v5 }
0x11ad   : > { %978 = vrot.lane.b32.xlu0 %v976_v6, %s2951_s17 }
0x121f   : > { %v979_v43 = vpop.permute.xlu0 %978 }
0x1220   : > { %v3202_v38 = vadd.f32 %v979_v43, %v971_v7 }
0x1222   : > { %2914 = vtanh.f32 %v3202_v38 }
0x122f   : > { %v2915_v12 = vpop.eup %2914 }
0x1230   : > { %984 = vrot.lane.b32.xlu1 %v2915_v12, %s2950_s16 }
0x1234   : > { %1073 = vrot.lane.b32.xlu1 %v1061_v13, %s2951_s17 }
0x12a2   : > { %v985_v17 = vpop.permute.xlu1 %984 }
0x12a3   : > { %v3221_v18 = vmul.f32 %v2913_v3, %v985_v17 }
0x12a5   : > { %v989_v19 = vpack.c.bf16 %v3221_v18, %v3221_v18 }
0x12a6   : > { %v1074_v4 = vpop.permute.xlu1 %1073 }
0x12a7   : > { %991 = vrot.lane.b32.xlu0 %v989_v19, %s2951_s17  ;;  %2821 = vmatprep.mubr.msk.bf16.mxu0 %vm477_vm2, %v1074_v4 }
0x12ab   : > { %1075 = vrot.lane.b32.xlu0 %v1062_v28, %s2951_s17 }
0x12ca   : > { %1183 = vmax.xlane.f32.xlu0 %v1182_v30 }
0x12ce   : > { %1239 = vmax.xlane.f32.xlu0 %v1238_v32 }
0x12d2   : > { %1267 = vmax.xlane.f32.xlu0 %v1266_v37 }
0x12d6   : > { %1322 = vmax.xlane.f32.xlu0 %v1321_v42  ;;  %v1063_v42 = vpack.c.bf16 %v3193_v55, %v3178_v33 }
0x1319   : > { %v992_v20 = vpop.permute.xlu0 %991 }
0x131a   : > { %2814 = vmatmul.mubr.msk.bf16.vlgmr.msra.gmra.mxu1 %vm477_vm2, %v992_v20 }
0x131d   : > { %v1076_v21 = vpop.permute.xlu0 %1075 }
0x131e   : > { %2822 = vmatmul.mubr.msk.bf16.vlgmr.msra.gmra.mxu0 %vm477_vm2, %v1076_v21 }
0x1353   : > { %v3332_v6 = vpop.xlane.xlu0 %1183 }
0x1354   : > { %4751 = vst [vmem:[#allocation12_spill] sm:$0xff] %v3332_v6  ;;  %v1203_v8 = vsel %vm1202_vm5, %v3332_v6, 0.0 }
0x1357   : > { %v3334_v7 = vpop.xlane.xlu0 %1239 }
0x1358   : > { %4752 = vst [vmem:[#allocation13_spill] sm:$0xff] %v3334_v7 }
0x135b   : > { %v3337_v43 = vpop.xlane.xlu0 %1267 }
0x135c   : > { %4753 = vst [vmem:[#allocation14_spill] sm:$0xff] %v3337_v43 }
0x135f   : > { %v3357_v14 = vpop.xlane.xlu0 %1322 }
0x1360   : > { %4755 = vst [vmem:[#allocation16_spill] sm:$0xff] %v3357_v14 }
0x13da   : > { %v1030_v44 = vpop.f32.mrf.mxu1 }
0x13db   : > { %v1036_v46 = vadd.f32 %v1030_v44, %v3106_v45 }
0x13dc   : > { %v2815_v47 = vpop.f32.mrf.mxu1 }
0x13dd   : > { %2916 = vtanh.f32 %v1036_v46  ;;  %v2692_v63 = vmul.f32 -1.442695, %v1036_v46 }
0x13de   : > { %v1033_v49 = vpop.f32.mrf.mxu1  ;;  %v2823_v50 = vpop.f32.mrf.mxu0 }
0x13df   : > { %v3284_v51 = vadd.f32 %v2823_v50, %v3281_v27  ;;  %2918 = vpow2.f32 %v2692_v63 }
0x13e0   : > { %v2816_v26 = vpop.f32.mrf.mxu1  ;;  %v1127_v31 = vpop.f32.mrf.mxu0 }
0x13e1   : > { %1161 = vst.msk [vmem:[%s3287_s24 + $0x10] sm:$0xff] %vm1158_vm4, %v3284_v51  ;;  %v1128_v45 = vadd.f32 %v3281_v27, %v1127_v31 }
0x13e2   : > { %v2824_v36 = vpop.f32.mrf.mxu0 }
0x13e3   : > { %1159 = vst.msk [vmem:[%s3287_s24] sm:$0xff] %vm1158_vm4, %v1128_v45  ;;  %v3296_v48 = vadd.f32 %v2824_v36, %v3281_v27 }
0x13e4   : > { %v1130_v52 = vpop.f32.mrf.mxu0 }
0x13e5   : > { %1162 = vst.msk [vmem:[%s3287_s24 + $0x18] sm:$0xff] %vm1158_vm4, %v3296_v48  ;;  %v3302_v53 = vadd.f32 %v3281_v27, %v1130_v52 }
0x13e7   : > { %1160 = vst.msk [vmem:[%s3287_s24 + $0x8] sm:$0xff] %vm1158_vm4, %v3302_v53 }
0x13ea   : > { %v2917_v56 = vpop.eup %2916 }
0x13eb   : > { %1046 = vrot.lane.b32.xlu1 %v2917_v56, %s2950_s16 }
0x13ec   : > { %v2919_v0 = vpop.eup %2918 }
0x13ed   : > { %v1040_v1 = vadd.f32 1.0, %v2919_v0 }
0x13ef   : > { %2920 = vrcp.f32 %v1040_v1 }
0x13fc   : > { %v3328_v2 = vpop.eup %2920 }
0x13fd   : > { %v1044_v44 = vmul.f32 %v3328_v2, %v3202_v38 }
0x140f   : > { %1211 = vmax.xlane.f32.xlu1 %v1210_v60 }
0x1413   : > { %1295 = vmax.xlane.f32.xlu1 %v1294_v62 }
0x145d   : > { %v1047_v3 = vpop.permute.xlu1 %1046 }
0x145e   : > { %v1049_v5 = vmul.f32 %v3328_v2, %v1047_v3 }
0x1460   : > { %1051 = vrot.lane.b32.xlu1 %v1049_v5, %s2951_s17 }
0x1498   : > { %v3344_v9 = vpop.xlane.xlu1 %1211 }
0x1499   : > { %4754 = vst [vmem:[#allocation15_spill] sm:$0xff] %v3344_v9  ;;  %v1231_v11 = vsel %vm1230_vm6, %v3344_v9, %v1203_v8 }
0x149a   : > { %v1259_v12 = vsel %vm1258_vm7, %v3334_v7, %v1231_v11 }
0x149b   : > { %v1287_v13 = vsel %vm1286_vm8, %v3337_v43, %v1259_v12 }
0x149c   : > { %v3359_v15 = vpop.xlane.xlu1 %1295 }
0x149d   : > { %4756 = vst [vmem:[#allocation17_spill] sm:$0xff] %v3359_v15  ;;  %v1314_v16 = vsel %vm1175_vm3, %v3359_v15, %v1287_v13 }
0x149e   : > { %v1342_v17 = vsel %vm1341_vm9, %v3357_v14, %v1314_v16 }
0x149f   : > { %v1344_v19 = vadd.f32 %v1342_v17, %v1128_v45 }
0x14a1   : > { %v3368_v4 = vadd.f32 %v3237_v24, %v1344_v19  ;;  %v3371_v28 = vadd.f32 %v3242_v54, %v1344_v19  ;;  %v3378_v22 = vadd.f32 %v3311_v57, %v1344_v19  ;;  %v3381_v10 = vadd.f32 %v3319_v59, %v1344_v19 }
0x14a2   : > { %v3388_v32 = vadd.f32 %v3270_v39, %v1344_v19  ;;  %v3399_v50 = vadd.f32 %v3260_v34, %v1344_v19 }
0x14a3   : > { %4757 = vst [vmem:[#allocation18_spill] sm:$0xff] %v3368_v4  ;;  %4758 = vst [vmem:[#allocation19_spill] sm:$0xff] %v3371_v28  ;;  %v1346_v20 = vsel %vm1158_vm4, %v3368_v4, -inf  ;;  %v1392_v21 = vsel %vm1158_vm4, %v3371_v28, -inf  ;;  %v1369_v25 = vsel %vm1158_vm4, %v3378_v22, -inf  ;;  %v1438_v30 = vsel %vm1158_vm4, %v3381_v10, -inf }
0x14a4   : > { %4759 = vst [vmem:[#allocation20_spill] sm:$0xff] %v3378_v22  ;;  %4760 = vst [vmem:[#allocation21_spill] sm:$0xff] %v3381_v10  ;;  %1347 = vmax.xlane.f32.xlu0 %v1346_v20  ;;  %1393 = vmax.xlane.f32.xlu1 %v1392_v21  ;;  %v1461_v37 = vsel %vm1158_vm4, %v3388_v32, -inf  ;;  %v1415_v26 = vsel %vm1158_vm4, %v3399_v50, -inf }
0x14a5   : > { %4761 = vst [vmem:[#allocation22_spill] sm:$0xff] %v3388_v32  ;;  %4762 = vst [vmem:[#allocation23_spill] sm:$0xff] %v3399_v50 }
0x14a8   : > { %1370 = vmax.xlane.f32.xlu0 %v1369_v25  ;;  %1439 = vmax.xlane.f32.xlu1 %v1438_v30 }
0x14ac   : > { %1462 = vmax.xlane.f32.xlu1 %v1461_v37 }
0x14bd   : > { %1077 = vrot.lane.b32.xlu1 %v1063_v42, %s2951_s17 }
0x14d2   : > { %v1052_v46 = vpop.permute.xlu1 %1051 }
0x14d3   : > { %v1054_v47 = vadd.f32 %v1052_v46, %v1044_v44 }
0x14d5   : > { %2922 = vtanh.f32 %v1054_v47 }
0x14e2   : > { %v2923_v49 = vpop.eup %2922 }
0x14e3   : > { %1057 = vrot.lane.b32.xlu0 %v2923_v49, %s2950_s16  ;;  %s349_s16 = scalar_select %p348_p10, %s2999_s21, 1 }
0x1502   : > { %1416 = vmax.xlane.f32.xlu0 %v1415_v26 }
0x152d   : > { %v3403_v31 = vpop.xlane.xlu1 %1393  ;;  %v3410_v45 = vpop.xlane.xlu0 %1347 }
0x152e   : > { %4763 = vst [vmem:[#allocation24_spill] sm:$0xff] %v3403_v31  ;;  %4766 = vst [vmem:[#allocation27_spill] sm:$0xff] %v3410_v45  ;;  %v1366_v52 = vsel %vm1202_vm5, %v3410_v45, 0.0 }
0x1531   : > { %v3405_v33 = vpop.xlane.xlu1 %1439  ;;  %v3412_v36 = vpop.xlane.xlu0 %1370 }
0x1532   : > { %4764 = vst [vmem:[#allocation25_spill] sm:$0xff] %v3405_v33  ;;  %4767 = vst [vmem:[#allocation28_spill] sm:$0xff] %v3412_v36  ;;  %v1389_v60 = vsel %vm1230_vm6, %v3412_v36, %v1366_v52 }
0x1533   : > { %v1412_v62 = vsel %vm1258_vm7, %v3403_v31, %v1389_v60 }
0x1535   : > { %v3407_v55 = vpop.xlane.xlu1 %1462 }
0x1536   : > { %4765 = vst [vmem:[#allocation26_spill] sm:$0xff] %v3407_v55 }
0x1539   : > { %v1078_v38 = vpop.permute.xlu1 %1077 }
0x153a   : > { %2825 = vmatprep.mubr.msk.bf16.mxu0 %vm477_vm2, %v1078_v38 }
0x1555   : > { %v1058_v56 = vpop.permute.xlu0 %1057 }
0x1556   : > { %v1060_v25 = vmul.f32 %v3328_v2, %v1058_v56 }
0x1558   : > { %v1064_v30 = vpack.c.bf16 %v1060_v25, %v3221_v18 }
0x158b   : > { %v3423_v63 = vpop.xlane.xlu0 %1416 }
0x158c   : > { %4768 = vst [vmem:[#allocation29_spill] sm:$0xff] %v3423_v63  ;;  %v1435_v0 = vsel %vm1286_vm8, %v3423_v63, %v1412_v62 }
0x158d   : > { %v1458_v1 = vsel %vm1175_vm3, %v3405_v33, %v1435_v0 }
0x158e   : > { %v1481_v3 = vsel %vm1341_vm9, %v3407_v55, %v1458_v1 }
0x158f   : > { %v1483_v5 = vadd.f32 %v1481_v3, %v3302_v53 }
0x1591   : > { %v3436_v8 = vadd.f32 %v3311_v57, %v1483_v5  ;;  %v3439_v11 = vadd.f32 %v3237_v24, %v1483_v5  ;;  %v3446_v16 = vadd.f32 %v3260_v34, %v1483_v5  ;;  %v3449_v17 = vadd.f32 %v3242_v54, %v1483_v5 }
0x1592   : > { %v3456_v20 = vadd.f32 %v3319_v59, %v1483_v5  ;;  %v3464_v37 = vadd.f32 %v3270_v39, %v1483_v5 }
0x1593   : > { %4769 = vst [vmem:[#allocation30_spill] sm:$0xff] %v3436_v8  ;;  %4770 = vst [vmem:[#allocation31_spill] sm:$0xff] %v3439_v11  ;;  %v1508_v12 = vsel %vm1158_vm4, %v3436_v8, -inf  ;;  %v1485_v13 = vsel %vm1158_vm4, %v3439_v11, -inf  ;;  %v1554_v53 = vsel %vm1158_vm4, %v3446_v16, -inf  ;;  %v1531_v19 = vsel %vm1158_vm4, %v3449_v17, -inf }
0x1594   : > { %4771 = vst [vmem:[#allocation32_spill] sm:$0xff] %v3446_v16  ;;  %4772 = vst [vmem:[#allocation33_spill] sm:$0xff] %v3449_v17  ;;  %1509 = vmax.xlane.f32.xlu0 %v1508_v12  ;;  %1486 = vmax.xlane.f32.xlu1 %v1485_v13  ;;  %v1577_v21 = vsel %vm1158_vm4, %v3456_v20, -inf  ;;  %v1600_v42 = vsel %vm1158_vm4, %v3464_v37, -inf }
0x1595   : > { %4773 = vst [vmem:[#allocation34_spill] sm:$0xff] %v3456_v20  ;;  %4774 = vst [vmem:[#allocation35_spill] sm:$0xff] %v3464_v37 }
0x1598   : > { %1555 = vmax.xlane.f32.xlu0 %v1554_v53  ;;  %1532 = vmax.xlane.f32.xlu1 %v1531_v19 }
0x159c   : > { %1578 = vmax.xlane.f32.xlu1 %v1577_v21 }
0x15ae   : > { %1079 = vrot.lane.b32.xlu0 %v1064_v30, %s2951_s17  ;;  %s2670_s17 = sshll.u32 %s349_s16, 3 }
0x15af   : > { %s351_s7 = scalar_lea.vmem %s4681_s5, %s2670_s17 }
0x15cd   : > { %1601 = vmax.xlane.f32.xlu0 %v1600_v42 }
0x161d   : > { %v3468_v44 = vpop.xlane.xlu0 %1509  ;;  %v3473_v49 = vpop.xlane.xlu1 %1486 }
0x161e   : > { %4775 = vst [vmem:[#allocation36_spill] sm:$0xff] %v3468_v44  ;;  %4777 = vst [vmem:[#allocation38_spill] sm:$0xff] %v3473_v49  ;;  %v1505_v18 = vsel %vm1202_vm5, %v3473_v49, 0.0 }
0x161f   : > { %v1528_v26 = vsel %vm1230_vm6, %v3468_v44, %v1505_v18 }
0x1621   : > { %v3470_v46 = vpop.xlane.xlu0 %1555  ;;  %v3475_v2 = vpop.xlane.xlu1 %1532 }
0x1622   : > { %4776 = vst [vmem:[#allocation37_spill] sm:$0xff] %v3470_v46  ;;  %4778 = vst [vmem:[#allocation39_spill] sm:$0xff] %v3475_v2  ;;  %v1551_v38 = vsel %vm1258_vm7, %v3475_v2, %v1528_v26 }
0x1623   : > { %v1574_v56 = vsel %vm1286_vm8, %v3470_v46, %v1551_v38 }
0x1625   : > { %v1080_v47 = vpop.permute.xlu0 %1079  ;;  %v3486_v52 = vpop.xlane.xlu1 %1578 }
0x1626   : > { %2826 = vmatmul.mubr.msk.bf16.gmra.mxu0 %vm477_vm2, %v1080_v47  ;;  %4779 = vst [vmem:[#allocation40_spill] sm:$0xff] %v3486_v52  ;;  %v1597_v60 = vsel %vm1175_vm3, %v3486_v52, %v1574_v56 }
0x1656   : > { %v3494_v62 = vpop.xlane.xlu0 %1601 }
0x1657   : > { %4780 = vst [vmem:[#allocation41_spill] sm:$0xff] %v3494_v62  ;;  %v1620_v0 = vsel %vm1341_vm9, %v3494_v62, %v1597_v60 }
0x1658   : > { %v1622_v1 = vadd.f32 %v1620_v0, %v3284_v51 }
0x165a   : > { %v3501_v3 = vadd.f32 %v3311_v57, %v1622_v1  ;;  %v3504_v5 = vadd.f32 %v3237_v24, %v1622_v1  ;;  %v3511_v53 = vadd.f32 %v3260_v34, %v1622_v1  ;;  %v3514_v19 = vadd.f32 %v3242_v54, %v1622_v1 }
0x165b   : > { %v3521_v25 = vadd.f32 %v3270_v39, %v1622_v1  ;;  %v3524_v30 = vadd.f32 %v3319_v59, %v1622_v1 }
0x165c   : > { %4781 = vst [vmem:[#allocation42_spill] sm:$0xff] %v3504_v5  ;;  %v1647_v12 = vsel %vm1158_vm4, %v3501_v3, -inf  ;;  %v1624_v13 = vsel %vm1158_vm4, %v3504_v5, -inf  ;;  %4782 = vst [vmem:[#allocation43_spill] sm:$0xff] %v3511_v53  ;;  %v1693_v51 = vsel %vm1158_vm4, %v3511_v53, -inf  ;;  %v1670_v21 = vsel %vm1158_vm4, %v3514_v19, -inf }
0x165d   : > { %4783 = vst [vmem:[#allocation44_spill] sm:$0xff] %v3514_v19  ;;  %1648 = vmax.xlane.f32.xlu0 %v1647_v12  ;;  %1625 = vmax.xlane.f32.xlu1 %v1624_v13  ;;  %4784 = vst [vmem:[#allocation45_spill] sm:$0xff] %v3521_v25  ;;  %v1739_v42 = vsel %vm1158_vm4, %v3521_v25, -inf  ;;  %v1716_v47 = vsel %vm1158_vm4, %v3524_v30, -inf }
0x165e   : > { %4785 = vst [vmem:[#allocation46_spill] sm:$0xff] %v3524_v30 }
0x1661   : > { %1694 = vmax.xlane.f32.xlu0 %v1693_v51  ;;  %1671 = vmax.xlane.f32.xlu1 %v1670_v21 }
0x1665   : > { %1740 = vmax.xlane.f32.xlu0 %v1739_v42  ;;  %1717 = vmax.xlane.f32.xlu1 %v1716_v47 }
0x16e6   : > { %v2827_v18 = vpop.f32.mrf.mxu0  ;;  %v3530_v26 = vpop.xlane.xlu0 %1648 }
0x16e7   : > { %v3533_v38 = vadd.f32 %v2827_v18, %v3281_v27  ;;  %v3535_v56 = vpop.xlane.xlu1 %1625 }
0x16e8   : > { %4786 = vst [vmem:[#allocation47_spill] sm:$0xff] %v3535_v56  ;;  %v1644_v60 = vsel %vm1202_vm5, %v3535_v56, 0.0  ;;  %v1143_v0 = vpop.f32.mrf.mxu0 }
0x16e9   : > { %1165 = vst.msk [vmem:[%s3287_s24 + $0x30] sm:$0xff] %vm1158_vm4, %v3533_v38  ;;  %v1144_v1 = vadd.f32 %v3281_v27, %v1143_v0  ;;  %v1667_v21 = vsel %vm1230_vm6, %v3530_v26, %v1644_v60 }
0x16ea   : > { %v2828_v12 = vpop.f32.mrf.mxu0  ;;  %v3544_v13 = vpop.xlane.xlu0 %1694 }
0x16eb   : > { %4787 = vst [vmem:[#allocation48_spill] sm:$0xff] %v3544_v13  ;;  %1163 = vst.msk [vmem:[%s3287_s24 + $0x20] sm:$0xff] %vm1158_vm4, %v1144_v1  ;;  %v3549_v51 = vadd.f32 %v2828_v12, %v3281_v27  ;;  %v3554_v42 = vpop.xlane.xlu1 %1671 }
0x16ec   : > { %4788 = vst [vmem:[#allocation49_spill] sm:$0xff] %v3554_v42  ;;  %v1690_v47 = vsel %vm1258_vm7, %v3554_v42, %v1667_v21  ;;  %v1146_v18 = vpop.f32.mrf.mxu0 }
0x16ed   : > { %1166 = vst.msk [vmem:[%s3287_s24 + $0x38] sm:$0xff] %vm1158_vm4, %v3549_v51  ;;  %v3563_v0 = vadd.f32 %v3281_v27, %v1146_v18  ;;  %v1713_v60 = vsel %vm1286_vm8, %v3544_v13, %v1690_v47 }
0x16ee   : > { %v3565_v40 = vpop.xlane.xlu0 %1740 }
0x16ef   : > { %4789 = vst [vmem:[#allocation50_spill] sm:$0xff] %v3565_v40  ;;  %1164 = vst.msk [vmem:[%s3287_s24 + $0x28] sm:$0xff] %vm1158_vm4, %v3563_v0  ;;  %v3573_v12 = vpop.xlane.xlu1 %1717 }
0x16f0   : > { %4790 = vst [vmem:[#allocation51_spill] sm:$0xff] %v3573_v12  ;;  %v1736_v21 = vsel %vm1175_vm3, %v3573_v12, %v1713_v60 }
0x16f1   : > { %v1759_v27 = vsel %vm1341_vm9, %v3565_v40, %v1736_v21 }
0x16f2   : > { %v1761_v18 = vadd.f32 %v1759_v27, %v3296_v48 }
0x16f4   : > { %v3583_v14 = vadd.f32 %v3311_v57, %v1761_v18  ;;  %v3586_v61 = vadd.f32 %v3237_v24, %v1761_v18  ;;  %v3593_v60 = vadd.f32 %v3260_v34, %v1761_v18  ;;  %v3596_v35 = vadd.f32 %v3242_v54, %v1761_v18 }
0x16f5   : > { %v3603_v27 = vadd.f32 %v3270_v39, %v1761_v18  ;;  %v3606_v43 = vadd.f32 %v3319_v59, %v1761_v18 }
0x16f6   : > { %v1786_v47 = vsel %vm1158_vm4, %v3583_v14, -inf  ;;  %v1763_v15 = vsel %vm1158_vm4, %v3586_v61, -inf  ;;  %v1832_v48 = vsel %vm1158_vm4, %v3593_v60, -inf  ;;  %v1809_v21 = vsel %vm1158_vm4, %v3596_v35, -inf }
0x16f7   : > { %1787 = vmax.xlane.f32.xlu0 %v1786_v47  ;;  %1764 = vmax.xlane.f32.xlu1 %v1763_v15  ;;  %v1878_v41 = vsel %vm1158_vm4, %v3603_v27, -inf  ;;  %v1855_v15 = vsel %vm1158_vm4, %v3606_v43, -inf }
0x16fb   : > { %1833 = vmax.xlane.f32.xlu0 %v1832_v48  ;;  %1810 = vmax.xlane.f32.xlu1 %v1809_v21 }
0x16ff   : > { %1879 = vmax.xlane.f32.xlu0 %v1878_v41  ;;  %1856 = vmax.xlane.f32.xlu1 %v1855_v15 }
0x1780   : > { %v3612_v47 = vpop.xlane.xlu0 %1787  ;;  %v3614_v7 = vpop.xlane.xlu1 %1764 }
0x1781   : > { %v1783_v58 = vsel %vm1202_vm5, %v3614_v7, 0.0 }
0x1782   : > { %v1806_v48 = vsel %vm1230_vm6, %v3612_v47, %v1783_v58 }
0x1784   : > { %v3619_v18 = vpop.xlane.xlu0 %1833  ;;  %v3624_v21 = vpop.xlane.xlu1 %1810 }
0x1785   : > { %v1829_v41 = vsel %vm1258_vm7, %v3624_v21, %v1806_v48 }
0x1786   : > { %v1852_v9 = vsel %vm1286_vm8, %v3619_v18, %v1829_v41 }
0x1788   : > { %v3629_v15 = vpop.xlane.xlu0 %1879  ;;  %v3634_v29 = vpop.xlane.xlu1 %1856 }
0x1789   : > { %v1875_v6 = vsel %vm1175_vm3, %v3634_v29, %v1852_v9 }
0x178a   : > { %v1898_v58 = vsel %vm1341_vm9, %v3629_v15, %v1875_v6 }
0x178b   : > { %v1900_v32 = vadd.f32 %v1898_v58, %v1144_v1 }
0x178d   : > { %v3643_v55 = vadd.f32 %v3311_v57, %v1900_v32  ;;  %v3646_v48 = vadd.f32 %v3237_v24, %v1900_v32  ;;  %v3653_v33 = vadd.f32 %v3260_v34, %v1900_v32  ;;  %v3656_v9 = vadd.f32 %v3242_v54, %v1900_v32 }
0x178e   : > { %v3663_v58 = vadd.f32 %v3270_v39, %v1900_v32  ;;  %v3666_v50 = vadd.f32 %v3319_v59, %v1900_v32 }
0x178f   : > { %v1925_v41 = vsel %vm1158_vm4, %v3643_v55, -inf  ;;  %v1902_v10 = vsel %vm1158_vm4, %v3646_v48, -inf  ;;  %v1971_v6 = vsel %vm1158_vm4, %v3653_v33, -inf  ;;  %v1948_v1 = vsel %vm1158_vm4, %v3656_v9, -inf }
0x1790   : > { %1926 = vmax.xlane.f32.xlu0 %v1925_v41  ;;  %1903 = vmax.xlane.f32.xlu1 %v1902_v10  ;;  %v2017_v63 = vsel %vm1158_vm4, %v3663_v58, -inf  ;;  %v1994_v10 = vsel %vm1158_vm4, %v3666_v50, -inf }
0x1794   : > { %1972 = vmax.xlane.f32.xlu0 %v1971_v6  ;;  %1949 = vmax.xlane.f32.xlu1 %v1948_v1 }
0x1798   : > { %2018 = vmax.xlane.f32.xlu0 %v2017_v63  ;;  %1995 = vmax.xlane.f32.xlu1 %v1994_v10 }
0x1819   : > { %v3672_v41 = vpop.xlane.xlu0 %1926  ;;  %v3674_v28 = vpop.xlane.xlu1 %1903 }
0x181a   : > { %v1922_v31 = vsel %vm1202_vm5, %v3674_v28, 0.0 }
0x181b   : > { %v1945_v6 = vsel %vm1230_vm6, %v3672_v41, %v1922_v31 }
0x181d   : > { %v3679_v32 = vpop.xlane.xlu0 %1972  ;;  %v3684_v1 = vpop.xlane.xlu1 %1949 }
0x181e   : > { %v1968_v63 = vsel %vm1258_vm7, %v3684_v1, %v1945_v6 }
0x181f   : > { %v1991_v22 = vsel %vm1286_vm8, %v3679_v32, %v1968_v63 }
0x1821   : > { %v3689_v10 = vpop.xlane.xlu0 %2018  ;;  %v3694_v36 = vpop.xlane.xlu1 %1995 }
0x1822   : > { %v2014_v4 = vsel %vm1175_vm3, %v3694_v36, %v1991_v22 }
0x1823   : > { %v2037_v31 = vsel %vm1341_vm9, %v3689_v10, %v2014_v4 }
0x1824   : > { %v2039_v45 = vadd.f32 %v2037_v31, %v3563_v0 }
0x1826   : > { %v3704_v6 = vadd.f32 %v3311_v57, %v2039_v45  ;;  %v3707_v37 = vadd.f32 %v3237_v24, %v2039_v45  ;;  %v3714_v22 = vadd.f32 %v3260_v34, %v2039_v45  ;;  %v3717_v20 = vadd.f32 %v3242_v54, %v2039_v45 }
0x1827   : > { %v3724_v31 = vadd.f32 %v3270_v39, %v2039_v45  ;;  %v3727_v52 = vadd.f32 %v3319_v59, %v2039_v45 }
0x1828   : > { %v2064_v63 = vsel %vm1158_vm4, %v3704_v6, -inf  ;;  %v2041_v62 = vsel %vm1158_vm4, %v3707_v37, -inf  ;;  %v2110_v4 = vsel %vm1158_vm4, %v3714_v22, -inf  ;;  %v2087_v0 = vsel %vm1158_vm4, %v3717_v20, -inf }
0x1829   : > { %2065 = vmax.xlane.f32.xlu0 %v2064_v63  ;;  %2042 = vmax.xlane.f32.xlu1 %v2041_v62  ;;  %v2156_v17 = vsel %vm1158_vm4, %v3724_v31, -inf  ;;  %v2133_v62 = vsel %vm1158_vm4, %v3727_v52, -inf }
0x182d   : > { %2111 = vmax.xlane.f32.xlu0 %v2110_v4  ;;  %2088 = vmax.xlane.f32.xlu1 %v2087_v0 }
0x1831   : > { %2157 = vmax.xlane.f32.xlu0 %v2156_v17  ;;  %2134 = vmax.xlane.f32.xlu1 %v2133_v62 }
0x18b2   : > { %v3733_v63 = vpop.xlane.xlu0 %2065  ;;  %v3735_v2 = vpop.xlane.xlu1 %2042 }
0x18b3   : > { %v2061_v16 = vsel %vm1202_vm5, %v3735_v2, 0.0 }
0x18b4   : > { %v2084_v4 = vsel %vm1230_vm6, %v3733_v63, %v2061_v16 }
0x18b6   : > { %v3740_v45 = vpop.xlane.xlu0 %2111  ;;  %v3745_v0 = vpop.xlane.xlu1 %2088 }
0x18b7   : > { %v2107_v17 = vsel %vm1258_vm7, %v3745_v0, %v2084_v4 }
0x18b8   : > { %v2130_v46 = vsel %vm1286_vm8, %v3740_v45, %v2107_v17 }
0x18ba   : > { %v3750_v62 = vpop.xlane.xlu0 %2157  ;;  %v3755_v11 = vpop.xlane.xlu1 %2134 }
0x18bb   : > { %v2153_v49 = vsel %vm1175_vm3, %v3755_v11, %v2130_v46 }
0x18bc   : > { %v2176_v16 = vsel %vm1341_vm9, %v3750_v62, %v2153_v49 }
0x18bd   : > { %v2178_v8 = vadd.f32 %v2176_v16, %v3533_v38 }
0x18bf   : > { %v2202_v4 = vadd.f32 %v3311_v57, %v2178_v8  ;;  %v2179_v44 = vadd.f32 %v3237_v24, %v2178_v8  ;;  %v2248_v12 = vadd.f32 %v3260_v34, %v2178_v8  ;;  %v2225_v25 = vadd.f32 %v3242_v54, %v2178_v8 }
0x18c0   : > { %v2294_v38 = vadd.f32 %v3270_v39, %v2178_v8  ;;  %v2271_v57 = vadd.f32 %v3319_v59, %v2178_v8 }
0x18c1   : > { %v2203_v30 = vsel %vm1158_vm4, %v2202_v4, -inf  ;;  %v2180_v17 = vsel %vm1158_vm4, %v2179_v44, -inf  ;;  %v2249_v46 = vsel %vm1158_vm4, %v2248_v12, -inf  ;;  %v2226_v49 = vsel %vm1158_vm4, %v2225_v25, -inf }
0x18c2   : > { %2204 = vmax.xlane.f32.xlu0 %v2203_v30  ;;  %2181 = vmax.xlane.f32.xlu1 %v2180_v17  ;;  %v2295_v24 = vsel %vm1158_vm4, %v2294_v38, -inf  ;;  %v2272_v16 = vsel %vm1158_vm4, %v2271_v57, -inf }
0x18c6   : > { %2250 = vmax.xlane.f32.xlu0 %v2249_v46  ;;  %2227 = vmax.xlane.f32.xlu1 %v2226_v49 }
0x18ca   : > { %2296 = vmax.xlane.f32.xlu0 %v2295_v24  ;;  %2273 = vmax.xlane.f32.xlu1 %v2272_v16 }
0x194b   : > { %v2205_v34 = vpop.xlane.xlu0 %2204  ;;  %v2182_v54 = vpop.xlane.xlu1 %2181 }
0x194c   : > { %vm2183_vm10 = vcmp.eq.f32.partialorder %v2179_v44, %v2182_v54  ;;  %v2200_v30 = vsel %vm1202_vm5, %v2182_v54, 0.0  ;;  %vm2206_vm11 = vcmp.eq.f32.partialorder %v2202_v4, %v2205_v34 }
0x194d   : > { %v2184_v17 = vsel %vm2183_vm10, %v3232_v23, 6  ;;  %v2223_v59 = vsel %vm1230_vm6, %v2205_v34, %v2200_v30  ;;  %v2207_v30 = vsel %vm2206_vm11, %v3232_v23, 6 }
0x194e   : > { %v2185_v40 = vsel %vm1158_vm4, %v2184_v17, 2147483647 }
0x194f   : > { %v2251_v19 = vpop.xlane.xlu0 %2250  ;;  %v2228_v8 = vpop.xlane.xlu1 %2227  ;;  %v2187_v46 = vshra.s32 %v2185_v40, 16 }
0x1950   : > { %vm2229_vm12 = vcmp.eq.f32.partialorder %v2225_v25, %v2228_v8  ;;  %v2246_v49 = vsel %vm1258_vm7, %v2228_v8, %v2223_v59  ;;  %vm2252_vm13 = vcmp.eq.f32.partialorder %v2248_v12, %v2251_v19 }
0x1951   : > { %v2189_v24 = vcvt.s32.f32 %v2187_v46  ;;  %v2230_v44 = vsel %vm2229_vm12, %v3232_v23, 6  ;;  %v2269_v17 = vsel %vm1286_vm8, %v2251_v19, %v2246_v49  ;;  %v2208_v49 = vsel %vm1158_vm4, %v2207_v30, 2147483647 }
0x1952   : > { %v2231_v16 = vsel %vm1158_vm4, %v2230_v44, 2147483647  ;;  %v2253_v19 = vsel %vm2252_vm13, %v3232_v23, 6  ;;  %vm2044_vm12 = vcmp.eq.f32.partialorder %v3707_v37, %v3735_v2 }
0x1953   : > { %v2297_v54 = vpop.xlane.xlu0 %2296  ;;  %2190 = vmin.xlane.f32.xlu0 %v2189_v24  ;;  %v2274_v42 = vpop.xlane.xlu1 %2273  ;;  %v2233_v53 = vshra.s32 %v2231_v16, 16 }
0x1954   : > { %vm2275_vm14 = vcmp.eq.f32.partialorder %v2271_v57, %v2274_v42  ;;  %v2292_v25 = vsel %vm1175_vm3, %v2274_v42, %v2269_v17  ;;  %vm2298_vm15 = vcmp.eq.f32.partialorder %v2294_v38, %v2297_v54  ;;  %v2254_v17 = vsel %vm1158_vm4, %v2253_v19, 2147483647 }
0x1955   : > { %v2235_v4 = vcvt.s32.f32 %v2233_v53  ;;  %v2315_v34 = vsel %vm1341_vm9, %v2297_v54, %v2292_v25  ;;  %v2276_v59 = vsel %vm2275_vm14, %v3232_v23, 6  ;;  %v2210_v53 = vshra.s32 %v2208_v49, 16 }
0x1956   : > { %v2317_v8 = vadd.f32 %v2315_v34, %v3549_v51  ;;  %v2277_v46 = vsel %vm1158_vm4, %v2276_v59, 2147483647  ;;  %v2299_v51 = vsel %vm2298_vm15, %v3232_v23, 6  ;;  %v2256_v34 = vshra.s32 %v2254_v17, 16 }
0x1957   : > { %2236 = vmin.xlane.f32.xlu0 %v2235_v4  ;;  %v2279_v44 = vshra.s32 %v2277_v46, 16  ;;  %v2212_v25 = vcvt.s32.f32 %v2210_v53  ;;  %v2300_v30 = vsel %vm1158_vm4, %v2299_v51, 2147483647  ;;  %v2278_v5 = vand.u32 65535, %v2277_v46 }
0x1958   : > { %v2318_v12 = vadd.f32 %v3270_v39, %v2317_v8  ;;  %v2258_v59 = vcvt.s32.f32 %v2256_v34  ;;  %v2302_v13 = vshra.s32 %v2300_v30, 16  ;;  %v2186_v39 = vand.u32 65535, %v2185_v40 }
0x1959   : > { %v2281_v42 = vcvt.s32.f32 %v2279_v44  ;;  %v2232_v44 = vand.u32 65535, %v2231_v16  ;;  %v2280_v40 = vcvt.s32.f32 %v2278_v5  ;;  %vm2090_vm14 = vcmp.eq.f32.partialorder %v3717_v20, %v3745_v0 }
0x195a   : > { %v2319_v57 = vsel %vm1158_vm4, %v2318_v12, -inf  ;;  %v2304_v38 = vcvt.s32.f32 %v2302_v13  ;;  %v2188_v8 = vcvt.s32.f32 %v2186_v39  ;;  %v2091_v37 = vsel %vm2090_vm14, %v3232_v23, 6 }
0x195b   : > { %2320 = vmax.xlane.f32.xlu1 %v2319_v57  ;;  %2282 = vmin.xlane.f32.xlu0 %v2281_v42  ;;  %v2234_v53 = vcvt.s32.f32 %v2232_v44  ;;  %v2092_v20 = vsel %vm1158_vm4, %v2091_v37, 2147483647 }
0x195f   : > { %2213 = vmin.xlane.f32.xlu1 %v2212_v25 }
0x1963   : > { %2259 = vmin.xlane.f32.xlu1 %v2258_v59 }
0x1967   : > { %2305 = vmin.xlane.f32.xlu1 %v2304_v38 }
0x19dc   : > { %v3803_v54 = vpop.xlane.xlu0 %2190 }
0x19dd   : > { %vm2192_vm0 = vcmp.eq.f32.partialorder %v2189_v24, %v3803_v54 }
0x19de   : > { %v2193_v19 = vsel %vm2192_vm0, %v2188_v8, inf  ;;  %v2209_v8 = vand.u32 65535, %v2208_v49  ;;  %v2301_v49 = vand.u32 65535, %v2300_v30  ;;  %vm2136_vm0 = vcmp.eq.f32.partialorder %v3727_v52, %v3755_v11 }
0x19df   : > { %2194 = vmin.xlane.f32.xlu1 %v2193_v19  ;;  %v2137_v0 = vsel %vm2136_vm0, %v3232_v23, 6  ;;  %vm1928_vm0 = vcmp.eq.f32.partialorder %v3643_v55, %v3672_v41 }
0x19e0   : > { %v3806_v57 = vpop.xlane.xlu0 %2236  ;;  %v2211_v5 = vcvt.s32.f32 %v2209_v8  ;;  %v2303_v2 = vcvt.s32.f32 %v2301_v49  ;;  %v1929_v41 = vsel %vm1928_vm0, %v3232_v23, 6  ;;  %vm1789_vm0 = vcmp.eq.f32.partialorder %v3583_v14, %v3612_v47 }
0x19e1   : > { %vm2238_vm1 = vcmp.eq.f32.partialorder %v2235_v4, %v3806_v57 }
0x19e2   : > { %v2239_v51 = vsel %vm2238_vm1, %v2234_v53, inf  ;;  %v2045_v53 = vsel %vm2044_vm12, %v3232_v23, 6  ;;  %vm2067_vm1 = vcmp.eq.f32.partialorder %v3704_v6, %v3733_v63 }
0x19e3   : > { %2240 = vmin.xlane.f32.xlu1 %v2239_v51  ;;  %v2068_v11 = vsel %vm2067_vm1, %v3232_v23, 6  ;;  %vm1905_vm1 = vcmp.eq.f32.partialorder %v3646_v48, %v3674_v28 }
0x19e4   : > { %v3809_v34 = vpop.xlane.xlu1 %2320  ;;  %v3811_v13 = vpop.xlane.xlu0 %2282 }
0x19e5   : > { %4791 = vst [vmem:[#allocation52_spill] sm:$0xff] %v3809_v34  ;;  %vm2322_vm2 = vcmp.eq.f32.partialorder %v2318_v12, %v3809_v34  ;;  %vm2284_vm10 = vcmp.eq.f32.partialorder %v2281_v42, %v3811_v13  ;;  %v2255_v12 = vand.u32 65535, %v2254_v17 }
0x19e6   : > { %v2285_v24 = vsel %vm2284_vm10, %v2280_v40, inf  ;;  %v2323_v16 = vsel %vm2322_vm2, %v3232_v23, 6  ;;  %vm2113_vm2 = vcmp.eq.f32.partialorder %v3714_v22, %v3740_v45  ;;  %vm2159_vm10 = vcmp.eq.f32.partialorder %v3724_v31, %v3750_v62 }
0x19e7   : > { %2286 = vmin.xlane.f32.xlu1 %v2285_v24  ;;  %v2324_v39 = vsel %vm1158_vm4, %v2323_v16, 2147483647  ;;  %v2257_v40 = vcvt.s32.f32 %v2255_v12  ;;  %v2094_v16 = vshra.s32 %v2092_v20, 16  ;;  %v3850_v12 = vsel %vm1158_vm4, %v2068_v11, 2147483647 }
0x19e8   : > { %v3817_v46 = vpop.xlane.xlu1 %2213  ;;  %v2326_v4 = vshra.s32 %v2324_v39, 16  ;;  %v2325_v52 = vand.u32 65535, %v2324_v39  ;;  %v2160_v22 = vsel %vm2159_vm10, %v3232_v23, 6 }
0x19e9   : > { %vm2215_vm11 = vcmp.eq.f32.partialorder %v2212_v25, %v3817_v46  ;;  %v2046_v25 = vsel %vm1158_vm4, %v2045_v53, 2147483647  ;;  %v2096_v8 = vcvt.s32.f32 %v2094_v16  ;;  %v3864_v37 = vsel %vm1158_vm4, %v2160_v22, 2147483647 }
0x19ea   : > { %v2328_v44 = vcvt.s32.f32 %v2326_v4  ;;  %v2216_v42 = vsel %vm2215_vm11, %v2211_v5, inf  ;;  %v2048_v17 = vshra.s32 %v2046_v25, 16  ;;  %v3838_v4 = vsel %vm1158_vm4, %v2137_v0, 2147483647 }
0x19eb   : > { %v2327_v49 = vcvt.s32.f32 %v2325_v52 }
0x19ec   : > { %v3819_v19 = vpop.xlane.xlu1 %2259  ;;  %2329 = vmin.xlane.f32.xlu0 %v2328_v44  ;;  %v2050_v30 = vcvt.s32.f32 %v2048_v17  ;;  %v2047_v17 = vand.u32 65535, %v2046_v25 }
0x19ed   : > { %vm2261_vm13 = vcmp.eq.f32.partialorder %v2258_v59, %v3819_v19 }
0x19ee   : > { %v2262_v24 = vsel %vm2261_vm13, %v2257_v40, inf  ;;  %v2071_v40 = vshra.s32 %v3850_v12, 16  ;;  %v2049_v16 = vcvt.s32.f32 %v2047_v17 }
0x19f0   : > { %2217 = vmin.xlane.f32.xlu0 %v2216_v42  ;;  %v3828_v51 = vpop.xlane.xlu1 %2305  ;;  %v2114_v42 = vsel %vm2113_vm2, %v3232_v23, 6  ;;  %v3860_v39 = vcvt.s32.f32 %v2071_v40  ;;  %v2197_v40 = vcvt.f32.s32 %v3803_v54 }
0x19f1   : > { %vm2307_vm15 = vcmp.eq.f32.partialorder %v2304_v38, %v3828_v51  ;;  %v2140_v38 = vshra.s32 %v3838_v4, 16  ;;  %v3857_v63 = vsel %vm1158_vm4, %v2114_v42, 2147483647 }
0x19f2   : > { %v2308_v59 = vsel %vm2307_vm15, %v2303_v2, inf }
0x19f3   : > { %v3841_v5 = vcvt.s32.f32 %v2140_v38  ;;  %v2093_v38 = vand.u32 65535, %v2092_v20  ;;  %v2198_v20 = vshll.u32 %v2197_v40, 16 }
0x19f4   : > { %2263 = vmin.xlane.f32.xlu0 %v2262_v24  ;;  %v2117_v24 = vshra.s32 %v3857_v63, 16 }
0x19f5   : > { %v2095_v42 = vcvt.s32.f32 %v2093_v38 }
0x19f6   : > { %v3867_v62 = vcvt.s32.f32 %v2117_v24 }
0x19f8   : > { %2309 = vmin.xlane.f32.xlu0 %v2308_v59 }
0x19fc   : > { %2051 = vmin.xlane.f32.xlu0 %v2050_v30 }
0x1a00   : > { %2097 = vmin.xlane.f32.xlu0 %v2096_v8 }
0x1a04   : > { %2143 = vmin.xlane.f32.xlu0 %v3841_v5 }
0x1a68   : > { %v2195_v25 = vpop.xlane.xlu1 %2194 }
0x1a69   : > { %v2196_v22 = vcvt.f32.s32 %v2195_v25 }
0x1a6c   : > { %v2241_v24 = vpop.xlane.xlu1 %2240 }
0x1a70   : > { %v2287_v56 = vpop.xlane.xlu1 %2286 }
0x1a75   : > { %v2330_v53 = vpop.xlane.xlu0 %2329 }
0x1a76   : > { %vm2331_vm11 = vcmp.eq.f32.partialorder %v2328_v44, %v2330_v53  ;;  %v2163_v44 = vshra.s32 %v3864_v37, 16  ;;  %v2336_v25 = vcvt.f32.s32 %v2330_v53 }
0x1a77   : > { %v2332_v6 = vsel %vm2331_vm11, %v2327_v49, inf  ;;  %vm1974_vm11 = vcmp.eq.f32.partialorder %v3653_v33, %v3679_v32 }
0x1a78   : > { %2333 = vmin.xlane.f32.xlu1 %v2332_v6  ;;  %v3871_v59 = vcvt.s32.f32 %v2163_v44  ;;  %v2220_v6 = vcvt.f32.s32 %v3817_v46  ;;  %v2289_v46 = vcvt.f32.s32 %v3811_v13  ;;  %v1975_v33 = vsel %vm1974_vm11, %v3232_v23, 6 }
0x1a79   : > { %v2218_v45 = vpop.xlane.xlu0 %2217 }
0x1a7a   : > { %v2219_v44 = vcvt.f32.s32 %v2218_v45  ;;  %v2221_v17 = vshll.u32 %v2220_v6, 16 }
0x1a7c   : > { %2074 = vmin.xlane.f32.xlu1 %v3860_v39  ;;  %v2222_v38 = vadd.s32 %v2221_v17, %v2219_v44  ;;  %v2070_v44 = vand.u32 65535, %v3850_v12 }
0x1a7d   : > { %v2264_v31 = vpop.xlane.xlu0 %2263 }
0x1a7e   : > { %v2265_v34 = vcvt.f32.s32 %v2264_v31 }
0x1a80   : > { %2120 = vmin.xlane.f32.xlu1 %v3867_v62 }
0x1a81   : > { %v2310_v2 = vpop.xlane.xlu0 %2309 }
0x1a84   : > { %2166 = vmin.xlane.f32.xlu1 %v3871_v59 }
0x1a85   : > { %v3874_v0 = vpop.xlane.xlu0 %2051 }
0x1a86   : > { %vm2053_vm12 = vcmp.eq.f32.partialorder %v2050_v30, %v3874_v0  ;;  %v2266_v30 = vcvt.f32.s32 %v3819_v19 }
0x1a87   : > { %v2054_v11 = vsel %vm2053_vm12, %v2049_v16, inf  ;;  %v2243_v16 = vcvt.f32.s32 %v3806_v57  ;;  %v2311_v57 = vcvt.f32.s32 %v2310_v2  ;;  %v2116_v2 = vand.u32 65535, %v3857_v63 }
0x1a88   : > { %2055 = vmin.xlane.f32.xlu0 %v2054_v11  ;;  %v2199_v11 = vadd.s32 %v2198_v20, %v2196_v22  ;;  %v2288_v22 = vcvt.f32.s32 %v2287_v56  ;;  %v2337_v20 = vshll.u32 %v2336_v25, 16  ;;  %v2072_v56 = vcvt.s32.f32 %v2070_v44 }
0x1a89   : > { %v3877_v52 = vpop.xlane.xlu0 %2097  ;;  %v2244_v54 = vshll.u32 %v2243_v16, 16  ;;  %v1906_v25 = vsel %vm1905_vm1, %v3232_v23, 6  ;;  %vm1951_vm12 = vcmp.eq.f32.partialorder %v3656_v9, %v3684_v1  ;;  %vm1766_vm1 = vcmp.eq.f32.partialorder %v3586_v61, %v3614_v7 }
0x1a8a   : > { %vm2099_vm13 = vcmp.eq.f32.partialorder %v2096_v8, %v3877_v52  ;;  %v2242_v8 = vcvt.f32.s32 %v2241_v24  ;;  %v2201_v45 = vsel %vm1202_vm5, %v2199_v11, 0  ;;  %v1952_v9 = vsel %vm1951_vm12, %v3232_v23, 6 }
0x1a8b   : > { %v2100_v49 = vsel %vm2099_vm13, %v2095_v42, inf  ;;  %v2267_v42 = vshll.u32 %v2266_v30, 16  ;;  %v2224_v19 = vsel %vm1230_vm6, %v2222_v38, %v2201_v45  ;;  %vm2357_vm12 = vcmp.eq.s32.totalorder %v3232_v23, 6 }
0x1a8c   : > { %2101 = vmin.xlane.f32.xlu0 %v2100_v49  ;;  %v2312_v49 = vcvt.f32.s32 %v3828_v51  ;;  %v2245_v6 = vadd.s32 %v2244_v54, %v2242_v8  ;;  %v2290_v51 = vshll.u32 %v2289_v46, 16  ;;  %v2162_v54 = vand.u32 65535, %v3864_v37 }
0x1a8d   : > { %v2268_v40 = vadd.s32 %v2267_v42, %v2265_v34  ;;  %v3912_v63 = vpop.xlane.xlu0 %2143  ;;  %v2139_v46 = vand.u32 65535, %v3838_v4 }
0x1a8e   : > { %v2313_v31 = vshll.u32 %v2312_v49, 16  ;;  %v2247_v13 = vsel %vm1258_vm7, %v2245_v6, %v2224_v19  ;;  %v2291_v16 = vadd.s32 %v2290_v51, %v2288_v22  ;;  %vm2145_vm10 = vcmp.eq.f32.partialorder %v3841_v5, %v3912_v63 }
0x1a8f   : > { %v2270_v53 = vsel %vm1286_vm8, %v2268_v40, %v2247_v13  ;;  %v2164_v48 = vcvt.s32.f32 %v2162_v54  ;;  %v2141_v4 = vcvt.s32.f32 %v2139_v46  ;;  %v3934_v5 = vsel %vm1158_vm4, %v1906_v25, 2147483647 }
0x1a90   : > { %v2314_v30 = vadd.s32 %v2313_v31, %v2311_v57  ;;  %v2293_v12 = vsel %vm1175_vm3, %v2291_v16, %v2270_v53  ;;  %v3937_v57 = vsel %vm1158_vm4, %v1929_v41, 2147483647  ;;  %v3948_v22 = vsel %vm1158_vm4, %v1952_v9, 2147483647 }
0x1a91   : > { %v2146_v40 = vsel %vm2145_vm10, %v2141_v4, inf  ;;  %v1932_v6 = vshra.s32 %v3937_v57, 16  ;;  %v3951_v31 = vsel %vm1158_vm4, %v1975_v33, 2147483647  ;;  %v2104_v54 = vcvt.f32.s32 %v3877_v52 }
0x1a92   : > { %v2316_v8 = vsel %vm1341_vm9, %v2314_v30, %v2293_v12  ;;  %v2058_v12 = vcvt.f32.s32 %v3874_v0  ;;  %v2150_v52 = vcvt.f32.s32 %v3912_v63  ;;  %v1931_v63 = vand.u32 65535, %v3937_v57 }
0x1b01   : > { %v2334_v24 = vpop.xlane.xlu1 %2333 }
0x1b02   : > { %v2335_v17 = vcvt.f32.s32 %v2334_v24 }
0x1b04   : > { %v3895_v11 = vadd.s32 %v2337_v20, %v2335_v17 }
0x1b05   : > { %v3897_v34 = vpop.xlane.xlu1 %2074 }
0x1b06   : > { %vm2342_vm14 = vcmp.eq.s32.totalorder %v3232_v23, %v3895_v11  ;;  %vm2076_vm15 = vcmp.eq.f32.partialorder %v3860_v39, %v3897_v34  ;;  %v2118_v39 = vcvt.s32.f32 %v2116_v2 }
0x1b07   : > { %v2077_v38 = vsel %vm2076_vm15, %v2072_v56, inf  ;;  %v2343_v42 = vsel %vm2342_vm14, %v2316_v8, 0  ;;  %vm2020_vm14 = vcmp.eq.f32.partialorder %v3663_v58, %v3689_v10  ;;  %vm1997_vm15 = vcmp.eq.f32.partialorder %v3666_v50, %v3694_v36 }
0x1b08   : > { %2078 = vmin.xlane.f32.xlu1 %v2077_v38  ;;  %v2344_v55 = vsel %vm1158_vm4, %v2343_v42, 0  ;;  %v2021_v24 = vsel %vm2020_vm14, %v3232_v23, 6  ;;  %v1998_v44 = vsel %vm1997_vm15, %v3232_v23, 6  ;;  %v3957_v50 = vcvt.s32.f32 %v1932_v6 }
0x1b09   : > { %v3914_v49 = vpop.xlane.xlu1 %2120  ;;  %v2346_v37 = vshrl.u32 %v2344_v55, 16  ;;  %v1955_v36 = vshra.s32 %v3948_v22, 16  ;;  %v1978_v10 = vshra.s32 %v3951_v31, 16  ;;  %v3962_v51 = vsel %vm1158_vm4, %v2021_v24, 2147483647 }
0x1b0a   : > { %vm2122_vm2 = vcmp.eq.f32.partialorder %v3867_v62, %v3914_v49  ;;  %v2345_v62 = vand.u32 65535, %v2344_v55  ;;  %v3965_v20 = vsel %vm1158_vm4, %v1998_v44, 2147483647  ;;  %v2024_v53 = vshra.s32 %v3962_v51, 16 }
0x1b0b   : > { %v2123_v45 = vsel %vm2122_vm2, %v2118_v39, inf  ;;  %v2348_v32 = vcvt.s32.f32 %v2346_v37  ;;  %v3969_v13 = vcvt.s32.f32 %v1955_v36  ;;  %v3971_v17 = vcvt.s32.f32 %v1978_v10 }
0x1b0c   : > { %2124 = vmin.xlane.f32.xlu1 %v2123_v45  ;;  %v2347_v1 = vcvt.s32.f32 %v2345_v62  ;;  %v2001_v30 = vshra.s32 %v3965_v20, 16  ;;  %v3977_v16 = vcvt.s32.f32 %v2024_v53  ;;  %v2081_v8 = vcvt.f32.s32 %v3897_v34 }
0x1b0d   : > { %v3929_v28 = vpop.xlane.xlu1 %2166  ;;  %v2059_v42 = vshll.u32 %v2058_v12, 16  ;;  %v2127_v41 = vcvt.f32.s32 %v3914_v49  ;;  %v2105_v37 = vshll.u32 %v2104_v54, 16  ;;  %v2151_v44 = vshll.u32 %v2150_v52, 16 }
0x1b0e   : > { %vm2168_vm13 = vcmp.eq.f32.partialorder %v3871_v59, %v3929_v28  ;;  %v1909_v59 = vshra.s32 %v3934_v5, 16  ;;  %v3979_v56 = vcvt.s32.f32 %v2001_v30  ;;  %v2082_v55 = vshll.u32 %v2081_v8, 16 }
0x1b0f   : > { %v2169_v19 = vsel %vm2168_vm13, %v2164_v48, inf  ;;  %v1954_v54 = vand.u32 65535, %v3948_v22  ;;  %vm2339_vm2 = vcmp.eq.s32.totalorder %v3232_v23, 7 }
0x1b10   : > { %2170 = vmin.xlane.f32.xlu0 %v2169_v19  ;;  %2147 = vmin.xlane.f32.xlu1 %v2146_v40  ;;  %v3955_v58 = vcvt.s32.f32 %v1909_v59  ;;  %v2128_v19 = vshll.u32 %v2127_v41, 16  ;;  %v2173_v59 = vcvt.f32.s32 %v3929_v28  ;;  %v1977_v28 = vand.u32 65535, %v3951_v31 }
0x1b11   : > { %v2056_v2 = vpop.xlane.xlu0 %2055 }
0x1b12   : > { %v2057_v38 = vcvt.f32.s32 %v2056_v2  ;;  %v1908_v2 = vand.u32 65535, %v3934_v5  ;;  %v2174_v12 = vshll.u32 %v2173_v59, 16  ;;  %v1979_v31 = vcvt.s32.f32 %v1977_v28 }
0x1b14   : > { %2351 = vadd.xlane.f32.xlu0 %v2348_v32  ;;  %2349 = vadd.xlane.f32.xlu1 %v2347_v1  ;;  %v2060_v46 = vadd.s32 %v2059_v42, %v2057_v38  ;;  %v1910_v41 = vcvt.s32.f32 %v1908_v2 }
0x1b15   : > { %v2102_v39 = vpop.xlane.xlu0 %2101 }
0x1b16   : > { %v2103_v48 = vcvt.f32.s32 %v2102_v39  ;;  %v2062_v62 = vsel %vm1202_vm5, %v2060_v46, 0  ;;  %v2340_v46 = vcvt.s32.f32 %v3895_v11 }
0x1b18   : > { %1912 = vmin.xlane.f32.xlu0 %v3955_v58  ;;  %1935 = vmin.xlane.f32.xlu1 %v3957_v50  ;;  %v2106_v33 = vadd.s32 %v2105_v37, %v2103_v48  ;;  %v1956_v37 = vcvt.s32.f32 %v1954_v54 }
0x1b1c   : > { %1958 = vmin.xlane.f32.xlu0 %v3969_v13  ;;  %1981 = vmin.xlane.f32.xlu1 %v3971_v17 }
0x1b20   : > { %2027 = vmin.xlane.f32.xlu1 %v3977_v16  ;;  %2004 = vmin.xlane.f32.xlu0 %v3979_v56 }
0x1b91   : > { %v2079_v45 = vpop.xlane.xlu1 %2078 }
0x1b92   : > { %v2080_v25 = vcvt.f32.s32 %v2079_v45 }
0x1b94   : > { %v2083_v4 = vadd.s32 %v2082_v55, %v2080_v25  ;;  %v1933_v55 = vcvt.s32.f32 %v1931_v63 }
0x1b95   : > { %v2125_v0 = vpop.xlane.xlu1 %2124 }
0x1b96   : > { %v2085_v34 = vsel %vm1230_vm6, %v2083_v4, %v2062_v62  ;;  %v2126_v40 = vcvt.f32.s32 %v2125_v0  ;;  %v2341_v62 = vsel %vm2339_vm2, %v2340_v46, 0.0  ;;  %vm1835_vm2 = vcmp.eq.f32.partialorder %v3593_v60, %v3619_v18 }
0x1b97   : > { %v2108_v49 = vsel %vm1258_vm7, %v2106_v33, %v2085_v34  ;;  %v2000_v34 = vand.u32 65535, %v3965_v20  ;;  %v1767_v20 = vsel %vm1766_vm1, %v3232_v23, 6  ;;  %v1836_v18 = vsel %vm1835_vm2, %v3232_v23, 6 }
0x1b98   : > { %v2129_v9 = vadd.s32 %v2128_v19, %v2126_v40  ;;  %v4057_v60 = vsel %vm1158_vm4, %v1767_v20, 2147483647 }
0x1b99   : > { %v2171_v32 = vpop.xlane.xlu0 %2170  ;;  %v2148_v1 = vpop.xlane.xlu1 %2147  ;;  %v2002_v14 = vcvt.s32.f32 %v2000_v34 }
0x1b9a   : > { %v2131_v6 = vsel %vm1286_vm8, %v2129_v9, %v2108_v49  ;;  %v2149_v24 = vcvt.f32.s32 %v2148_v1  ;;  %v2172_v36 = vcvt.f32.s32 %v2171_v32  ;;  %v1770_v1 = vshra.s32 %v4057_v60, 16 }
0x1b9c   : > { %v2152_v10 = vadd.s32 %v2151_v44, %v2149_v24  ;;  %v2175_v8 = vadd.s32 %v2174_v12, %v2172_v36  ;;  %v4074_v24 = vsel %vm1158_vm4, %v1836_v18, 2147483647  ;;  %v1769_v18 = vand.u32 65535, %v4057_v60  ;;  %v4792_v60 = vld [vmem:[#allocation47_spill] sm:$0xff] }
0x1b9d   : > { %v2352_v53 = vpop.xlane.xlu0 %2351  ;;  %v2350_v30 = vpop.xlane.xlu1 %2349 }
0x1b9e   : > { %v2354_v38 = vcvt.f32.s32 %v2352_v53  ;;  %v2353_v39 = vcvt.f32.s32 %v2350_v30  ;;  %v2154_v5 = vsel %vm1175_vm3, %v2152_v10, %v2131_v6 }
0x1b9f   : > { %v2177_v48 = vsel %vm1341_vm9, %v2175_v8, %v2154_v5 }
0x1ba0   : > { %v2355_v42 = vshll.u32 %v2354_v38, 16 }
0x1ba1   : > { %v4008_v57 = vpop.xlane.xlu0 %1912  ;;  %v4010_v45 = vpop.xlane.xlu1 %1935 }
0x1ba2   : > { %v2356_v25 = vadd.s32 %v2355_v42, %v2353_v39  ;;  %vm1914_vm10 = vcmp.eq.f32.partialorder %v3955_v58, %v4008_v57  ;;  %vm1937_vm11 = vcmp.eq.f32.partialorder %v3957_v50, %v4010_v45  ;;  %v2023_v50 = vand.u32 65535, %v3962_v51 }
0x1ba3   : > { %v1938_v11 = vsel %vm1937_vm11, %v1933_v55, inf  ;;  %v1915_v22 = vsel %vm1914_vm10, %v1910_v41, inf  ;;  %v1790_v51 = vsel %vm1789_vm0, %v3232_v23, 6  ;;  %vm1812_vm10 = vcmp.eq.f32.partialorder %v3596_v35, %v3624_v21 }
0x1ba4   : > { %v2358_v4 = vcvt.s32.f32 %v2356_v25  ;;  %vm2360_vm13 = vcmp.eq.s32.totalorder %v3232_v23, %v2356_v25  ;;  %1939 = vmin.xlane.f32.xlu1 %v1938_v11  ;;  %1916 = vmin.xlane.f32.xlu0 %v1915_v22  ;;  %v2025_v49 = vcvt.s32.f32 %v2023_v50  ;;  %v4060_v35 = vsel %vm1158_vm4, %v1790_v51, 2147483647 }
0x1ba5   : > { %v2361_v0 = vsel %vm2360_vm13, %v2177_v48, 0  ;;  %v4021_v58 = vpop.xlane.xlu0 %1958  ;;  %v4023_v19 = vpop.xlane.xlu1 %1981  ;;  %v1813_v21 = vsel %vm1812_vm10, %v3232_v23, 6  ;;  %vm1881_vm11 = vcmp.eq.f32.partialorder %v3603_v27, %v3629_v15  ;;  %v1793_v59 = vshra.s32 %v4060_v35, 16 }
0x1ba6   : > { %v4029_v40 = vsel %vm2357_vm12, %v2358_v4, %v2341_v62  ;;  %vm1960_vm14 = vcmp.eq.f32.partialorder %v3969_v13, %v4021_v58  ;;  %vm1983_vm15 = vcmp.eq.f32.partialorder %v3971_v17, %v4023_v19  ;;  %v2362_v9 = vsel %vm1158_vm4, %v2361_v0, 0 }
0x1ba7   : > { %v1984_v52 = vsel %vm1983_vm15, %v1979_v31, inf  ;;  %v1961_v33 = vsel %vm1960_vm14, %v1956_v37, inf  ;;  %v2364_v61 = vshrl.u32 %v2362_v9, 16  ;;  %v2363_v7 = vand.u32 65535, %v2362_v9 }
0x1ba8   : > { %1985 = vmin.xlane.f32.xlu1 %v1984_v52  ;;  %1962 = vmin.xlane.f32.xlu0 %v1961_v33  ;;  %vm1858_vm12 = vcmp.eq.f32.partialorder %v3606_v43, %v3634_v29  ;;  %v4071_v6 = vsel %vm1158_vm4, %v1813_v21, 2147483647  ;;  %v1882_v44 = vsel %vm1881_vm11, %v3232_v23, 6  ;;  %v4078_v27 = vcvt.s32.f32 %v1770_v1 }
0x1ba9   : > { %v4048_v13 = vpop.xlane.xlu1 %2027  ;;  %v4050_v17 = vpop.xlane.xlu0 %2004  ;;  %v1859_v36 = vsel %vm1858_vm12, %v3232_v23, 6  ;;  %v4080_v29 = vcvt.s32.f32 %v1793_v59  ;;  %v1816_v43 = vshra.s32 %v4071_v6, 16  ;;  %v1839_v15 = vshra.s32 %v4074_v24, 16 }
0x1baa   : > { %vm2029_vm0 = vcmp.eq.f32.partialorder %v3977_v16, %v4048_v13  ;;  %vm2006_vm1 = vcmp.eq.f32.partialorder %v3979_v56, %v4050_v17  ;;  %v2366_v16 = vcvt.s32.f32 %v2364_v61  ;;  %v2365_v56 = vcvt.s32.f32 %v2363_v7 }
0x1bab   : > { %v2030_v47 = vsel %vm2029_vm0, %v2025_v49, inf  ;;  %v2007_v32 = vsel %vm2006_vm1, %v2002_v14, inf  ;;  %v4085_v10 = vsel %vm1158_vm4, %v1882_v44, 2147483647  ;;  %v4088_v53 = vsel %vm1158_vm4, %v1859_v36, 2147483647 }
0x1bac   : > { %2031 = vmin.xlane.f32.xlu0 %v2030_v47  ;;  %2008 = vmin.xlane.f32.xlu1 %v2007_v32  ;;  %v4092_v30 = vcvt.s32.f32 %v1816_v43  ;;  %v4094_v63 = vcvt.s32.f32 %v1839_v15  ;;  %v1885_v2 = vshra.s32 %v4085_v10, 16  ;;  %v1862_v12 = vshra.s32 %v4088_v53, 16 }
0x1bad   : > { %v1919_v8 = vcvt.f32.s32 %v4008_v57  ;;  %v1942_v42 = vcvt.f32.s32 %v4010_v45  ;;  %v1965_v54 = vcvt.f32.s32 %v4021_v58  ;;  %v1988_v41 = vcvt.f32.s32 %v4023_v19 }
0x1bae   : > { %v4100_v38 = vcvt.s32.f32 %v1885_v2  ;;  %v4102_v28 = vcvt.s32.f32 %v1862_v12  ;;  %v2011_v58 = vcvt.f32.s32 %v4050_v17  ;;  %v2034_v9 = vcvt.f32.s32 %v4048_v13 }
0x1baf   : > { %v1920_v39 = vshll.u32 %v1919_v8, 16  ;;  %v1943_v55 = vshll.u32 %v1942_v42, 16  ;;  %v1966_v48 = vshll.u32 %v1965_v54, 16  ;;  %v1989_v62 = vshll.u32 %v1988_v41, 16 }
0x1bb0   : > { %2369 = vadd.xlane.f32.xlu0 %v2366_v16  ;;  %2367 = vadd.xlane.f32.xlu1 %v2365_v56  ;;  %v2012_v49 = vshll.u32 %v2011_v58, 16  ;;  %v1792_v32 = vand.u32 65535, %v4060_v35  ;;  %v2035_v21 = vshll.u32 %v2034_v9, 16  ;;  %v1838_v59 = vand.u32 65535, %v4074_v24  ;;  %v4793_v24 = vld [vmem:[#allocation42_spill] sm:$0xff] }
0x1bb1   : > { %v1771_v2 = vcvt.s32.f32 %v1769_v18  ;;  %v1815_v35 = vand.u32 65535, %v4071_v6  ;;  %vm1650_vm15 = vcmp.eq.f32.partialorder %v3501_v3, %v3530_v26  ;;  %vm1627_vm2 = vcmp.eq.f32.partialorder %v4793_v24, %v4792_v60 }
0x1bb2   : > { %v1794_v15 = vcvt.s32.f32 %v1792_v32  ;;  %v1840_v6 = vcvt.s32.f32 %v1838_v59  ;;  %v1861_v41 = vand.u32 65535, %v4088_v53  ;;  %v4794_v53 = vld [vmem:[#allocation48_spill] sm:$0xff] }
0x1bb4   : > { %1773 = vmin.xlane.f32.xlu0 %v4078_v27  ;;  %1796 = vmin.xlane.f32.xlu1 %v4080_v29  ;;  %v1863_v3 = vcvt.s32.f32 %v1861_v41 }
0x1bb8   : > { %1819 = vmin.xlane.f32.xlu0 %v4092_v30  ;;  %1842 = vmin.xlane.f32.xlu1 %v4094_v63 }
0x1bbc   : > { %1888 = vmin.xlane.f32.xlu1 %v4100_v38  ;;  %1865 = vmin.xlane.f32.xlu0 %v4102_v28 }
0x1c2d   : > { %v1940_v46 = vpop.xlane.xlu1 %1939  ;;  %v1917_v5 = vpop.xlane.xlu0 %1916 }
0x1c2e   : > { %v1941_v25 = vcvt.f32.s32 %v1940_v46  ;;  %v1918_v11 = vcvt.f32.s32 %v1917_v5  ;;  %v1817_v5 = vcvt.s32.f32 %v1815_v35 }
0x1c30   : > { %v1944_v22 = vadd.s32 %v1943_v55, %v1941_v25  ;;  %v1921_v31 = vadd.s32 %v1920_v39, %v1918_v11  ;;  %v1884_v55 = vand.u32 65535, %v4085_v10  ;;  %v1651_v10 = vsel %vm1650_vm15, %v3232_v23, 6 }
0x1c31   : > { %v1986_v4 = vpop.xlane.xlu1 %1985  ;;  %v1963_v37 = vpop.xlane.xlu0 %1962 }
0x1c32   : > { %v1923_v57 = vsel %vm1202_vm5, %v1921_v31, 0  ;;  %v1987_v45 = vcvt.f32.s32 %v1986_v4  ;;  %v1964_v0 = vcvt.f32.s32 %v1963_v37 }
0x1c33   : > { %v1946_v50 = vsel %vm1230_vm6, %v1944_v22, %v1923_v57 }
0x1c34   : > { %v1990_v34 = vadd.s32 %v1989_v62, %v1987_v45  ;;  %v1967_v19 = vadd.s32 %v1966_v48, %v1964_v0  ;;  %v4797_v48 = vld [vmem:[#allocation44_spill] sm:$0xff]  ;;  %v1886_v62 = vcvt.s32.f32 %v1884_v55 }
0x1c35   : > { %v2032_v52 = vpop.xlane.xlu0 %2031  ;;  %v2009_v33 = vpop.xlane.xlu1 %2008 }
0x1c36   : > { %v1969_v51 = vsel %vm1258_vm7, %v1967_v19, %v1946_v50  ;;  %v2010_v20 = vcvt.f32.s32 %v2009_v33  ;;  %v2033_v61 = vcvt.f32.s32 %v2032_v52  ;;  %v4181_v50 = vsel %vm1158_vm4, %v1651_v10, 2147483647  ;;  %v4799_v52 = vld [vmem:[#allocation45_spill] sm:$0xff]  ;;  %v4801_v33 = vld [vmem:[#allocation46_spill] sm:$0xff] }
0x1c37   : > { %v1992_v14 = vsel %vm1286_vm8, %v1990_v34, %v1969_v51 }
0x1c38   : > { %v2013_v7 = vadd.s32 %v2012_v49, %v2010_v20  ;;  %v2036_v56 = vadd.s32 %v2035_v21, %v2033_v61  ;;  %v1654_v49 = vshra.s32 %v4181_v50, 16 }
0x1c39   : > { %v2370_v17 = vpop.xlane.xlu0 %2369  ;;  %v2368_v47 = vpop.xlane.xlu1 %2367 }
0x1c3a   : > { %v2372_v16 = vcvt.f32.s32 %v2370_v17  ;;  %v2371_v1 = vcvt.f32.s32 %v2368_v47  ;;  %v2015_v44 = vsel %vm1175_vm3, %v2013_v7, %v1992_v14  ;;  %v4201_v32 = vcvt.s32.f32 %v1654_v49 }
0x1c3b   : > { %v2038_v39 = vsel %vm1341_vm9, %v2036_v56, %v2015_v44 }
0x1c3c   : > { %v2373_v13 = vshll.u32 %v2372_v16, 16 }
0x1c3d   : > { %v4125_v36 = vpop.xlane.xlu0 %1773  ;;  %v4127_v43 = vpop.xlane.xlu1 %1796 }
0x1c3e   : > { %v2374_v12 = vadd.s32 %v2373_v13, %v2371_v1  ;;  %vm1775_vm13 = vcmp.eq.f32.partialorder %v4078_v27, %v4125_v36  ;;  %vm1798_vm14 = vcmp.eq.f32.partialorder %v4080_v29, %v4127_v43  ;;  %v1780_v35 = vcvt.f32.s32 %v4125_v36 }
0x1c3f   : > { %v1799_v8 = vsel %vm1798_vm14, %v1794_v15, inf  ;;  %v1776_v42 = vsel %vm1775_vm13, %v1771_v2, inf }
0x1c40   : > { %v2375_v54 = vcvt.s32.f32 %v2374_v12  ;;  %vm2377_vm10 = vcmp.eq.s32.totalorder %v3232_v23, %v2374_v12  ;;  %1800 = vmin.xlane.f32.xlu1 %v1799_v8  ;;  %1777 = vmin.xlane.f32.xlu0 %v1776_v42  ;;  %v1803_v12 = vcvt.f32.s32 %v4127_v43  ;;  %v1781_v60 = vshll.u32 %v1780_v35, 16 }
0x1c41   : > { %v2378_v27 = vsel %vm2377_vm10, %v2038_v39, 0  ;;  %v4141_v46 = vpop.xlane.xlu0 %1819  ;;  %v4143_v29 = vpop.xlane.xlu1 %1842 }
0x1c42   : > { %v4150_v25 = vsel %vm1341_vm9, %v2375_v54, %v4029_v40  ;;  %vm1821_vm0 = vcmp.eq.f32.partialorder %v4092_v30, %v4141_v46  ;;  %vm1844_vm1 = vcmp.eq.f32.partialorder %v4094_v63, %v4143_v29  ;;  %v2379_v31 = vsel %vm1158_vm4, %v2378_v27, 0  ;;  %v4795_v30 = vld [vmem:[#allocation43_spill] sm:$0xff]  ;;  %v4796_v63 = vld [vmem:[#allocation49_spill] sm:$0xff] }
0x1c43   : > { %v1845_v11 = vsel %vm1844_vm1, %v1840_v6, inf  ;;  %v1822_v22 = vsel %vm1821_vm0, %v1817_v5, inf  ;;  %v1628_v40 = vsel %vm1627_vm2, %v3232_v23, 6  ;;  %vm1696_vm11 = vcmp.eq.f32.partialorder %v4795_v30, %v4794_v53 }
0x1c44   : > { %1846 = vmin.xlane.f32.xlu1 %v1845_v11  ;;  %1823 = vmin.xlane.f32.xlu0 %v1822_v22  ;;  %vm1673_vm12 = vcmp.eq.f32.partialorder %v4797_v48, %v4796_v63  ;;  %v2381_v26 = vshrl.u32 %v2379_v31, 16  ;;  %v2380_v57 = vand.u32 65535, %v2379_v31  ;;  %v4178_v58 = vsel %vm1158_vm4, %v1628_v40, 2147483647 }
0x1c45   : > { %v4169_v4 = vpop.xlane.xlu1 %1888  ;;  %v4171_v37 = vpop.xlane.xlu0 %1865  ;;  %v1697_v34 = vsel %vm1696_vm11, %v3232_v23, 6  ;;  %v1674_v19 = vsel %vm1673_vm12, %v3232_v23, 6  ;;  %v1631_v20 = vshra.s32 %v4178_v58, 16  ;;  %v1826_v24 = vcvt.f32.s32 %v4141_v46 }
0x1c46   : > { %vm1890_vm13 = vcmp.eq.f32.partialorder %v4100_v38, %v4169_v4  ;;  %vm1867_vm14 = vcmp.eq.f32.partialorder %v4102_v28, %v4171_v37  ;;  %v4798_v38 = vld [vmem:[#allocation50_spill] sm:$0xff]  ;;  %v4800_v28 = vld [vmem:[#allocation51_spill] sm:$0xff]  ;;  %v2383_v9 = vcvt.s32.f32 %v2381_v26  ;;  %v2382_v51 = vcvt.s32.f32 %v2380_v57 }
0x1c47   : > { %v1891_v45 = vsel %vm1890_vm13, %v1886_v62, inf  ;;  %v1868_v0 = vsel %vm1867_vm14, %v1863_v3, inf  ;;  %vm1742_vm15 = vcmp.eq.f32.partialorder %v4799_v52, %v4798_v38  ;;  %vm1719_vm2 = vcmp.eq.f32.partialorder %v4801_v33, %v4800_v28 }
0x1c48   : > { %1892 = vmin.xlane.f32.xlu0 %v1891_v45  ;;  %1869 = vmin.xlane.f32.xlu1 %v1868_v0  ;;  %v4192_v14 = vsel %vm1158_vm4, %v1674_v19, 2147483647  ;;  %v4195_v61 = vsel %vm1158_vm4, %v1697_v34, 2147483647  ;;  %v1743_v7 = vsel %vm1742_vm15, %v3232_v23, 6  ;;  %v1720_v17 = vsel %vm1719_vm2, %v3232_v23, 6 }
0x1c49   : > { %v4199_v47 = vcvt.s32.f32 %v1631_v20  ;;  %v1677_v18 = vshra.s32 %v4192_v14, 16  ;;  %v1700_v21 = vshra.s32 %v4195_v61, 16  ;;  %v4206_v16 = vsel %vm1158_vm4, %v1743_v7, 2147483647 }
0x1c4a   : > { %v4209_v56 = vsel %vm1158_vm4, %v1720_v17, 2147483647  ;;  %v1746_v59 = vshra.s32 %v4206_v16, 16  ;;  %v1804_v39 = vshll.u32 %v1803_v12, 16  ;;  %v1849_v54 = vcvt.f32.s32 %v4143_v29 }
0x1c4b   : > { %v4213_v13 = vcvt.s32.f32 %v1677_v18  ;;  %v4215_v1 = vcvt.s32.f32 %v1700_v21  ;;  %v1723_v44 = vshra.s32 %v4209_v56, 16  ;;  %v1827_v41 = vshll.u32 %v1826_v24, 16 }
0x1c4c   : > { %2386 = vadd.xlane.f32.xlu0 %v2383_v9  ;;  %2384 = vadd.xlane.f32.xlu1 %v2382_v51  ;;  %v4221_v15 = vcvt.s32.f32 %v1746_v59  ;;  %v1850_v31 = vshll.u32 %v1849_v54, 16  ;;  %v1872_v46 = vcvt.f32.s32 %v4171_v37  ;;  %v1895_v48 = vcvt.f32.s32 %v4169_v4  ;;  %v4804_v59 = vld [vmem:[#allocation38_spill] sm:$0xff] }
0x1c4d   : > { %v4223_v2 = vcvt.s32.f32 %v1723_v44  ;;  %v1653_v19 = vand.u32 65535, %v4181_v50  ;;  %v1630_v38 = vand.u32 65535, %v4178_v58  ;;  %v1699_v51 = vand.u32 65535, %v4195_v61  ;;  %v4802_v58 = vld [vmem:[#allocation36_spill] sm:$0xff]  ;;  %v4803_v61 = vld [vmem:[#allocation30_spill] sm:$0xff]  ;;  %v4805_v44 = vld [vmem:[#allocation31_spill] sm:$0xff] }
0x1c4e   : > { %v1873_v26 = vshll.u32 %v1872_v46, 16  ;;  %v1896_v52 = vshll.u32 %v1895_v48, 16  ;;  %v1676_v50 = vand.u32 65535, %v4192_v14  ;;  %vm1511_vm1 = vcmp.eq.f32.partialorder %v4803_v61, %v4802_v58  ;;  %v4811_v48 = vld [vmem:[#allocation34_spill] sm:$0xff] }
0x1c4f   : > { %v1655_v17 = vcvt.s32.f32 %v1653_v19  ;;  %v1632_v18 = vcvt.s32.f32 %v1630_v38  ;;  %vm1488_vm11 = vcmp.eq.f32.partialorder %v4805_v44, %v4804_v59  ;;  %v1701_v14 = vcvt.s32.f32 %v1699_v51 }
0x1c50   : > { %1634 = vmin.xlane.f32.xlu0 %v4199_v47  ;;  %1657 = vmin.xlane.f32.xlu1 %v4201_v32  ;;  %v1722_v54 = vand.u32 65535, %v4209_v56  ;;  %v4806_v56 = vld [vmem:[#allocation37_spill] sm:$0xff] }
0x1c54   : > { %1680 = vmin.xlane.f32.xlu0 %v4213_v13  ;;  %1703 = vmin.xlane.f32.xlu1 %v4215_v1 }
0x1c58   : > { %1749 = vmin.xlane.f32.xlu1 %v4221_v15  ;;  %1726 = vmin.xlane.f32.xlu0 %v4223_v2 }
0x1cc9   : > { %v1801_v8 = vpop.xlane.xlu1 %1800  ;;  %v1778_v42 = vpop.xlane.xlu0 %1777 }
0x1cca   : > { %v1802_v6 = vcvt.f32.s32 %v1801_v8  ;;  %v1779_v27 = vcvt.f32.s32 %v1778_v42  ;;  %v1678_v42 = vcvt.s32.f32 %v1676_v50 }
0x1ccc   : > { %v1805_v5 = vadd.s32 %v1804_v39, %v1802_v6  ;;  %v1782_v55 = vadd.s32 %v1781_v60, %v1779_v27  ;;  %v1745_v39 = vand.u32 65535, %v4206_v16  ;;  %v1512_v16 = vsel %vm1511_vm1, %v3232_v23, 6 }
0x1ccd   : > { %v1847_v11 = vpop.xlane.xlu1 %1846  ;;  %v1824_v22 = vpop.xlane.xlu0 %1823 }
0x1cce   : > { %v1784_v36 = vsel %vm1202_vm5, %v1782_v55, 0  ;;  %v1848_v43 = vcvt.f32.s32 %v1847_v11  ;;  %v1825_v10 = vcvt.f32.s32 %v1824_v22 }
0x1ccf   : > { %v1807_v40 = vsel %vm1230_vm6, %v1805_v5, %v1784_v36  ;;  %v1724_v36 = vcvt.s32.f32 %v1722_v54 }
0x1cd0   : > { %v1851_v53 = vadd.s32 %v1850_v31, %v1848_v43  ;;  %v1828_v29 = vadd.s32 %v1827_v41, %v1825_v10  ;;  %v4809_v41 = vld [vmem:[#allocation33_spill] sm:$0xff]  ;;  %v1747_v31 = vcvt.s32.f32 %v1745_v39 }
0x1cd1   : > { %v1893_v30 = vpop.xlane.xlu0 %1892  ;;  %v1870_v63 = vpop.xlane.xlu1 %1869 }
0x1cd2   : > { %v1830_v62 = vsel %vm1258_vm7, %v1828_v29, %v1807_v40  ;;  %v1871_v3 = vcvt.f32.s32 %v1870_v63  ;;  %v1894_v45 = vcvt.f32.s32 %v1893_v30  ;;  %v4302_v29 = vsel %vm1158_vm4, %v1512_v16, 2147483647 }
0x1cd3   : > { %v1853_v57 = vsel %vm1286_vm8, %v1851_v53, %v1830_v62  ;;  %v4813_v62 = vld [vmem:[#allocation35_spill] sm:$0xff] }
0x1cd4   : > { %v1874_v0 = vadd.s32 %v1873_v26, %v1871_v3  ;;  %v1897_v33 = vadd.s32 %v1896_v52, %v1894_v45  ;;  %v1515_v45 = vshra.s32 %v4302_v29, 16 }
0x1cd5   : > { %v2387_v37 = vpop.xlane.xlu0 %2386  ;;  %v2385_v34 = vpop.xlane.xlu1 %2384 }
0x1cd6   : > { %v2389_v28 = vcvt.f32.s32 %v2387_v37  ;;  %v2388_v9 = vcvt.f32.s32 %v2385_v34  ;;  %v1876_v20 = vsel %vm1175_vm3, %v1874_v0, %v1853_v57  ;;  %v4322_v52 = vcvt.s32.f32 %v1515_v45 }
0x1cd7   : > { %v1899_v60 = vsel %vm1341_vm9, %v1897_v33, %v1876_v20 }
0x1cd8   : > { %v2390_v4 = vshll.u32 %v2389_v28, 16 }
0x1cd9   : > { %v4246_v49 = vpop.xlane.xlu0 %1634  ;;  %v4248_v7 = vpop.xlane.xlu1 %1657 }
0x1cda   : > { %v2391_v21 = vadd.s32 %v2390_v4, %v2388_v9  ;;  %vm1636_vm10 = vcmp.eq.f32.partialorder %v4199_v47, %v4246_v49  ;;  %vm1659_vm0 = vcmp.eq.f32.partialorder %v4201_v32, %v4248_v7  ;;  %v1641_v58 = vcvt.f32.s32 %v4246_v49 }
0x1cdb   : > { %v1660_v35 = vsel %vm1659_vm0, %v1655_v17, inf  ;;  %v1637_v12 = vsel %vm1636_vm10, %v1632_v18, inf  ;;  %v1664_v61 = vcvt.f32.s32 %v4248_v7 }
0x1cdc   : > { %v2392_v24 = vcvt.s32.f32 %v2391_v21  ;;  %vm2394_vm12 = vcmp.eq.s32.totalorder %v3232_v23, %v2391_v21  ;;  %1661 = vmin.xlane.f32.xlu1 %v1660_v35  ;;  %1638 = vmin.xlane.f32.xlu0 %v1637_v12  ;;  %v1642_v59 = vshll.u32 %v1641_v58, 16 }
0x1cdd   : > { %v2395_v47 = vsel %vm2394_vm12, %v1899_v60, 0  ;;  %v4262_v8 = vpop.xlane.xlu0 %1680  ;;  %v4264_v32 = vpop.xlane.xlu1 %1703  ;;  %v1665_v60 = vshll.u32 %v1664_v61, 16 }
0x1cde   : > { %v4271_v6 = vsel %vm1175_vm3, %v2392_v24, %v4150_v25  ;;  %vm1682_vm13 = vcmp.eq.f32.partialorder %v4213_v13, %v4262_v8  ;;  %vm1705_vm14 = vcmp.eq.f32.partialorder %v4215_v1, %v4264_v32  ;;  %v2396_v55 = vsel %vm1158_vm4, %v2395_v47, 0  ;;  %v4807_v13 = vld [vmem:[#allocation32_spill] sm:$0xff]  ;;  %v4808_v1 = vld [vmem:[#allocation39_spill] sm:$0xff] }
0x1cdf   : > { %v1706_v27 = vsel %vm1705_vm14, %v1701_v14, inf  ;;  %v1683_v5 = vsel %vm1682_vm13, %v1678_v42, inf  ;;  %v1489_v25 = vsel %vm1488_vm11, %v3232_v23, 6  ;;  %vm1557_vm15 = vcmp.eq.f32.partialorder %v4807_v13, %v4806_v56 }
0x1ce0   : > { %1707 = vmin.xlane.f32.xlu1 %v1706_v27  ;;  %1684 = vmin.xlane.f32.xlu0 %v1683_v5  ;;  %vm1534_vm2 = vcmp.eq.f32.partialorder %v4809_v41, %v4808_v1  ;;  %v2398_v43 = vshrl.u32 %v2396_v55, 16  ;;  %v2397_v10 = vand.u32 65535, %v2396_v55  ;;  %v4299_v53 = vsel %vm1158_vm4, %v1489_v25, 2147483647 }
0x1ce1   : > { %v4290_v11 = vpop.xlane.xlu1 %1749  ;;  %v4292_v22 = vpop.xlane.xlu0 %1726  ;;  %v1558_v30 = vsel %vm1557_vm15, %v3232_v23, 6  ;;  %v1535_v63 = vsel %vm1534_vm2, %v3232_v23, 6  ;;  %v1492_v57 = vshra.s32 %v4299_v53, 16  ;;  %v1687_v44 = vcvt.f32.s32 %v4262_v8 }
0x1ce2   : > { %vm1751_vm10 = vcmp.eq.f32.partialorder %v4221_v15, %v4290_v11  ;;  %vm1728_vm0 = vcmp.eq.f32.partialorder %v4223_v2, %v4292_v22  ;;  %v4810_v15 = vld [vmem:[#allocation40_spill] sm:$0xff]  ;;  %v4812_v2 = vld [vmem:[#allocation41_spill] sm:$0xff]  ;;  %v2400_v3 = vcvt.s32.f32 %v2398_v43  ;;  %v2399_v26 = vcvt.s32.f32 %v2397_v10 }
0x1ce3   : > { %v1752_v46 = vsel %vm1751_vm10, %v1747_v31, inf  ;;  %v1729_v40 = vsel %vm1728_vm0, %v1724_v36, inf  ;;  %vm1580_vm1 = vcmp.eq.f32.partialorder %v4811_v48, %v4810_v15  ;;  %vm1603_vm11 = vcmp.eq.f32.partialorder %v4813_v62, %v4812_v2 }
0x1ce4   : > { %1753 = vmin.xlane.f32.xlu0 %v1752_v46  ;;  %1730 = vmin.xlane.f32.xlu1 %v1729_v40  ;;  %v4313_v0 = vsel %vm1158_vm4, %v1535_v63, 2147483647  ;;  %v4316_v37 = vsel %vm1158_vm4, %v1558_v30, 2147483647  ;;  %v1581_v34 = vsel %vm1580_vm1, %v3232_v23, 6  ;;  %v1604_v19 = vsel %vm1603_vm11, %v3232_v23, 6 }
0x1ce5   : > { %v4320_v38 = vcvt.s32.f32 %v1492_v57  ;;  %v1538_v28 = vshra.s32 %v4313_v0, 16  ;;  %v1561_v33 = vshra.s32 %v4316_v37, 16  ;;  %v4327_v4 = vsel %vm1158_vm4, %v1604_v19, 2147483647 }
0x1ce6   : > { %v4330_v9 = vsel %vm1158_vm4, %v1581_v34, 2147483647  ;;  %v1607_v17 = vshra.s32 %v4327_v4, 16  ;;  %v1710_v24 = vcvt.f32.s32 %v4264_v32  ;;  %v1688_v54 = vshll.u32 %v1687_v44, 16 }
0x1ce7   : > { %v4334_v51 = vcvt.s32.f32 %v1538_v28  ;;  %v4336_v20 = vcvt.s32.f32 %v1561_v33  ;;  %v1584_v18 = vshra.s32 %v4330_v9, 16  ;;  %v1733_v8 = vcvt.f32.s32 %v4292_v22 }
0x1ce8   : > { %2403 = vadd.xlane.f32.xlu0 %v2400_v3  ;;  %2401 = vadd.xlane.f32.xlu1 %v2399_v26  ;;  %v4342_v50 = vcvt.s32.f32 %v1607_v17  ;;  %v1711_v55 = vshll.u32 %v1710_v24, 16  ;;  %v1756_v41 = vcvt.f32.s32 %v4290_v11  ;;  %v1514_v63 = vand.u32 65535, %v4302_v29  ;;  %v4816_v17 = vld [vmem:[#allocation28_spill] sm:$0xff] }
0x1ce9   : > { %v4344_v21 = vcvt.s32.f32 %v1584_v18  ;;  %v1734_v43 = vshll.u32 %v1733_v8, 16  ;;  %v1491_v15 = vand.u32 65535, %v4299_v53  ;;  %v1560_v26 = vand.u32 65535, %v4316_v37  ;;  %v4814_v53 = vld [vmem:[#allocation27_spill] sm:$0xff]  ;;  %v4815_v37 = vld [vmem:[#allocation18_spill] sm:$0xff]  ;;  %v4817_v18 = vld [vmem:[#allocation20_spill] sm:$0xff] }
0x1cea   : > { %v1757_v48 = vshll.u32 %v1756_v41, 16  ;;  %v1516_v19 = vcvt.s32.f32 %v1514_v63  ;;  %v1537_v29 = vand.u32 65535, %v4313_v0  ;;  %vm1349_vm14 = vcmp.eq.f32.partialorder %v4815_v37, %v4814_v53  ;;  %v4823_v41 = vld [vmem:[#allocation21_spill] sm:$0xff] }
0x1ceb   : > { %v1493_v28 = vcvt.s32.f32 %v1491_v15  ;;  %vm1372_vm15 = vcmp.eq.f32.partialorder %v4817_v18, %v4816_v17  ;;  %v1562_v0 = vcvt.s32.f32 %v1560_v26  ;;  %v1583_v24 = vand.u32 65535, %v4330_v9  ;;  %v4818_v9 = vld [vmem:[#allocation24_spill] sm:$0xff] }
0x1cec   : > { %1495 = vmin.xlane.f32.xlu0 %v4320_v38  ;;  %1518 = vmin.xlane.f32.xlu1 %v4322_v52 }
0x1cf0   : > { %1541 = vmin.xlane.f32.xlu0 %v4334_v51  ;;  %1564 = vmin.xlane.f32.xlu1 %v4336_v20 }
0x1cf4   : > { %1610 = vmin.xlane.f32.xlu1 %v4342_v50  ;;  %1587 = vmin.xlane.f32.xlu0 %v4344_v21 }
0x1d65   : > { %v1662_v35 = vpop.xlane.xlu1 %1661  ;;  %v1639_v12 = vpop.xlane.xlu0 %1638 }
0x1d66   : > { %v1663_v14 = vcvt.f32.s32 %v1662_v35  ;;  %v1640_v47 = vcvt.f32.s32 %v1639_v12  ;;  %v1539_v12 = vcvt.s32.f32 %v1537_v29 }
0x1d68   : > { %v1666_v42 = vadd.s32 %v1665_v60, %v1663_v14  ;;  %v1643_v39 = vadd.s32 %v1642_v59, %v1640_v47  ;;  %v1606_v60 = vand.u32 65535, %v4327_v4  ;;  %v1350_v4 = vsel %vm1349_vm14, %v3232_v23, 6 }
0x1d69   : > { %v1708_v27 = vpop.xlane.xlu1 %1707  ;;  %v1685_v5 = vpop.xlane.xlu0 %1684 }
0x1d6a   : > { %v1645_v49 = vsel %vm1202_vm5, %v1643_v39, 0  ;;  %v1709_v7 = vcvt.f32.s32 %v1708_v27  ;;  %v1686_v16 = vcvt.f32.s32 %v1685_v5 }
0x1d6b   : > { %v1668_v25 = vsel %vm1230_vm6, %v1666_v42, %v1645_v49  ;;  %v1585_v49 = vcvt.s32.f32 %v1583_v24 }
0x1d6c   : > { %v1712_v56 = vadd.s32 %v1711_v55, %v1709_v7  ;;  %v1689_v32 = vadd.s32 %v1688_v54, %v1686_v16  ;;  %v4821_v54 = vld [vmem:[#allocation23_spill] sm:$0xff]  ;;  %v1608_v55 = vcvt.s32.f32 %v1606_v60 }
0x1d6d   : > { %v1754_v13 = vpop.xlane.xlu0 %1753  ;;  %v1731_v1 = vpop.xlane.xlu1 %1730 }
0x1d6e   : > { %v1691_v31 = vsel %vm1258_vm7, %v1689_v32, %v1668_v25  ;;  %v1732_v36 = vcvt.f32.s32 %v1731_v1  ;;  %v1755_v46 = vcvt.f32.s32 %v1754_v13 }
0x1d6f   : > { %v1714_v10 = vsel %vm1286_vm8, %v1712_v56, %v1691_v31  ;;  %v4420_v56 = vsel %vm1158_vm4, %v1350_v4, 2147483647  ;;  %v4825_v31 = vld [vmem:[#allocation22_spill] sm:$0xff] }
0x1d70   : > { %v1735_v40 = vadd.s32 %v1734_v43, %v1732_v36  ;;  %v1758_v62 = vadd.s32 %v1757_v48, %v1755_v46 }
0x1d71   : > { %v2404_v22 = vpop.xlane.xlu0 %2403  ;;  %v2402_v30 = vpop.xlane.xlu1 %2401 }
0x1d72   : > { %v2406_v2 = vcvt.f32.s32 %v2404_v22  ;;  %v2405_v3 = vcvt.f32.s32 %v2402_v30  ;;  %v1737_v57 = vsel %vm1175_vm3, %v1735_v40, %v1714_v10  ;;  %v1353_v10 = vshra.s32 %v4420_v56, 16 }
0x1d73   : > { %v1760_v59 = vsel %vm1341_vm9, %v1758_v62, %v1737_v57 }
0x1d74   : > { %v2407_v11 = vshll.u32 %v2406_v2, 16  ;;  %v4441_v15 = vcvt.s32.f32 %v1353_v10 }
0x1d75   : > { %v4367_v45 = vpop.xlane.xlu0 %1495  ;;  %v4369_v34 = vpop.xlane.xlu1 %1518 }
0x1d76   : > { %v2408_v33 = vadd.s32 %v2407_v11, %v2405_v3  ;;  %vm1497_vm12 = vcmp.eq.f32.partialorder %v4320_v38, %v4367_v45  ;;  %vm1520_vm13 = vcmp.eq.f32.partialorder %v4322_v52, %v4369_v34  ;;  %v1502_v53 = vcvt.f32.s32 %v4367_v45 }
0x1d77   : > { %v1521_v58 = vsel %vm1520_vm13, %v1516_v19, inf  ;;  %v1498_v61 = vsel %vm1497_vm12, %v1493_v28, inf  ;;  %v1525_v37 = vcvt.f32.s32 %v4369_v34 }
0x1d78   : > { %v2409_v44 = vcvt.s32.f32 %v2408_v33  ;;  %vm2411_vm2 = vcmp.eq.s32.totalorder %v3232_v23, %v2408_v33  ;;  %1522 = vmin.xlane.f32.xlu1 %v1521_v58  ;;  %1499 = vmin.xlane.f32.xlu0 %v1498_v61  ;;  %v1503_v17 = vshll.u32 %v1502_v53, 16 }
0x1d79   : > { %v2412_v38 = vsel %vm2411_vm2, %v1760_v59, 0  ;;  %v4383_v35 = vpop.xlane.xlu0 %1541  ;;  %v4385_v52 = vpop.xlane.xlu1 %1564  ;;  %v1526_v59 = vshll.u32 %v1525_v37, 16 }
0x1d7a   : > { %v4392_v14 = vsel %vm1286_vm8, %v2409_v44, %v4271_v6  ;;  %vm1543_vm10 = vcmp.eq.f32.partialorder %v4334_v51, %v4383_v35  ;;  %vm1566_vm0 = vcmp.eq.f32.partialorder %v4336_v20, %v4385_v52  ;;  %v2413_v39 = vsel %vm1158_vm4, %v2412_v38, 0  ;;  %v4819_v51 = vld [vmem:[#allocation19_spill] sm:$0xff]  ;;  %v4820_v20 = vld [vmem:[#allocation29_spill] sm:$0xff] }
0x1d7b   : > { %v1567_v47 = vsel %vm1566_vm0, %v1562_v0, inf  ;;  %v1544_v42 = vsel %vm1543_vm10, %v1539_v12, inf  ;;  %v1373_v6 = vsel %vm1372_vm15, %v3232_v23, 6  ;;  %vm1395_vm1 = vcmp.eq.f32.partialorder %v4819_v51, %v4818_v9 }
0x1d7c   : > { %1568 = vmin.xlane.f32.xlu1 %v1567_v47  ;;  %1545 = vmin.xlane.f32.xlu0 %v1544_v42  ;;  %vm1418_vm11 = vcmp.eq.f32.partialorder %v4821_v54, %v4820_v20  ;;  %v2415_v7 = vshrl.u32 %v2413_v39, 16  ;;  %v2414_v16 = vand.u32 65535, %v2413_v39  ;;  %v4423_v32 = vsel %vm1158_vm4, %v1373_v6, 2147483647 }
0x1d7d   : > { %v4411_v27 = vpop.xlane.xlu1 %1610  ;;  %v4413_v5 = vpop.xlane.xlu0 %1587  ;;  %v1396_v13 = vsel %vm1395_vm1, %v3232_v23, 6  ;;  %v1419_v1 = vsel %vm1418_vm11, %v3232_v23, 6  ;;  %v1376_v46 = vshra.s32 %v4423_v32, 16  ;;  %v1548_v18 = vcvt.f32.s32 %v4383_v35 }
0x1d7e   : > { %vm1612_vm12 = vcmp.eq.f32.partialorder %v4342_v50, %v4411_v27  ;;  %vm1589_vm13 = vcmp.eq.f32.partialorder %v4344_v21, %v4413_v5  ;;  %v4822_v50 = vld [vmem:[#allocation25_spill] sm:$0xff]  ;;  %v4824_v21 = vld [vmem:[#allocation26_spill] sm:$0xff]  ;;  %v2417_v36 = vcvt.s32.f32 %v2415_v7  ;;  %v2416_v43 = vcvt.s32.f32 %v2414_v16 }
0x1d7f   : > { %v1613_v8 = vsel %vm1612_vm12, %v1608_v55, inf  ;;  %v1590_v25 = vsel %vm1589_vm13, %v1585_v49, inf  ;;  %vm1441_vm14 = vcmp.eq.f32.partialorder %v4823_v41, %v4822_v50  ;;  %vm1464_vm15 = vcmp.eq.f32.partialorder %v4825_v31, %v4824_v21 }
0x1d80   : > { %1614 = vmin.xlane.f32.xlu0 %v1613_v8  ;;  %1591 = vmin.xlane.f32.xlu1 %v1590_v25  ;;  %v4434_v40 = vsel %vm1158_vm4, %v1396_v13, 2147483647  ;;  %v4437_v22 = vsel %vm1158_vm4, %v1419_v1, 2147483647  ;;  %v1442_v30 = vsel %vm1441_vm14, %v3232_v23, 6  ;;  %v1465_v63 = vsel %vm1464_vm15, %v3232_v23, 6 }
0x1d81   : > { %v4443_v48 = vcvt.s32.f32 %v1376_v46  ;;  %v1399_v2 = vshra.s32 %v4434_v40, 16  ;;  %v1422_v62 = vshra.s32 %v4437_v22, 16  ;;  %v4448_v11 = vsel %vm1158_vm4, %v1442_v30, 2147483647 }
0x1d82   : > { %v4451_v3 = vsel %vm1158_vm4, %v1465_v63, 2147483647  ;;  %v1445_v19 = vshra.s32 %v4448_v11, 16  ;;  %v1571_v44 = vcvt.f32.s32 %v4385_v52  ;;  %v1549_v24 = vshll.u32 %v1548_v18, 16 }
0x1d83   : > { %v4455_v26 = vcvt.s32.f32 %v1399_v2  ;;  %v4457_v57 = vcvt.s32.f32 %v1422_v62  ;;  %v1468_v28 = vshra.s32 %v4451_v3, 16  ;;  %v1594_v35 = vcvt.f32.s32 %v4413_v5 }
0x1d84   : > { %2420 = vadd.xlane.f32.xlu0 %v2417_v36  ;;  %2418 = vadd.xlane.f32.xlu1 %v2416_v43  ;;  %v4463_v29 = vcvt.s32.f32 %v1445_v19  ;;  %v1572_v39 = vshll.u32 %v1571_v44, 16  ;;  %v1617_v54 = vcvt.f32.s32 %v4411_v27  ;;  %v1352_v1 = vand.u32 65535, %v4420_v56  ;;  %v4828_v19 = vld [vmem:[#allocation15_spill] sm:$0xff] }
0x1d85   : > { %v4465_v33 = vcvt.s32.f32 %v1468_v28  ;;  %v1595_v7 = vshll.u32 %v1594_v35, 16  ;;  %v1375_v50 = vand.u32 65535, %v4423_v32  ;;  %v1398_v43 = vand.u32 65535, %v4434_v40  ;;  %v4826_v32 = vld [vmem:[#allocation12_spill] sm:$0xff]  ;;  %v4827_v40 = vld [vmem:[#allocation6_spill] sm:$0xff] }
0x1d86   : > { %v1618_v41 = vshll.u32 %v1617_v54, 16  ;;  %v1354_v63 = vcvt.s32.f32 %v1352_v1  ;;  %v1421_v56 = vand.u32 65535, %v4437_v22  ;;  %vm1185_vm0 = vcmp.eq.f32.partialorder %v4827_v40, %v4826_v32  ;;  %v4829_v28 = vld [vmem:[#allocation10_spill] sm:$0xff]  ;;  %v4835_v54 = vld [vmem:[#allocation11_spill] sm:$0xff] }
0x1d87   : > { %v1377_v2 = vcvt.s32.f32 %v1375_v50  ;;  %vm1213_vm1 = vcmp.eq.f32.partialorder %v4829_v28, %v4828_v19  ;;  %v1400_v22 = vcvt.s32.f32 %v1398_v43  ;;  %v1444_v44 = vand.u32 65535, %v4448_v11 }
0x1d88   : > { %1356 = vmin.xlane.f32.xlu0 %v4441_v15  ;;  %1379 = vmin.xlane.f32.xlu1 %v4443_v48  ;;  %v1186_v11 = vsel %vm1185_vm0, %v3232_v23, 6 }
0x1d8c   : > { %1402 = vmin.xlane.f32.xlu0 %v4455_v26  ;;  %1425 = vmin.xlane.f32.xlu1 %v4457_v57 }
0x1d90   : > { %1448 = vmin.xlane.f32.xlu0 %v4463_v29  ;;  %1471 = vmin.xlane.f32.xlu1 %v4465_v33 }
0x1e01   : > { %v1523_v58 = vpop.xlane.xlu1 %1522  ;;  %v1500_v61 = vpop.xlane.xlu0 %1499 }
0x1e02   : > { %v1524_v0 = vcvt.f32.s32 %v1523_v58  ;;  %v1501_v38 = vcvt.f32.s32 %v1500_v61  ;;  %v1423_v61 = vcvt.s32.f32 %v1421_v56 }
0x1e04   : > { %v1527_v12 = vadd.s32 %v1526_v59, %v1524_v0  ;;  %v1504_v60 = vadd.s32 %v1503_v17, %v1501_v38  ;;  %v1467_v59 = vand.u32 65535, %v4451_v3  ;;  %v4830_v3 = vld [vmem:[#allocation13_spill] sm:$0xff] }
0x1e05   : > { %v1569_v47 = vpop.xlane.xlu1 %1568  ;;  %v1546_v42 = vpop.xlane.xlu0 %1545 }
0x1e06   : > { %v1506_v45 = vsel %vm1202_vm5, %v1504_v60, 0  ;;  %v1570_v34 = vcvt.f32.s32 %v1569_v47  ;;  %v1547_v4 = vcvt.f32.s32 %v1546_v42 }
0x1e07   : > { %v1529_v6 = vsel %vm1230_vm6, %v1527_v12, %v1506_v45  ;;  %v1446_v45 = vcvt.s32.f32 %v1444_v44 }
0x1e08   : > { %v1573_v9 = vadd.s32 %v1572_v39, %v1570_v34  ;;  %v1550_v52 = vadd.s32 %v1549_v24, %v1547_v4  ;;  %v4833_v24 = vld [vmem:[#allocation8_spill] sm:$0xff]  ;;  %v1469_v39 = vcvt.s32.f32 %v1467_v59 }
0x1e09   : > { %v1615_v51 = vpop.xlane.xlu0 %1614  ;;  %v1592_v20 = vpop.xlane.xlu1 %1591 }
0x1e0a   : > { %v1552_v55 = vsel %vm1258_vm7, %v1550_v52, %v1529_v6  ;;  %v1593_v49 = vcvt.f32.s32 %v1592_v20  ;;  %v1616_v8 = vcvt.f32.s32 %v1615_v51 }
0x1e0b   : > { %v1575_v16 = vsel %vm1286_vm8, %v1573_v9, %v1552_v55  ;;  %v4541_v9 = vsel %vm1158_vm4, %v1186_v11, 2147483647  ;;  %v4837_v55 = vld [vmem:[#allocation9_spill] sm:$0xff] }
0x1e0c   : > { %v1596_v25 = vadd.s32 %v1595_v7, %v1593_v49  ;;  %v1619_v31 = vadd.s32 %v1618_v41, %v1616_v8 }
0x1e0d   : > { %v2421_v5 = vpop.xlane.xlu0 %2420  ;;  %v2419_v13 = vpop.xlane.xlu1 %2418 }
0x1e0e   : > { %v2423_v21 = vcvt.f32.s32 %v2421_v5  ;;  %v2422_v36 = vcvt.f32.s32 %v2419_v13  ;;  %v1598_v10 = vsel %vm1175_vm3, %v1596_v25, %v1575_v16  ;;  %v1189_v16 = vshra.s32 %v4541_v9, 16 }
0x1e0f   : > { %v1621_v17 = vsel %vm1341_vm9, %v1619_v31, %v1598_v10 }
0x1e10   : > { %v2424_v27 = vshll.u32 %v2423_v21, 16  ;;  %v4562_v50 = vcvt.s32.f32 %v1189_v16 }
0x1e11   : > { %v4488_v46 = vpop.xlane.xlu0 %1356  ;;  %v4490_v30 = vpop.xlane.xlu1 %1379 }
0x1e12   : > { %v2425_v62 = vadd.s32 %v2424_v27, %v2422_v36  ;;  %vm1358_vm2 = vcmp.eq.f32.partialorder %v4441_v15, %v4488_v46  ;;  %vm1381_vm10 = vcmp.eq.f32.partialorder %v4443_v48, %v4490_v30  ;;  %v1363_v32 = vcvt.f32.s32 %v4488_v46 }
0x1e13   : > { %v1359_v53 = vsel %vm1358_vm2, %v1354_v63, inf  ;;  %v1382_v37 = vsel %vm1381_vm10, %v1377_v2, inf  ;;  %v1386_v40 = vcvt.f32.s32 %v4490_v30 }
0x1e14   : > { %v2426_v18 = vcvt.s32.f32 %v2425_v62  ;;  %vm2428_vm11 = vcmp.eq.s32.totalorder %v3232_v23, %v2425_v62  ;;  %1360 = vmin.xlane.f32.xlu0 %v1359_v53  ;;  %1383 = vmin.xlane.f32.xlu1 %v1382_v37  ;;  %v1364_v19 = vshll.u32 %v1363_v32, 16 }
0x1e15   : > { %v2429_v15 = vsel %vm2428_vm11, %v1621_v17, 0  ;;  %v4504_v58 = vpop.xlane.xlu0 %1402  ;;  %v4506_v48 = vpop.xlane.xlu1 %1425  ;;  %v1387_v17 = vshll.u32 %v1386_v40, 16 }
0x1e16   : > { %v4513_v0 = vsel %vm1258_vm7, %v2426_v18, %v4392_v14  ;;  %vm1404_vm12 = vcmp.eq.f32.partialorder %v4455_v26, %v4504_v58  ;;  %vm1427_vm13 = vcmp.eq.f32.partialorder %v4457_v57, %v4506_v48  ;;  %v2430_v60 = vsel %vm1158_vm4, %v2429_v15, 0  ;;  %v4831_v26 = vld [vmem:[#allocation7_spill] sm:$0xff]  ;;  %v4832_v57 = vld [vmem:[#allocation14_spill] sm:$0xff] }
0x1e17   : > { %v1405_v38 = vsel %vm1404_vm12, %v1400_v22, inf  ;;  %v1428_v12 = vsel %vm1427_vm13, %v1423_v61, inf  ;;  %v1214_v14 = vsel %vm1213_vm1, %v3232_v23, 6  ;;  %vm1241_vm14 = vcmp.eq.f32.partialorder %v4831_v26, %v4830_v3 }
0x1e18   : > { %1406 = vmin.xlane.f32.xlu0 %v1405_v38  ;;  %1429 = vmin.xlane.f32.xlu1 %v1428_v12  ;;  %vm1269_vm15 = vcmp.eq.f32.partialorder %v4833_v24, %v4832_v57  ;;  %v2432_v34 = vshrl.u32 %v2430_v60, 16  ;;  %v2431_v4 = vand.u32 65535, %v2430_v60  ;;  %v4544_v52 = vsel %vm1158_vm4, %v1214_v14, 2147483647 }
0x1e19   : > { %v4532_v47 = vpop.xlane.xlu0 %1448  ;;  %v4534_v42 = vpop.xlane.xlu1 %1471  ;;  %v1242_v51 = vsel %vm1241_vm14, %v3232_v23, 6  ;;  %v1270_v20 = vsel %vm1269_vm15, %v3232_v23, 6  ;;  %v1217_v8 = vshra.s32 %v4544_v52, 16  ;;  %v1409_v28 = vcvt.f32.s32 %v4504_v58 }
0x1e1a   : > { %vm1450_vm2 = vcmp.eq.f32.partialorder %v4463_v29, %v4532_v47  ;;  %vm1473_vm10 = vcmp.eq.f32.partialorder %v4465_v33, %v4534_v42  ;;  %v4834_v29 = vld [vmem:[#allocation17_spill] sm:$0xff]  ;;  %v4836_v33 = vld [vmem:[#allocation16_spill] sm:$0xff]  ;;  %v2434_v49 = vcvt.s32.f32 %v2432_v34  ;;  %v2433_v7 = vcvt.s32.f32 %v2431_v4 }
0x1e1b   : > { %v1474_v35 = vsel %vm1473_vm10, %v1469_v39, inf  ;;  %v1451_v6 = vsel %vm1450_vm2, %v1446_v45, inf  ;;  %vm1297_vm0 = vcmp.eq.f32.partialorder %v4835_v54, %v4834_v29  ;;  %vm1324_vm1 = vcmp.eq.f32.partialorder %v4837_v55, %v4836_v33 }
0x1e1c   : > { %1475 = vmin.xlane.f32.xlu0 %v1474_v35  ;;  %1452 = vmin.xlane.f32.xlu1 %v1451_v6  ;;  %v4555_v25 = vsel %vm1158_vm4, %v1242_v51, 2147483647  ;;  %v4558_v5 = vsel %vm1158_vm4, %v1270_v20, 2147483647  ;;  %v1298_v13 = vsel %vm1297_vm0, %v3232_v23, 6  ;;  %v1325_v1 = vsel %vm1324_vm1, %v3232_v23, 6 }
0x1e1d   : > { %v4564_v41 = vcvt.s32.f32 %v1217_v8  ;;  %v1245_v21 = vshra.s32 %v4555_v25, 16  ;;  %v1273_v31 = vshra.s32 %v4558_v5, 16  ;;  %v4569_v27 = vsel %vm1158_vm4, %v1298_v13, 2147483647 }
0x1e1e   : > { %v4572_v36 = vsel %vm1158_vm4, %v1325_v1, 2147483647  ;;  %v1301_v63 = vshra.s32 %v4569_v27, 16  ;;  %v1432_v18 = vcvt.f32.s32 %v4506_v48  ;;  %v1410_v44 = vshll.u32 %v1409_v28, 16 }
0x1e1f   : > { %v4576_v43 = vcvt.s32.f32 %v1245_v21  ;;  %v4578_v10 = vcvt.s32.f32 %v1273_v31  ;;  %v1328_v2 = vshra.s32 %v4572_v36, 16  ;;  %v1455_v58 = vcvt.f32.s32 %v4532_v47 }
0x1e20   : > { %2437 = vadd.xlane.f32.xlu0 %v2434_v49  ;;  %2435 = vadd.xlane.f32.xlu1 %v2433_v7  ;;  %v4584_v56 = vcvt.s32.f32 %v1301_v63  ;;  %v1433_v60 = vshll.u32 %v1432_v18, 16  ;;  %v1478_v24 = vcvt.f32.s32 %v4534_v42  ;;  %v1188_v47 = vand.u32 65535, %v4541_v9 }
0x1e21   : > { %v4586_v62 = vcvt.s32.f32 %v1328_v2  ;;  %v1456_v34 = vshll.u32 %v1455_v58, 16  ;;  %v1216_v29 = vand.u32 65535, %v4544_v52  ;;  %v1244_v21 = vand.u32 65535, %v4555_v25 }
0x1e22   : > { %v1479_v54 = vshll.u32 %v1478_v24, 16  ;;  %v1190_v7 = vcvt.s32.f32 %v1188_v47  ;;  %v1272_v9 = vand.u32 65535, %v4558_v5 }
0x1e23   : > { %v1218_v1 = vcvt.s32.f32 %v1216_v29  ;;  %v1246_v28 = vcvt.s32.f32 %v1244_v21 }
0x1e24   : > { %1192 = vmin.xlane.f32.xlu0 %v4562_v50  ;;  %1220 = vmin.xlane.f32.xlu1 %v4564_v41  ;;  %v1274_v5 = vcvt.s32.f32 %v1272_v9 }
0x1e28   : > { %1248 = vmin.xlane.f32.xlu0 %v4576_v43  ;;  %1276 = vmin.xlane.f32.xlu1 %v4578_v10 }
0x1e2c   : > { %1304 = vmin.xlane.f32.xlu0 %v4584_v56  ;;  %1331 = vmin.xlane.f32.xlu1 %v4586_v62 }
0x1e9d   : > { %v1361_v53 = vpop.xlane.xlu0 %1360  ;;  %v1384_v37 = vpop.xlane.xlu1 %1383 }
0x1e9e   : > { %v1362_v22 = vcvt.f32.s32 %v1361_v53  ;;  %v1385_v15 = vcvt.f32.s32 %v1384_v37  ;;  %v1300_v53 = vand.u32 65535, %v4569_v27 }
0x1ea0   : > { %v1365_v61 = vadd.s32 %v1364_v19, %v1362_v22  ;;  %v1388_v59 = vadd.s32 %v1387_v17, %v1385_v15  ;;  %v1302_v15 = vcvt.s32.f32 %v1300_v53 }
0x1ea1   : > { %v1407_v38 = vpop.xlane.xlu0 %1406  ;;  %v1430_v12 = vpop.xlane.xlu1 %1429 }
0x1ea2   : > { %v1367_v46 = vsel %vm1202_vm5, %v1365_v61, 0  ;;  %v1408_v30 = vcvt.f32.s32 %v1407_v38  ;;  %v1431_v11 = vcvt.f32.s32 %v1430_v12 }
0x1ea3   : > { %v1390_v14 = vsel %vm1230_vm6, %v1388_v59, %v1367_v46 }
0x1ea4   : > { %v1411_v3 = vadd.s32 %v1410_v44, %v1408_v30  ;;  %v1434_v48 = vadd.s32 %v1433_v60, %v1431_v11 }
0x1ea5   : > { %v1476_v26 = vpop.xlane.xlu0 %1475  ;;  %v1453_v57 = vpop.xlane.xlu1 %1452 }
0x1ea6   : > { %v1413_v39 = vsel %vm1258_vm7, %v1411_v3, %v1390_v14  ;;  %v1454_v45 = vcvt.f32.s32 %v1453_v57  ;;  %v1477_v35 = vcvt.f32.s32 %v1476_v26 }
0x1ea7   : > { %v1436_v4 = vsel %vm1286_vm8, %v1434_v48, %v1413_v39 }
0x1ea8   : > { %v1457_v6 = vadd.s32 %v1456_v34, %v1454_v45  ;;  %v1480_v55 = vadd.s32 %v1479_v54, %v1477_v35 }
0x1ea9   : > { %v2438_v51 = vpop.xlane.xlu0 %2437  ;;  %v2436_v20 = vpop.xlane.xlu1 %2435 }
0x1eaa   : > { %v2440_v33 = vcvt.f32.s32 %v2438_v51  ;;  %v2439_v49 = vcvt.f32.s32 %v2436_v20  ;;  %v1459_v16 = vsel %vm1175_vm3, %v1457_v6, %v1436_v4 }
0x1eab   : > { %v1482_v2 = vsel %vm1341_vm9, %v1480_v55, %v1459_v16 }
0x1eac   : > { %v2441_v42 = vshll.u32 %v2440_v33, 16 }
0x1ead   : > { %v1193_v8 = vpop.xlane.xlu0 %1192  ;;  %v1221_v13 = vpop.xlane.xlu1 %1220 }
0x1eae   : > { %v2442_v31 = vadd.s32 %v2441_v42, %v2439_v49  ;;  %vm1194_vm11 = vcmp.eq.f32.partialorder %v4562_v50, %v1193_v8  ;;  %vm1222_vm12 = vcmp.eq.f32.partialorder %v4564_v41, %v1221_v13  ;;  %v1199_v12 = vcvt.f32.s32 %v1193_v8 }
0x1eaf   : > { %v1195_v52 = vsel %vm1194_vm11, %v1190_v7, inf  ;;  %v1223_v63 = vsel %vm1222_vm12, %v1218_v1, inf  ;;  %v1227_v60 = vcvt.f32.s32 %v1221_v13 }
0x1eb0   : > { %v2443_v32 = vcvt.s32.f32 %v2442_v31  ;;  %vm2445_vm13 = vcmp.eq.s32.totalorder %v3232_v23, %v2442_v31  ;;  %1196 = vmin.xlane.f32.xlu0 %v1195_v52  ;;  %1224 = vmin.xlane.f32.xlu1 %v1223_v63  ;;  %v1200_v46 = vshll.u32 %v1199_v12, 16  ;;  %v2546_v12 = vld [vmem:[%s3287_s24 + $0x20] sm:$0xff] (%p3018_p5) }
0x1eb1   : > { %v2446_v40 = vsel %vm2445_vm13, %v1482_v2, 0  ;;  %v1249_v19 = vpop.xlane.xlu0 %1248  ;;  %v1277_v25 = vpop.xlane.xlu1 %1276  ;;  %v1228_v58 = vshll.u32 %v1227_v60, 16  ;;  %v2548_v60 = vld [vmem:[%s3287_s24 + $0x28] sm:$0xff] (%p3018_p5)  ;;  %2547 = vst [vmem:[%s2495_s10 + $0x40] sm:$0xff] (%p3018_p5), %v2546_v12 }
0x1eb2   : > { %v4619_v50 = vsel %vm1230_vm6, %v2443_v32, %v4513_v0  ;;  %vm1250_vm14 = vcmp.eq.f32.partialorder %v4576_v43, %v1249_v19  ;;  %vm1278_vm15 = vcmp.eq.f32.partialorder %v4578_v10, %v1277_v25  ;;  %v2447_v17 = vsel %vm1158_vm4, %v2446_v40, 0  ;;  %2549 = vst [vmem:[%s2495_s10 + $0x50] sm:$0xff] (%p3018_p5), %v2548_v60 }
0x1eb3   : > { %v1251_v41 = vsel %vm1250_vm14, %v1246_v28, inf  ;;  %v1279_v37 = vsel %vm1278_vm15, %v1274_v5, inf  ;;  %v2449_v18 = vshrl.u32 %v2447_v17, 16  ;;  %v2448_v61 = vand.u32 65535, %v2447_v17 }
0x1eb4   : > { %1252 = vmin.xlane.f32.xlu0 %v1251_v41  ;;  %1280 = vmin.xlane.f32.xlu1 %v1279_v37  ;;  %v1327_v0 = vand.u32 65535, %v4572_v36  ;;  %v1255_v30 = vcvt.f32.s32 %v1249_v19  ;;  %v1283_v14 = vcvt.f32.s32 %v1277_v25 }
0x1eb5   : > { %v1305_v22 = vpop.xlane.xlu0 %1304  ;;  %v1332_v27 = vpop.xlane.xlu1 %1331  ;;  %v2451_v59 = vcvt.s32.f32 %v2449_v18  ;;  %v2450_v43 = vcvt.s32.f32 %v2448_v61 }
0x1eb6   : > { %vm1306_vm2 = vcmp.eq.f32.partialorder %v4584_v56, %v1305_v22  ;;  %vm1333_vm10 = vcmp.eq.f32.partialorder %v4586_v62, %v1332_v27  ;;  %v1329_v10 = vcvt.s32.f32 %v1327_v0  ;;  %v1256_v57 = vshll.u32 %v1255_v30, 16  ;;  %v4838_v0 = vld [vmem:[#allocation52_spill] sm:$0xff]  ;;  %v2552_v30 = vld [vmem:[%s3287_s24 + $0x38] sm:$0xff] (%p3018_p5) }
0x1eb7   : > { %v1307_v44 = vsel %vm1306_vm2, %v1302_v15, inf  ;;  %v1284_v39 = vshll.u32 %v1283_v14, 16  ;;  %v1311_v47 = vcvt.f32.s32 %v1305_v22  ;;  %v1338_v55 = vcvt.f32.s32 %v1332_v27  ;;  %2553 = vst [vmem:[%s2495_s10 + $0x70] sm:$0xff] (%p3018_p5), %v2552_v30 }
0x1eb8   : > { %1308 = vmin.xlane.f32.xlu1 %v1307_v44  ;;  %2454 = vadd.xlane.f32.xlu0 %v2451_v59  ;;  %v1334_v38 = vsel %vm1333_vm10, %v1329_v10, inf  ;;  %v2542_v10 = vld [vmem:[%s3287_s24 + $0x10] sm:$0xff] (%p3018_p5) }
0x1eb9   : > { %v1312_v7 = vshll.u32 %v1311_v47, 16  ;;  %v1339_v9 = vshll.u32 %v1338_v55, 16  ;;  %2543 = vst [vmem:[%s2495_s10 + $0x20] sm:$0xff] (%p3018_p5), %v2542_v10 }
0x1ebc   : > { %2452 = vadd.xlane.f32.xlu1 %v2450_v43  ;;  %1335 = vmin.xlane.f32.xlu0 %v1334_v38  ;;  %v2540_v43 = vld [vmem:[%s3287_s24 + $0x8] sm:$0xff] (%p3018_p5)  ;;  %v2544_v38 = vld [vmem:[%s3287_s24 + $0x18] sm:$0xff] (%p3018_p5) }
0x1ebd   : > { %2541 = vst [vmem:[%s2495_s10 + $0x10] sm:$0xff] (%p3018_p5), %v2540_v43  ;;  %2545 = vst [vmem:[%s2495_s10 + $0x30] sm:$0xff] (%p3018_p5), %v2544_v38 }
0x1f39   : > { %v1197_v56 = vpop.xlane.xlu0 %1196  ;;  %v1225_v11 = vpop.xlane.xlu1 %1224 }
0x1f3a   : > { %v1198_v36 = vcvt.f32.s32 %v1197_v56  ;;  %v1226_v3 = vcvt.f32.s32 %v1225_v11 }
0x1f3c   : > { %v1201_v48 = vadd.s32 %v1200_v46, %v1198_v36  ;;  %v1229_v26 = vadd.s32 %v1228_v58, %v1226_v3  ;;  %v2550_v46 = vld [vmem:[%s3287_s24 + $0x30] sm:$0xff] (%p3018_p5) }
0x1f3d   : > { %v1253_v62 = vpop.xlane.xlu0 %1252  ;;  %v1281_v24 = vpop.xlane.xlu1 %1280  ;;  %2551 = vst [vmem:[%s2495_s10 + $0x60] sm:$0xff] (%p3018_p5), %v2550_v46 }
0x1f3e   : > { %v1204_v45 = vsel %vm1202_vm5, %v1201_v48, 0  ;;  %v1254_v34 = vcvt.f32.s32 %v1253_v62  ;;  %v1282_v4 = vcvt.f32.s32 %v1281_v24 }
0x1f3f   : > { %v1232_v35 = vsel %vm1230_vm6, %v1229_v26, %v1204_v45 }
0x1f40   : > { %v1257_v6 = vadd.s32 %v1256_v57, %v1254_v34  ;;  %v1285_v51 = vadd.s32 %v1284_v39, %v1282_v4 }
0x1f41   : > { %v1309_v20 = vpop.xlane.xlu1 %1308  ;;  %v2455_v54 = vpop.xlane.xlu0 %2454 }
0x1f42   : > { %v1260_v29 = vsel %vm1258_vm7, %v1257_v6, %v1232_v35  ;;  %v1310_v33 = vcvt.f32.s32 %v1309_v20  ;;  %v2457_v49 = vcvt.f32.s32 %v2455_v54 }
0x1f43   : > { %v1288_v42 = vsel %vm1286_vm8, %v1285_v51, %v1260_v29 }
0x1f44   : > { %v2458_v8 = vshll.u32 %v2457_v49, 16  ;;  %v1313_v13 = vadd.s32 %v1312_v7, %v1310_v33 }
0x1f45   : > { %v2453_v16 = vpop.xlane.xlu1 %2452  ;;  %v1336_v1 = vpop.xlane.xlu0 %1335 }
0x1f46   : > { %v2456_v21 = vcvt.f32.s32 %v2453_v16  ;;  %v1337_v31 = vcvt.f32.s32 %v1336_v1  ;;  %v1315_v2 = vsel %vm1175_vm3, %v1313_v13, %v1288_v42  ;;  %vm2477_vm3 = vcmp.eq.s32.totalorder %v3232_v23, 8 }
0x1f48   : > { %v2459_v52 = vadd.s32 %v2458_v8, %v2456_v21  ;;  %v1340_v63 = vadd.s32 %v1339_v9, %v1337_v31 }
0x1f4a   : > { %v2460_v32 = vcvt.s32.f32 %v2459_v52  ;;  %vm2462_vm6 = vcmp.eq.s32.totalorder %v3232_v23, %v2459_v52  ;;  %v1343_v40 = vsel %vm1341_vm9, %v1340_v63, %v1315_v2 }
0x1f4b   : > { %v2463_v25 = vsel %vm2462_vm6, %v1343_v40, 0 }
0x1f4c   : > { %v2461_v19 = vsel %vm1202_vm5, %v2460_v32, %v4619_v50  ;;  %v2464_v28 = vsel %vm1158_vm4, %v2463_v25, 0  ;;  %vm2479_vm5 = vcmp.eq.s32.totalorder %v3232_v23, 9  ;;  %v2538_v23 = vld [vmem:[%s3287_s24] sm:$0xff] (%p3018_p5) }
0x1f4d   : > { %v2466_v5 = vshrl.u32 %v2464_v28, 16  ;;  %v2465_v53 = vand.u32 65535, %v2464_v28  ;;  %v2478_v59 = vsel %vm2477_vm3, %v4838_v0, %v2461_v19  ;;  %2539 = vst [vmem:[%s2495_s10] sm:$0xff] (%p3018_p5), %v2538_v23 }
0x1f4f   : > { %v2468_v41 = vcvt.s32.f32 %v2466_v5  ;;  %v2467_v37 = vcvt.s32.f32 %v2465_v53 }
0x1f51   : > { %2471 = vadd.xlane.f32.xlu0 %v2468_v41  ;;  %2469 = vadd.xlane.f32.xlu1 %v2467_v37 }
0x1fda   : > { %v2472_v17 = vpop.xlane.xlu0 %2471  ;;  %v2470_v18 = vpop.xlane.xlu1 %2469 }
0x1fdb   : > { %v2474_v22 = vcvt.f32.s32 %v2472_v17  ;;  %v2473_v27 = vcvt.f32.s32 %v2470_v18 }
0x1fdd   : > { %v2475_v15 = vshll.u32 %v2474_v22, 16 }
0x1fdf   : > { %v2476_v50 = vadd.s32 %v2475_v15, %v2473_v27 }
0x1fe0   : > { %2493 = sbr.rel (!%p3018_p5) target bundleno = 8165 (0x1fe5), region = 116 }
0x1fe1   : > { %v2480_v61 = vcvt.s32.f32 %v2476_v50 }
0x1fe3   : > { %v2481_v44 = vsel %vm2479_vm5, %v2480_v61, %v2478_v59 }
0x1fe4   : > { %2482 = vst [vmem:[%s351_s7] sm:$0xff] %v2481_v44 }
0x1fe5 PF: > { %p13_p11 = scmp.ge.s32.totalorder %s3002_s22, 4   ;;  %s4839_s18 = smov %s2942_s19 }
0x1fe6   : > { %s4840_s19 = smov %s3012_s25  ;;  %s4841_s20 = smov %s3002_s22 }
0x1fe7   :  { %15 = sbr.rel (!%p13_p11) target bundleno = 2 (0x2), region = 206 }

</bundles_post_ra>
